<compile_context>
chip_gen: v6e
topology: v6e:2x2x1
jax: 0.10.0
libtpu: 0.0.40
codegen_flags: <defaults>
</compile_context>

<pallas_src>
import jax
import jax.numpy as jnp
from jax.experimental import pallas as pl
from jax.experimental.pallas import tpu as pltpu

C_IN, C_MID, C_OUT = 288, 80, 480
TILE_O = 120                      # 480 / 120 = 4 grid steps, multiple of 8
BN_EPS = 1e-5


def fused_kernel(x_ref, g_ref, w1_ref, gamma_ref, beta_ref, w2_ref, o_ref, hbn_ref):
    # x_ref:      (C_IN, M)       channel-major activations (M = H*W on lanes)
    # g_ref:      (1, C_IN)       SE gate logits (x168)
    # w1_ref:     (C_MID, C_IN)   conv2d56 weight, PyTorch (out, in) layout
    # gamma/beta: (C_MID, 1)      batchnorm affine params (column vectors)
    # w2_ref:     (TILE_O, C_MID) conv2d57 weight tile for this grid step
    # o_ref:      (TILE_O, M)     output tile
    # hbn_ref:    (C_MID, M)      VMEM scratch holding normalized activations

    @pl.when(pl.program_id(0) == 0)
    def _():
        # SE gate folded into w1: an (80,288) weight mul instead of an (M,288) pass.
        gate = jax.nn.sigmoid(g_ref[...])                       # (1, C_IN) -- EUP
        w1g = w1_ref[...] * gate

        # 1x1 conv #1, transposed form: h^T = (w1*g) @ x -> (C_MID, M)
        h = jnp.dot(w1g, x_ref[...], preferred_element_type=jnp.float32)

        # BatchNorm2d (training-mode batch stats, biased variance) in a single
        # pass: channels sit on the sublane axis, so mean/var/scale/shift are
        # (C_MID, 1) columns that broadcast along lanes for free.
        inv_m = 1.0 / h.shape[1]
        s1 = jnp.sum(h, axis=1, keepdims=True)
        s2 = jnp.sum(h * h, axis=1, keepdims=True)
        mean = s1 * inv_m
        var = s2 * inv_m - mean * mean                           # E[x^2] - mean^2
        scale = gamma_ref[...] * jax.lax.rsqrt(var + BN_EPS)
        shift = beta_ref[...] - mean * scale
        hbn_ref[...] = h * scale + shift                         # one FMA pass

    # 1x1 conv #2, tiled over output channels: out_tile^T = w2_tile @ h_bn
    o_ref[...] = jnp.dot(w2_ref[...], hbn_ref[...],
                         preferred_element_type=jnp.float32)


def fused_forward(x164_nchw, x168_nchw, w1, gamma, beta, w2):
    """x164_nchw: (1, C_IN, H, W); x168_nchw: (1, C_IN, 1, 1).

    w1: (C_MID, C_IN), w2: (C_OUT, C_MID) -- PyTorch conv weight layout,
    gamma/beta: (C_MID,).
    """
    n, c, h, w = x164_nchw.shape
    assert c == C_IN
    # TODO(synk): zero-copy channel-major reshape + gate fold assume N == 1 (as
    # in the module spec); N > 1 needs per-sample gating and a batched layout.
    assert n == 1, "kernel currently assumes batch size 1"
    m = n * h * w

    x_cm = x164_nchw.reshape(C_IN, m)      # zero-copy: NCHW is channel-major for N=1
    g_row = x168_nchw.reshape(1, C_IN)
    gamma_col = gamma.reshape(C_MID, 1)
    beta_col = beta.reshape(C_MID, 1)

    flops = 2 * (C_MID * C_IN + C_OUT * C_MID) * m
    bytes_accessed = 4 * (C_IN * m + C_IN + C_MID * C_IN + 2 * C_MID
                          + C_OUT * C_MID + C_OUT * m)

    out_cm = pl.pallas_call(
        fused_kernel,
        out_shape=jax.ShapeDtypeStruct((C_OUT, m), jnp.float32),
        grid=(C_OUT // TILE_O,),
        in_specs=[
            pl.BlockSpec((C_IN, m), lambda i: (0, 0)),
            pl.BlockSpec((1, C_IN), lambda i: (0, 0)),
            pl.BlockSpec((C_MID, C_IN), lambda i: (0, 0)),
            pl.BlockSpec((C_MID, 1), lambda i: (0, 0)),
            pl.BlockSpec((C_MID, 1), lambda i: (0, 0)),
            pl.BlockSpec((TILE_O, C_MID), lambda i: (i, 0)),
        ],
        out_specs=pl.BlockSpec((TILE_O, m), lambda i: (i, 0)),
        scratch_shapes=[pltpu.VMEM((C_MID, m), jnp.float32)],
        compiler_params=pltpu.CompilerParams(
            dimension_semantics=("arbitrary",)),   # scratch carried across steps
        cost_estimate=pl.CostEstimate(
            flops=flops, transcendentals=C_IN, bytes_accessed=bytes_accessed),
    )(x_cm, g_row, w1, gamma_col, beta_col, w2)

    return out_cm.reshape(n, C_OUT, h, w)          # zero-copy back to NCHW


def reference_forward(x164, x168, w1, gamma, beta, w2):
    """Pure-JAX reference mirroring PyTorch semantics (training-mode BN)."""
    gate = jax.nn.sigmoid(x168)                    # (N, C_IN, 1, 1)
    xg = x164 * gate
    h = jnp.einsum('nchw,oc->nohw', xg, w1)        # 1x1 conv, w1 in (out, in) layout
    mean = jnp.mean(h, axis=(0, 2, 3), keepdims=True)
    var = jnp.mean((h - mean) ** 2, axis=(0, 2, 3), keepdims=True)
    h_bn = (h - mean) * jax.lax.rsqrt(var + BN_EPS)
    h_bn = h_bn * gamma.reshape(1, -1, 1, 1) + beta.reshape(1, -1, 1, 1)
    out = jnp.einsum('nchw,oc->nohw', h_bn, w2)
    return out


if __name__ == "__main__":
    key = jax.random.PRNGKey(0)
    k_x, k_g, k_w1, k_w2 = jax.random.split(key, 4)

    # Shapes from the module spec (channel counts fixed by the conv layers).
    N, H, W = 1, 28, 28
    x164 = jax.random.normal(k_x, (N, C_IN, H, W), dtype=jnp.float32)
    x168 = jax.random.normal(k_g, (N, C_IN, 1, 1), dtype=jnp.float32)

    # Deterministic parameter init; weights kept in PyTorch (out, in) layout.
    w1 = jax.random.normal(k_w1, (C_MID, C_IN), dtype=jnp.float32) * (1.0 / jnp.sqrt(C_IN))
    w2 = jax.random.normal(k_w2, (C_OUT, C_MID), dtype=jnp.float32) * (1.0 / jnp.sqrt(C_MID))
    gamma = jnp.ones((C_MID,), dtype=jnp.float32)
    beta = jnp.zeros((C_MID,), dtype=jnp.float32)

    out = fused_forward(x164, x168, w1, gamma, beta, w2)
    out = jax.block_until_ready(out)
    assert out.shape == (N, C_OUT, H, W), out.shape

    ref = reference_forward(x164, x168, w1, gamma, beta, w2)
    ref = jax.block_until_ready(ref)
    assert jnp.allclose(out, ref, atol=2e-3, rtol=2e-3), float(jnp.max(jnp.abs(out - ref)))

    print("KERNEL_OK")
</pallas_src>

<mosaic_0001>
module attributes {stable_mosaic.version = 11 : i64} {
  func.func @fused_kernel(%arg0: i32, %arg1: memref<288x784xf32, #tpu.memory_space<vmem>>, %arg2: memref<1x288xf32, #tpu.memory_space<vmem>>, %arg3: memref<80x288xf32, #tpu.memory_space<vmem>>, %arg4: memref<80x1xf32, #tpu.memory_space<vmem>>, %arg5: memref<80x1xf32, #tpu.memory_space<vmem>>, %arg6: memref<120x80xf32, #tpu.memory_space<vmem>>, %arg7: memref<120x784xf32, #tpu.memory_space<vmem>>, %arg8: memref<80x784xf32, #tpu.memory_space<vmem>>) attributes {dimension_semantics = [#tpu.dimension_semantics<arbitrary>], iteration_bounds = array<i64: 4>, scalar_prefetch = 0 : i64, scratch_operands = 1 : i64, tpu.core_type = #tpu.core_type<tc>, window_params = [{pipeline_mode = #tpu.pipeline_mode<synchronous>, transform_indices = @transform_0, window_bounds = array<i64: 288, 784>}, {pipeline_mode = #tpu.pipeline_mode<synchronous>, transform_indices = @transform_1, window_bounds = array<i64: 1, 288>}, {pipeline_mode = #tpu.pipeline_mode<synchronous>, transform_indices = @transform_2, window_bounds = array<i64: 80, 288>}, {pipeline_mode = #tpu.pipeline_mode<synchronous>, transform_indices = @transform_3, window_bounds = array<i64: 80, 1>}, {pipeline_mode = #tpu.pipeline_mode<synchronous>, transform_indices = @transform_4, window_bounds = array<i64: 80, 1>}, {transform_indices = @transform_5, window_bounds = array<i64: 120, 80>}, {transform_indices = @transform_6, window_bounds = array<i64: 120, 784>}]} {
    %c0_i32 = arith.constant 0 : i32
    %0 = arith.cmpi eq, %arg0, %c0_i32 : i32
    %1 = arith.extui %0 : i1 to i32
    %c0_i32_0 = arith.constant 0 : i32
    %2 = arith.cmpi ne, %1, %c0_i32_0 : i32
    scf.if %2 {
      %c0_6 = arith.constant 0 : index
      %c0_7 = arith.constant 0 : index
      %7 = vector.load %arg2[%c0_6, %c0_7] : memref<1x288xf32, #tpu.memory_space<vmem>>, vector<1x288xf32>
      %8 = arith.negf %7 : vector<1x288xf32>
      %9 = math.exp %8 : vector<1x288xf32>
      %cst_8 = arith.constant 1.000000e+00 : f32
      %10 = vector.broadcast %cst_8 : f32 to vector<1x288xf32>
      %11 = arith.addf %10, %9 : vector<1x288xf32>
      %12 = arith.divf %10, %11 : vector<1x288xf32>
      %c0_9 = arith.constant 0 : index
      %c0_10 = arith.constant 0 : index
      %13 = vector.load %arg3[%c0_9, %c0_10] : memref<80x288xf32, #tpu.memory_space<vmem>>, vector<80x288xf32>
      %14 = vector.broadcast %12 : vector<1x288xf32> to vector<80x288xf32>
      %15 = arith.mulf %13, %14 : vector<80x288xf32>
      %c0_11 = arith.constant 0 : index
      %c0_12 = arith.constant 0 : index
      %16 = vector.load %arg1[%c0_11, %c0_12] : memref<288x784xf32, #tpu.memory_space<vmem>>, vector<288x784xf32>
      %cst_13 = arith.constant dense<0.000000e+00> : vector<80x784xf32>
      %17 = tpu.matmul %15, %16, %cst_13 {dimension_numbers = #tpu.dot_dimension_numbers<[1], [0], [0], [1], [0, 0, 1, 1], [], []>} : vector<80x288xf32>, vector<288x784xf32>, vector<80x784xf32> -> vector<80x784xf32>
      %cst_14 = arith.constant dense<0.000000e+00> : vector<80xf32>
      %18 = vector.multi_reduction <add>, %17, %cst_14 [1] : vector<80x784xf32> to vector<80xf32>
      %19 = vector.shape_cast %18 : vector<80xf32> to vector<80x1xf32>
      %20 = arith.mulf %17, %17 : vector<80x784xf32>
      %cst_15 = arith.constant dense<0.000000e+00> : vector<80xf32>
      %21 = vector.multi_reduction <add>, %20, %cst_15 [1] : vector<80x784xf32> to vector<80xf32>
      %22 = vector.shape_cast %21 : vector<80xf32> to vector<80x1xf32>
      %cst_16 = arith.constant 0.00127551018 : f32
      %23 = vector.broadcast %cst_16 : f32 to vector<80x1xf32>
      %24 = arith.mulf %19, %23 : vector<80x1xf32>
      %cst_17 = arith.constant 0.00127551018 : f32
      %25 = vector.broadcast %cst_17 : f32 to vector<80x1xf32>
      %26 = arith.mulf %22, %25 : vector<80x1xf32>
      %27 = arith.mulf %24, %24 : vector<80x1xf32>
      %28 = arith.subf %26, %27 : vector<80x1xf32>
      %c0_18 = arith.constant 0 : index
      %c0_19 = arith.constant 0 : index
      %29 = vector.load %arg4[%c0_18, %c0_19] : memref<80x1xf32, #tpu.memory_space<vmem>>, vector<80x1xf32>
      %cst_20 = arith.constant 9.99999974E-6 : f32
      %30 = vector.broadcast %cst_20 : f32 to vector<80x1xf32>
      %31 = arith.addf %28, %30 : vector<80x1xf32>
      %32 = math.rsqrt %31 : vector<80x1xf32>
      %33 = arith.mulf %29, %32 : vector<80x1xf32>
      %c0_21 = arith.constant 0 : index
      %c0_22 = arith.constant 0 : index
      %34 = vector.load %arg5[%c0_21, %c0_22] : memref<80x1xf32, #tpu.memory_space<vmem>>, vector<80x1xf32>
      %35 = arith.mulf %24, %33 : vector<80x1xf32>
      %36 = arith.subf %34, %35 : vector<80x1xf32>
      %37 = vector.broadcast %33 : vector<80x1xf32> to vector<80x784xf32>
      %38 = arith.mulf %17, %37 : vector<80x784xf32>
      %39 = vector.broadcast %36 : vector<80x1xf32> to vector<80x784xf32>
      %40 = arith.addf %38, %39 : vector<80x784xf32>
      %c0_23 = arith.constant 0 : index
      %c0_24 = arith.constant 0 : index
      %41 = vector.load %arg8[%c0_23, %c0_24] : memref<80x784xf32, #tpu.memory_space<vmem>>, vector<80x784xf32>
      tpu.vector_store %arg8[%c0_23, %c0_24], %40 {strides = array<i32>} : memref<80x784xf32, #tpu.memory_space<vmem>>, vector<80x784xf32>,
    } else {
    }
    %c0 = arith.constant 0 : index
    %c0_1 = arith.constant 0 : index
    %3 = vector.load %arg6[%c0, %c0_1] : memref<120x80xf32, #tpu.memory_space<vmem>>, vector<120x80xf32>
    %c0_2 = arith.constant 0 : index
    %c0_3 = arith.constant 0 : index
    %4 = vector.load %arg8[%c0_2, %c0_3] : memref<80x784xf32, #tpu.memory_space<vmem>>, vector<80x784xf32>
    %cst = arith.constant dense<0.000000e+00> : vector<120x784xf32>
    %5 = tpu.matmul %3, %4, %cst {dimension_numbers = #tpu.dot_dimension_numbers<[1], [0], [0], [1], [0, 0, 1, 1], [], []>} : vector<120x80xf32>, vector<80x784xf32>, vector<120x784xf32> -> vector<120x784xf32>
    %c0_4 = arith.constant 0 : index
    %c0_5 = arith.constant 0 : index
    %6 = vector.load %arg7[%c0_4, %c0_5] : memref<120x784xf32, #tpu.memory_space<vmem>>, vector<120x784xf32>
    tpu.vector_store %arg7[%c0_4, %c0_5], %5 {strides = array<i32>} : memref<120x784xf32, #tpu.memory_space<vmem>>, vector<120x784xf32>,
    return
  }
  func.func @transform_0(%arg0: i32) -> (i32, i32) {
    %c0_i32 = arith.constant 0 : i32
    %c0_i32_0 = arith.constant 0 : i32
    %c0_i32_1 = arith.constant 0 : i32
    return %c0_i32, %c0_i32_0 : i32, i32
  }
  func.func @transform_1(%arg0: i32) -> (i32, i32) {
    %c0_i32 = arith.constant 0 : i32
    %c0_i32_0 = arith.constant 0 : i32
    %c0_i32_1 = arith.constant 0 : i32
    return %c0_i32, %c0_i32_0 : i32, i32
  }
  func.func @transform_2(%arg0: i32) -> (i32, i32) {
    %c0_i32 = arith.constant 0 : i32
    %c0_i32_0 = arith.constant 0 : i32
    %c0_i32_1 = arith.constant 0 : i32
    return %c0_i32, %c0_i32_0 : i32, i32
  }
  func.func @transform_3(%arg0: i32) -> (i32, i32) {
    %c0_i32 = arith.constant 0 : i32
    %c0_i32_0 = arith.constant 0 : i32
    %c0_i32_1 = arith.constant 0 : i32
    return %c0_i32, %c0_i32_0 : i32, i32
  }
  func.func @transform_4(%arg0: i32) -> (i32, i32) {
    %c0_i32 = arith.constant 0 : i32
    %c0_i32_0 = arith.constant 0 : i32
    %c0_i32_1 = arith.constant 0 : i32
    return %c0_i32, %c0_i32_0 : i32, i32
  }
  func.func @transform_5(%arg0: i32) -> (i32, i32) {
    %c0_i32 = arith.constant 0 : i32
    %c0_i32_0 = arith.constant 0 : i32
    return %arg0, %c0_i32 : i32, i32
  }
  func.func @transform_6(%arg0: i32) -> (i32, i32) {
    %c0_i32 = arith.constant 0 : i32
    %c0_i32_0 = arith.constant 0 : i32
    return %arg0, %c0_i32 : i32, i32
  }
}

</mosaic_0001>

<bundles_post_ra>
// kernel: tpu_custom_call.1
= control target key start
LH: loop header
LB: loop body
LE: loop exit
PB: predicated region body
PF: predicated region fallthrough
CT: control target
= control target key end

     0   :  { %11 = vsyncpa [#allocation4], 0  ;;  %s5253_s0 = inlined_call_operand.hbm [shape: f32[288,784], index: 0, kind: input, shape index: {}]   ;;  %s5254_s1 = inlined_call_operand.hbm [shape: f32[1,288], index: 1, kind: input, shape index: {}]   ;;  %s5255_s2 = inlined_call_operand.hbm [shape: f32[80,288], index: 2, kind: input, shape index: {}]   ;;  %s5256_s3 = inlined_call_operand.vmem [shape: f32[80,1], index: 3, kind: input, shape index: {}]   ;;  %s5257_s4 = inlined_call_operand.vmem [shape: f32[80,1], index: 4, kind: input, shape index: {}]   ;;  %s5258_s5 = inlined_call_operand.vmem [shape: f32[480,80], index: 5, kind: input, shape index: {}]   ;;  %s5259_s6 = inlined_call_operand.vmem [shape: f32[480,784], index: 6, kind: output, shape index: {}]  }
   0x1   :  { %12 = vsyncpa [#allocation6], 0  ;;  %s3771_s21 = smov 0  }
   0x2 LB: > { %s3725_s22 = smov [#allocation5]   ;;  %s3777_s24 = sadd.s32 4294967295, %s3723_s21   ;;  %s3723_s21 = sphi %s3771_s21, %s18_s21  }
   0x3   : > { %s206_s23 = sshll.u32 %s3725_s22, 4  ;;  %p3253_p0 = scmp.ge.s32.totalorder %s3723_s21, 1  ;;  %s207_s23 = int_to_ptr.vmem [resolvable:$true] %s206_s23 }
   0x4   : > { %p180_p1 = scmp.lt.s32.totalorder %s3723_s21, 5  ;;  %p3254_p2 = scmp.ne.s32.totalorder %s3777_s24, 0 }
   0x5   : > { %p3580_p3 = scmp.eq.s32.totalorder %s3777_s24, 0  ;;  %s3726_s26 = smov [#allocation3]  }
   0x6   : > { %p3783_p4 = pnand %p3253_p0, %p180_p1  ;;  %s192_s27 = sshll.u32 %s3726_s26, 4  ;;  %s3789_s27 = int_to_ptr.vmem [resolvable:$true] %s192_s27 }
   0x7   : > { %s3727_s29 = smov [#allocation7]   ;;  %s3642_s7 = scalar_lea.vmem %s207_s23, 48 }
   0x8   : > { %p3570_p5 = pneg %p3783_p4  ;;  %s216_s30 = sshll.u32 %s3727_s29, 4  ;;  %s3797_s30 = int_to_ptr.vmem [resolvable:$true] %s216_s30 }
   0x9   : > { %p3643_p8 = scmp.ne.s32.totalorder %s207_s23, %s3642_s7  ;;  %s3649_s8 = scalar_lea.vmem %s207_s23, 64 }
   0xa   : > { %p3793_p6 = pnand %p3580_p3, %p3570_p5  ;;  %p3650_p11 = scmp.lt.s32.totalorder %s207_s23, %s207_s23 }
   0xb   : > { %p3651_p12 = scmp.lt.s32.totalorder %s3649_s8, %s3642_s7 }
   0xc   : > { %p3633_p7 = pneg %p3793_p6 }
   0xd   : > { %p3652_p13 = por %p3651_p12, %p3650_p11 }
   0xe   : > { %p3645_p9 = pnand %p3643_p8, %p3633_p7 }
  0x10   : > { %p3646_p10 = pneg %p3645_p9 }
  0x12   : > { %p3653_p0 = pnand %p3652_p13, %p3646_p10 }
  0x14   : > { %3656 = shalt.err (!%p3653_p0)
}
  0x15   : > { %3576 = dma.hbm_to_vmem [thread:$0]  (!%p3793_p6), %s5254_s1, 48, %s207_s23, [#allocation6]  }
  0x16   : > { %s3668_s11 = scalar_lea.vmem %s3789_s27, 32256  ;;  %p3676_p9 = scmp.lt.s32.totalorder %s3789_s27, %s3789_s27 }
  0x17   : > { %p3669_p1 = scmp.ne.s32.totalorder %s3789_s27, %s3668_s11  ;;  %p3677_p10 = scmp.lt.s32.totalorder %s3668_s11, %s3668_s11 }
  0x19   : > { %p3671_p5 = pnand %p3669_p1, %p3633_p7  ;;  %p3678_p11 = por %p3677_p10, %p3676_p9 }
  0x1b   : > { %p3672_p8 = pneg %p3671_p5 }
  0x1d   : > { %p3679_p12 = pnand %p3678_p11, %p3672_p8 }
  0x1f   : > { %3682 = shalt.err (!%p3679_p12)
}
  0x20   : > { %s3728_s12 = smov 896   ;;  %s3729_s13 = smov 56  }
  0x21   : > { %3573 = dma.hbm_to_vmem [thread:$0]  (!%p3793_p6), %s5253_s0, 32256, %s3789_s27, [#allocation4], %s3728_s12, %s3728_s12, %s3729_s13  }
  0x22   : > { %s3694_s16 = scalar_lea.vmem %s3797_s30, 3840  ;;  %p3702_p5 = scmp.lt.s32.totalorder %s3797_s30, %s3797_s30 }
  0x23   : > { %p3695_p13 = scmp.ne.s32.totalorder %s3797_s30, %s3694_s16  ;;  %p3703_p8 = scmp.lt.s32.totalorder %s3694_s16, %s3694_s16 }
  0x25   : > { %p3697_p0 = pnand %p3695_p13, %p3633_p7  ;;  %p3704_p9 = por %p3703_p8, %p3702_p5 }
  0x27   : > { %p3698_p1 = pneg %p3697_p0 }
  0x29   : > { %p3705_p10 = pnand %p3704_p9, %p3698_p1 }
  0x2b   : > { %3708 = shalt.err (!%p3705_p10)
}
  0x2c   : > { %s3730_s17 = smov 384   ;;  %s3731_s18 = smov 24  }
  0x2d   : > { %3579 = dma.hbm_to_vmem [thread:$0]  (!%p3793_p6), %s5255_s2, 3840, %s3797_s30, [#allocation6], %s3730_s17, %s3730_s17, %s3731_s18  }
  0x2e   : > { %247 = sbr.rel (%p3783_p4) target bundleno = 1164 (0x48c), region = 44 }
  0x33   : > { %3714 = dma.done.wait (%p3580_p3), [#allocation4], 32256  }
  0x34   : > { %3716 = vsyncadd (%p3580_p3), [#allocation4], 4294935040 }
  0x35   : > { %3718 = dma.done.wait (%p3580_p3), [#allocation6], 3888  }
  0x36   : > { %3720 = vsyncadd (%p3580_p3), [#allocation6], 4294963408  ;;  %s286_s22 = smul.u32 15, %s3777_s24 }
  0x38   : > { %p287_p7 = scmp.lt.s32.totalorder %s286_s22, 59 }
  0x39   : > { %302 = sbr.rel (%p3254_p2) target bundleno = 830 (0x33e), region = 60 }
  0x3a   : > { %s5422_s22 = smov (!%p287_p7, %s286_s22), 59 }
  0x3b   : > { %s3262_s23 = sshll.u32 %s5422_s22, 3  ;;  %s3557_s26 = smul.u32 56, %s5422_s22 }
  0x3c   : > { %s3849_s28 = scalar_lea.vmem %s5258_s5, %s3262_s23 }
  0x3d   : > { %s3854_s7 = scalar_lea.vmem %s5259_s6, %s3557_s26 }
  0x3e   : > { %v492_v0 = vld [vmem:[#allocation3 + $0x350] sm:$0xff]  ;;  %v491_v1 = vld [vmem:[#allocation3 + $0x348] sm:$0xff]  ;;  %v485_v2 = vld [vmem:[#allocation3 + $0x318] sm:$0xff]  ;;  %v3732_v4 = vmov 0.0   ;;  %v341_v52 = vlaneseq  ;;  %vm638_vm0 = vcmask 261120   ;;  %vm1654_vm1 = vcmask 130048  }
  0x3f   : > { %669 = vmatprep.subr.mxu0 %v492_v0  ;;  %v484_v3 = vld [vmem:[#allocation3 + $0x310] sm:$0xff]  ;;  %858 = vmatprep.mubr.f32.mxu1 %v3732_v4  ;;  %v478_v5 = vld [vmem:[#allocation3 + $0x2e0] sm:$0xff]  ;;  %v477_v6 = vld [vmem:[#allocation3 + $0x2d8] sm:$0xff] }
  0x40   : > { %670 = vmatpush1.msra.mxu0 %v491_v1  ;;  %v471_v7 = vld [vmem:[#allocation3 + $0x2a8] sm:$0xff]  ;;  %v470_v8 = vld [vmem:[#allocation3 + $0x2a0] sm:$0xff]  ;;  %v464_v9 = vld [vmem:[#allocation3 + $0x270] sm:$0xff]  ;;  %v3859_v57 = vshrl.u32 %v341_v52, 7 }
  0x41   : > { %671 = vmatprep.subr.mxu0 %v485_v2  ;;  %v463_v10 = vld [vmem:[#allocation3 + $0x268] sm:$0xff]  ;;  %v457_v11 = vld [vmem:[#allocation3 + $0x238] sm:$0xff]  ;;  %v456_v12 = vld [vmem:[#allocation3 + $0x230] sm:$0xff] }
  0x42   : > { %672 = vmatpush1.msra.mxu0 %v484_v3  ;;  %v632_v13 = vld [vmem:[#allocation3 + $0x7b0] sm:$0xff]  ;;  %v450_v14 = vld [vmem:[#allocation3 + $0x200] sm:$0xff]  ;;  %v631_v15 = vld [vmem:[#allocation3 + $0x7a8] sm:$0xff]  ;;  %v351_v62 = vsub.s32 2, %v3859_v57 }
  0x43   : > { %673 = vmatprep.subr.mxu0 %v478_v5  ;;  %818 = vmatprep.subr.mxu1 %v632_v13  ;;  %v625_v16 = vld [vmem:[#allocation3 + $0x778] sm:$0xff]  ;;  %v624_v18 = vld [vmem:[#allocation3 + $0x770] sm:$0xff]  ;;  %v443_v19 = vld [vmem:[#allocation3 + $0x1c8] sm:$0xff] }
  0x44   : > { %674 = vmatpush1.msra.mxu0 %v477_v6  ;;  %v449_v17 = vld [vmem:[#allocation3 + $0x1f8] sm:$0xff]  ;;  %819 = vmatpush1.msra.mxu1 %v631_v15  ;;  %v618_v20 = vld [vmem:[#allocation3 + $0x740] sm:$0xff]  ;;  %v611_v23 = vld [vmem:[#allocation3 + $0x708] sm:$0xff] }
  0x45   : > { %675 = vmatprep.subr.mxu0 %v471_v7  ;;  %820 = vmatprep.subr.mxu1 %v625_v16  ;;  %v617_v21 = vld [vmem:[#allocation3 + $0x738] sm:$0xff]  ;;  %v442_v22 = vld [vmem:[#allocation3 + $0x1c0] sm:$0xff]  ;;  %v436_v24 = vld [vmem:[#allocation3 + $0x190] sm:$0xff] }
  0x46   : > { %676 = vmatpush1.msra.mxu0 %v470_v8  ;;  %821 = vmatpush1.msra.mxu1 %v624_v18  ;;  %v610_v25 = vld [vmem:[#allocation3 + $0x700] sm:$0xff]  ;;  %v435_v26 = vld [vmem:[#allocation3 + $0x188] sm:$0xff]  ;;  %v429_v29 = vld [vmem:[#allocation3 + $0x158] sm:$0xff] }
  0x47   : > { %677 = vmatprep.subr.mxu0 %v464_v9  ;;  %822 = vmatprep.subr.mxu1 %v618_v20  ;;  %v494_v27 = vld [vmem:[#allocation3 + $0x360] sm:$0xff]  ;;  %v428_v31 = vld [vmem:[#allocation3 + $0x150] sm:$0xff]  ;;  %v421_v33 = vld [vmem:[#allocation3 + $0x118] sm:$0xff] }
  0x48   : > { %678 = vmatpush1.msra.mxu0 %v463_v10  ;;  %823 = vmatpush1.msra.mxu1 %v617_v21  ;;  %v303_v28 = vld [vmem:[#allocation5] sm:$0x7]  ;;  %v415_v34 = vld [vmem:[#allocation3 + $0xe8] sm:$0xff]  ;;  %v408_v36 = vld [vmem:[#allocation3 + $0xb0] sm:$0xff] }
  0x49   : > { %679 = vmatprep.subr.mxu0 %v457_v11  ;;  %824 = vmatprep.subr.mxu1 %v611_v23  ;;  %v3265_v30 = vmul.f32 -1.442695, %v303_v28  ;;  %v422_v32 = vld [vmem:[#allocation3 + $0x120] sm:$0xff]  ;;  %v407_v37 = vld [vmem:[#allocation3 + $0xa8] sm:$0xff]  ;;  %v401_v38 = vld [vmem:[#allocation3 + $0x78] sm:$0xff] }
  0x4a   : > { %680 = vmatpush1.msra.mxu0 %v456_v12  ;;  %825 = vmatpush1.msra.mxu1 %v610_v25  ;;  %v414_v35 = vld [vmem:[#allocation3 + $0xe0] sm:$0xff]  ;;  %v400_v39 = vld [vmem:[#allocation3 + $0x70] sm:$0xff]  ;;  %v393_v41 = vld [vmem:[#allocation3 + $0x38] sm:$0xff]  ;;  %v343_v25 = vsub.s32 0, %v3859_v57 }
  0x4b   : > { %681 = vmatprep.subr.mxu0 %v450_v14  ;;  %919 = vmatprep.subr.mxu1 %v494_v27  ;;  %3607 = vpow2.f32 %v3265_v30  ;;  %v394_v40 = vld [vmem:[#allocation3 + $0x40] sm:$0xff]  ;;  %v387_v42 = vld [vmem:[#allocation3 + $0x8] sm:$0xff]  ;;  %v604_v44 = vld [vmem:[#allocation3 + $0x6d0] sm:$0xff] }
  0x4c   : > { %682 = vmatpush1.msra.mxu0 %v449_v17  ;;  %v386_v43 = vld [vmem:[#allocation3] sm:$0xff]  ;;  %v603_v46 = vld [vmem:[#allocation3 + $0x6c8] sm:$0xff]  ;;  %v597_v47 = vld [vmem:[#allocation3 + $0x698] sm:$0xff] }
  0x4d   : > { %683 = vmatprep.subr.mxu0 %v443_v19  ;;  %v596_v49 = vld [vmem:[#allocation3 + $0x690] sm:$0xff]  ;;  %v590_v50 = vld [vmem:[#allocation3 + $0x660] sm:$0xff]  ;;  %v589_v51 = vld [vmem:[#allocation3 + $0x658] sm:$0xff] }
  0x4e   : > { %684 = vmatpush1.msra.mxu0 %v442_v22  ;;  %v583_v53 = vld [vmem:[#allocation3 + $0x628] sm:$0xff]  ;;  %v582_v54 = vld [vmem:[#allocation3 + $0x620] sm:$0xff]  ;;  %v576_v55 = vld [vmem:[#allocation3 + $0x5f0] sm:$0xff]  ;;  %v347_v22 = vsub.s32 1, %v3859_v57 }
  0x4f   : > { %685 = vmatprep.subr.mxu0 %v436_v24  ;;  %v575_v56 = vld [vmem:[#allocation3 + $0x5e8] sm:$0xff]  ;;  %v569_v58 = vld [vmem:[#allocation3 + $0x5b8] sm:$0xff]  ;;  %v568_v59 = vld [vmem:[#allocation3 + $0x5b0] sm:$0xff] }
  0x50   : > { %686 = vmatpush1.msra.mxu0 %v435_v26  ;;  %v562_v60 = vld [vmem:[#allocation3 + $0x580] sm:$0xff]  ;;  %v561_v61 = vld [vmem:[#allocation3 + $0x578] sm:$0xff]  ;;  %v555_v63 = vld [vmem:[#allocation3 + $0x548] sm:$0xff] }
  0x51   : > { %687 = vmatprep.subr.mxu0 %v429_v29  ;;  %v554_v0 = vld [vmem:[#allocation3 + $0x540] sm:$0xff]  ;;  %v548_v1 = vld [vmem:[#allocation3 + $0x510] sm:$0xff]  ;;  %v547_v5 = vld [vmem:[#allocation3 + $0x508] sm:$0xff] }
  0x52   : > { %688 = vmatpush1.msra.mxu0 %v428_v31  ;;  %v312_v3 = vld [vmem:[#allocation7 + $0x10] sm:$0xff]  ;;  %v534_v11 = vld [vmem:[#allocation3 + $0x4a0] sm:$0xff]  ;;  %v487_v12 = vld [vmem:[#allocation3 + $0x328] sm:$0xff] }
  0x53   : > { %689 = vmatprep.subr.mxu0 %v422_v32  ;;  %v541_v7 = vld [vmem:[#allocation3 + $0x4d8] sm:$0xff]  ;;  %v540_v8 = vld [vmem:[#allocation3 + $0x4d0] sm:$0xff]  ;;  %v486_v14 = vld [vmem:[#allocation3 + $0x320] sm:$0xff] }
  0x54   : > { %690 = vmatpush1.msra.mxu0 %v421_v33  ;;  %v493_v10 = vld [vmem:[#allocation3 + $0x358] sm:$0xff]  ;;  %v527_v15 = vld [vmem:[#allocation3 + $0x468] sm:$0xff]  ;;  %v480_v16 = vld [vmem:[#allocation3 + $0x2f0] sm:$0xff] }
  0x55   : > { %691 = vmatprep.subr.mxu0 %v415_v34  ;;  %v533_v13 = vld [vmem:[#allocation3 + $0x498] sm:$0xff]  ;;  %v526_v17 = vld [vmem:[#allocation3 + $0x460] sm:$0xff]  ;;  %v479_v18 = vld [vmem:[#allocation3 + $0x2e8] sm:$0xff] }
  0x56   : > { %692 = vmatpush1.msra.mxu0 %v414_v35  ;;  %v520_v19 = vld [vmem:[#allocation3 + $0x430] sm:$0xff]  ;;  %v473_v20 = vld [vmem:[#allocation3 + $0x2b8] sm:$0xff]  ;;  %v519_v21 = vld [vmem:[#allocation3 + $0x428] sm:$0xff] }
  0x57   : > { %693 = vmatprep.subr.mxu0 %v408_v36  ;;  %v472_v23 = vld [vmem:[#allocation3 + $0x2b0] sm:$0xff]  ;;  %v513_v24 = vld [vmem:[#allocation3 + $0x3f8] sm:$0xff]  ;;  %v466_v26 = vld [vmem:[#allocation3 + $0x280] sm:$0xff] }
  0x58   : > { %694 = vmatpush1.msra.mxu0 %v407_v37  ;;  %v3608_v45 = vpop.eup %3607  ;;  %v512_v27 = vld [vmem:[#allocation3 + $0x3f0] sm:$0xff]  ;;  %v465_v28 = vld [vmem:[#allocation3 + $0x278] sm:$0xff]  ;;  %v506_v29 = vld [vmem:[#allocation3 + $0x3c0] sm:$0xff] }
  0x59   : > { %695 = vmatprep.subr.mxu0 %v401_v38  ;;  %v307_v48 = vadd.f32 1.0, %v3608_v45  ;;  %v459_v30 = vld [vmem:[#allocation3 + $0x248] sm:$0xff]  ;;  %v505_v31 = vld [vmem:[#allocation3 + $0x3b8] sm:$0xff]  ;;  %v458_v34 = vld [vmem:[#allocation3 + $0x240] sm:$0xff] }
  0x5a   : > { %696 = vmatpush1.msra.mxu0 %v400_v39  ;;  %v315_v32 = vld [vmem:[#allocation7 + $0x28] sm:$0xff]  ;;  %v310_v39 = vld [vmem:[#allocation7] sm:$0xff] }
  0x5b   : > { %697 = vmatprep.subr.mxu0 %v394_v40  ;;  %3609 = vrcp.f32 %v307_v48  ;;  %v311_v35 = vld [vmem:[#allocation7 + $0x8] sm:$0xff]  ;;  %v318_v45 = vld [vmem:[#allocation7 + $0x40] sm:$0xff] }
  0x5c   : > { %698 = vmatpush1.msra.mxu0 %v393_v41  ;;  %v452_v37 = vld [vmem:[#allocation3 + $0x210] sm:$0xff]  ;;  %v499_v38 = vld [vmem:[#allocation3 + $0x388] sm:$0xff] }
  0x5d   : > { %699 = vmatprep.subr.mxu0 %v387_v42  ;;  %v451_v40 = vld [vmem:[#allocation3 + $0x208] sm:$0xff]  ;;  %v498_v42 = vld [vmem:[#allocation3 + $0x380] sm:$0xff] }
  0x5e   : > { %700 = vmatpush1.msra.mxu0 %v386_v43  ;;  %v445_v43 = vld [vmem:[#allocation3 + $0x1d8] sm:$0xff]  ;;  %v314_v48 = vld [vmem:[#allocation7 + $0x20] sm:$0xff] }
  0x5f   : > { %701 = vmatprep.subr.mxu0 %v604_v44 }
  0x60   : > { %702 = vmatpush2.msra.mxu0 %v603_v46  ;;  %v444_v46 = vld [vmem:[#allocation3 + $0x1d0] sm:$0xff] }
  0x61   : > { %703 = vmatprep.subr.mxu0 %v597_v47 }
  0x62   : > { %704 = vmatpush2.msra.mxu0 %v596_v49  ;;  %v438_v49 = vld [vmem:[#allocation3 + $0x1a0] sm:$0xff] }
  0x63   : > { %705 = vmatprep.subr.mxu0 %v590_v50  ;;  %v313_v50 = vld [vmem:[#allocation7 + $0x18] sm:$0xff] }
  0x64   : > { %706 = vmatpush2.msra.mxu0 %v589_v51  ;;  %v437_v51 = vld [vmem:[#allocation3 + $0x198] sm:$0xff] }
  0x65   : > { %707 = vmatprep.subr.mxu0 %v583_v53  ;;  %v431_v53 = vld [vmem:[#allocation3 + $0x168] sm:$0xff] }
  0x66   : > { %708 = vmatpush2.msra.mxu0 %v582_v54 }
  0x67   : > { %709 = vmatprep.subr.mxu0 %v576_v55  ;;  %v321_v55 = vld [vmem:[#allocation7 + $0x58] sm:$0xff] }
  0x68   : > { %710 = vmatpush2.msra.mxu0 %v575_v56  ;;  %v3610_v2 = vpop.eup %3609  ;;  %v430_v56 = vld [vmem:[#allocation3 + $0x160] sm:$0xff] }
  0x69   : > { %711 = vmatprep.subr.mxu0 %v569_v58  ;;  %v3862_v6 = vrot.slane %v3610_v2, %v351_v62  ;;  %v3871_v33 = vrot.slane %v3610_v2, %v347_v22  ;;  %v3873_v36 = vrot.slane %v3610_v2, %v343_v25  ;;  %v317_v58 = vld [vmem:[#allocation7 + $0x38] sm:$0xff]  ;;  %v416_v2 = vld [vmem:[#allocation3 + $0xf0] sm:$0xff] }
  0x6a   : > { %712 = vmatpush2.msra.mxu0 %v568_v59  ;;  %v424_v59 = vld [vmem:[#allocation3 + $0x130] sm:$0xff]  ;;  %v389_v22 = vld [vmem:[#allocation3 + $0x18] sm:$0xff] }
  0x6b   : > { %713 = vmatprep.subr.mxu0 %v562_v60  ;;  %v3865_v9 = vmul.f32 %v3862_v6, %v312_v3  ;;  %v3876_v41 = vmul.f32 %v3862_v6, %v315_v32  ;;  %v3880_v44 = vmul.f32 %v3871_v33, %v311_v35  ;;  %v3883_v47 = vmul.f32 %v3873_v36, %v310_v39  ;;  %v316_v60 = vld [vmem:[#allocation7 + $0x30] sm:$0xff]  ;;  %v599_v32 = vld [vmem:[#allocation3 + $0x6a8] sm:$0xff]  ;;  %v598_v35 = vld [vmem:[#allocation3 + $0x6a0] sm:$0xff] }
  0x6c   : > { %714 = vmatpush2.msra.mxu0 %v561_v61  ;;  %v3888_v52 = vmul.f32 %v3862_v6, %v318_v45  ;;  %v3892_v54 = vmul.f32 %v3871_v33, %v314_v48  ;;  %v3896_v57 = vmul.f32 %v3873_v36, %v313_v50  ;;  %v423_v61 = vld [vmem:[#allocation3 + $0x128] sm:$0xff]  ;;  %v3902_v62 = vmul.f32 %v3862_v6, %v321_v55  ;;  %v388_v25 = vld [vmem:[#allocation3 + $0x10] sm:$0xff]  ;;  %v333_v39 = vld [vmem:[#allocation7 + $0xb8] sm:$0xff] }
  0x6d   : > { %715 = vmatprep.subr.mxu0 %v555_v63  ;;  %3266 = vmatmul.mubr.msk.f32.vlgmr.msra.gmra.mxu1 %vm638_vm0, %v3865_v9  ;;  %v417_v63 = vld [vmem:[#allocation3 + $0xf8] sm:$0xff]  ;;  %v3910_v3 = vmul.f32 %v3873_v36, %v316_v60  ;;  %v634_v45 = vld [vmem:[#allocation3 + $0x7c0] sm:$0xff]  ;;  %v584_v48 = vld [vmem:[#allocation3 + $0x630] sm:$0xff] }
  0x6e   : > { %716 = vmatpush2.msra.mxu0 %v554_v0  ;;  %920 = vmatpush1.msra.mxu1 %v493_v10  ;;  %v3906_v0 = vmul.f32 %v3871_v33, %v317_v58  ;;  %v409_v10 = vld [vmem:[#allocation3 + $0xb8] sm:$0xff]  ;;  %v571_v60 = vld [vmem:[#allocation3 + $0x5c8] sm:$0xff] }
  0x6f   : > { %717 = vmatprep.subr.mxu0 %v548_v1  ;;  %921 = vmatprep.subr.mxu1 %v487_v12  ;;  %v324_v1 = vld [vmem:[#allocation7 + $0x70] sm:$0xff]  ;;  %v403_v12 = vld [vmem:[#allocation3 + $0x88] sm:$0xff] }
  0x70   : > { %718 = vmatpush2.msra.mxu0 %v547_v5  ;;  %922 = vmatpush1.msra.mxu1 %v486_v14  ;;  %v320_v5 = vld [vmem:[#allocation7 + $0x50] sm:$0xff]  ;;  %v327_v14 = vld [vmem:[#allocation7 + $0x88] sm:$0xff] }
  0x71   : > { %719 = vmatprep.subr.mxu0 %v541_v7  ;;  %923 = vmatprep.subr.mxu1 %v480_v16  ;;  %v410_v7 = vld [vmem:[#allocation3 + $0xc0] sm:$0xff]  ;;  %v633_v50 = vld [vmem:[#allocation3 + $0x7b8] sm:$0xff] }
  0x72   : > { %720 = vmatpush2.msra.mxu0 %v540_v8  ;;  %924 = vmatpush1.msra.mxu1 %v479_v18  ;;  %v319_v8 = vld [vmem:[#allocation7 + $0x48] sm:$0xff]  ;;  %v336_v55 = vld [vmem:[#allocation7 + $0xd0] sm:$0xff] }
  0x73   : > { %721 = vmatprep.subr.mxu0 %v534_v11  ;;  %925 = vmatprep.subr.mxu1 %v473_v20  ;;  %v3916_v11 = vmul.f32 %v3862_v6, %v324_v1  ;;  %v3924_v16 = vmul.f32 %v3873_v36, %v319_v8  ;;  %v396_v18 = vld [vmem:[#allocation3 + $0x50] sm:$0xff]  ;;  %v395_v20 = vld [vmem:[#allocation3 + $0x48] sm:$0xff]  ;;  %v3972_v1 = vmul.f32 %v3862_v6, %v336_v55 }
  0x74   : > { %722 = vmatpush2.msra.mxu0 %v533_v13  ;;  %926 = vmatpush1.msra.mxu1 %v472_v23  ;;  %v3920_v13 = vmul.f32 %v3871_v33, %v320_v5  ;;  %v563_v8 = vld [vmem:[#allocation3 + $0x588] sm:$0xff]  ;;  %v508_v55 = vld [vmem:[#allocation3 + $0x3d0] sm:$0xff] }
  0x75   : > { %723 = vmatprep.subr.mxu0 %v527_v15  ;;  %927 = vmatprep.subr.mxu1 %v466_v26  ;;  %v402_v15 = vld [vmem:[#allocation3 + $0x80] sm:$0xff] }
  0x76   : > { %724 = vmatpush2.msra.mxu0 %v526_v17  ;;  %928 = vmatpush1.msra.mxu1 %v465_v28  ;;  %v323_v17 = vld [vmem:[#allocation7 + $0x68] sm:$0xff]  ;;  %v606_v28 = vld [vmem:[#allocation3 + $0x6e0] sm:$0xff] }
  0x77   : > { %725 = vmatprep.subr.mxu0 %v520_v19  ;;  %929 = vmatprep.subr.mxu1 %v459_v30  ;;  %v322_v19 = vld [vmem:[#allocation7 + $0x60] sm:$0xff]  ;;  %v3934_v23 = vmul.f32 %v3871_v33, %v323_v17  ;;  %v605_v30 = vld [vmem:[#allocation3 + $0x6d8] sm:$0xff] }
  0x78   : > { %726 = vmatpush2.msra.mxu0 %v519_v21  ;;  %930 = vmatpush1.msra.mxu1 %v458_v34  ;;  %v3930_v21 = vmul.f32 %v3862_v6, %v327_v14  ;;  %v3938_v26 = vmul.f32 %v3873_v36, %v322_v19  ;;  %v557_v14 = vld [vmem:[#allocation3 + $0x558] sm:$0xff]  ;;  %v550_v19 = vld [vmem:[#allocation3 + $0x520] sm:$0xff] }
  0x79   : > { %727 = vmatprep.subr.mxu0 %v513_v24  ;;  %864 = vmatprep.mubr.f32.mxu1 %v3732_v4  ;;  %v330_v24 = vld [vmem:[#allocation7 + $0xa0] sm:$0xff] }
  0x7a   : > { %728 = vmatpush2.msra.mxu0 %v512_v27  ;;  %931 = vmatprep.subr.mxu1 %v452_v37  ;;  %v326_v27 = vld [vmem:[#allocation7 + $0x80] sm:$0xff] }
  0x7b   : > { %729 = vmatprep.subr.mxu0 %v506_v29  ;;  %932 = vmatpush1.msra.mxu1 %v451_v40  ;;  %v325_v29 = vld [vmem:[#allocation7 + $0x78] sm:$0xff]  ;;  %v3948_v34 = vmul.f32 %v3871_v33, %v326_v27  ;;  %v591_v40 = vld [vmem:[#allocation3 + $0x668] sm:$0xff] }
  0x7c   : > { %730 = vmatpush2.msra.mxu0 %v505_v31  ;;  %933 = vmatprep.subr.mxu1 %v445_v43  ;;  %v3944_v31 = vmul.f32 %v3862_v6, %v330_v24  ;;  %v3952_v37 = vmul.f32 %v3873_v36, %v325_v29  ;;  %v585_v43 = vld [vmem:[#allocation3 + $0x638] sm:$0xff]  ;;  %v543_v24 = vld [vmem:[#allocation3 + $0x4e8] sm:$0xff] }
  0x7d   : > { %731 = vmatprep.subr.mxu0 %v499_v38  ;;  %3267 = vmatmul.mubr.msk.f32.gmra.mxu1 %vm638_vm0, %v3876_v41  ;;  %v592_v38 = vld [vmem:[#allocation3 + $0x670] sm:$0xff]  ;;  %v338_v27 = vld [vmem:[#allocation7 + $0xe0] sm:$0xff]  ;;  %v337_v29 = vld [vmem:[#allocation7 + $0xd8] sm:$0xff] }
  0x7e   : > { %732 = vmatpush2.msra.mxu0 %v498_v42  ;;  %934 = vmatpush1.msra.mxu1 %v444_v46  ;;  %v329_v42 = vld [vmem:[#allocation7 + $0x98] sm:$0xff]  ;;  %v328_v46 = vld [vmem:[#allocation7 + $0x90] sm:$0xff] }
  0x7f   : > { %733 = vmatprep.mubr.f32.mxu0 %v3880_v44  ;;  %935 = vmatprep.subr.mxu1 %v438_v49  ;;  %v3960_v49 = vmul.f32 %v3862_v6, %v333_v39  ;;  %v3967_v58 = vmul.f32 %v3873_v36, %v328_v46  ;;  %v529_v39 = vld [vmem:[#allocation3 + $0x478] sm:$0xff] }
  0x80   : > { %734 = vmatmul.mubr.f32.vlgmr.msra.gmra.mxu0 %v3883_v47  ;;  %936 = vmatpush1.msra.mxu1 %v437_v51  ;;  %v578_v51 = vld [vmem:[#allocation3 + $0x600] sm:$0xff]  ;;  %v521_v46 = vld [vmem:[#allocation3 + $0x438] sm:$0xff] }
  0x81   : > { %870 = vmatprep.mubr.f32.mxu1 %v3732_v4  ;;  %937 = vmatprep.subr.mxu1 %v431_v53  ;;  %v3964_v53 = vmul.f32 %v3871_v33, %v329_v42  ;;  %v528_v42 = vld [vmem:[#allocation3 + $0x470] sm:$0xff] }
  0x82   : > { %3268 = vmatmul.mubr.msk.f32.gmra.mxu1 %vm638_vm0, %v3888_v52  ;;  %739 = vmatprep.mubr.f32.mxu0 %v3892_v54 }
  0x83   : > { %938 = vmatpush1.msra.mxu1 %v430_v56  ;;  %876 = vmatprep.mubr.f32.mxu1 %v3732_v4  ;;  %v577_v56 = vld [vmem:[#allocation3 + $0x5f8] sm:$0xff] }
  0x84   : > { %939 = vmatprep.subr.mxu1 %v424_v59  ;;  %740 = vmatmul.mubr.f32.gmra.mxu0 %v3896_v57  ;;  %v332_v59 = vld [vmem:[#allocation7 + $0xb0] sm:$0xff] }
  0x85   : > { %940 = vmatpush1.msra.mxu1 %v423_v61  ;;  %745 = vmatprep.mubr.f32.mxu0 %v3906_v0  ;;  %v331_v61 = vld [vmem:[#allocation7 + $0xa8] sm:$0xff]  ;;  %v3976_v5 = vmul.f32 %v3871_v33, %v332_v59  ;;  %v501_v59 = vld [vmem:[#allocation3 + $0x398] sm:$0xff] }
  0x86   : > { %941 = vmatprep.subr.mxu1 %v417_v63  ;;  %3269 = vmatmul.mubr.msk.f32.gmra.mxu1 %vm638_vm0, %v3902_v62  ;;  %v570_v63 = vld [vmem:[#allocation3 + $0x5c0] sm:$0xff] }
  0x87   : > { %942 = vmatpush1.msra.mxu1 %v416_v2  ;;  %882 = vmatprep.mubr.f32.mxu1 %v3732_v4  ;;  %v564_v2 = vld [vmem:[#allocation3 + $0x590] sm:$0xff] }
  0x88   : > { %943 = vmatprep.subr.mxu1 %v410_v7  ;;  %746 = vmatmul.mubr.f32.gmra.mxu0 %v3910_v3  ;;  %v339_v7 = vld [vmem:[#allocation7 + $0xe8] sm:$0xff] }
  0x89   : > { %944 = vmatpush1.msra.mxu1 %v409_v10  ;;  %751 = vmatprep.mubr.f32.mxu0 %v3920_v13  ;;  %v3980_v10 = vmul.f32 %v3873_v36, %v331_v61  ;;  %v3986_v17 = vmul.f32 %v3862_v6, %v339_v7  ;;  %v636_v61 = vld [vmem:[#allocation3 + $0x7d0] sm:$0xff]  ;;  %v489_v7 = vld [vmem:[#allocation3 + $0x338] sm:$0xff] }
  0x8a   : > { %945 = vmatprep.subr.mxu1 %v403_v12  ;;  %3270 = vmatmul.mubr.msk.f32.gmra.mxu1 %vm638_vm0, %v3916_v11  ;;  %v335_v12 = vld [vmem:[#allocation7 + $0xc8] sm:$0xff] }
  0x8b   : > { %946 = vmatpush1.msra.mxu1 %v402_v15  ;;  %888 = vmatprep.mubr.f32.mxu1 %v3732_v4  ;;  %v556_v15 = vld [vmem:[#allocation3 + $0x550] sm:$0xff] }
  0x8c   : > { %947 = vmatprep.subr.mxu1 %v396_v18  ;;  %752 = vmatmul.mubr.f32.gmra.mxu0 %v3924_v16  ;;  %v334_v18 = vld [vmem:[#allocation7 + $0xc0] sm:$0xff] }
  0x8d   : > { %948 = vmatpush1.msra.mxu1 %v395_v20  ;;  %757 = vmatprep.mubr.f32.mxu0 %v3934_v23  ;;  %v3990_v20 = vmul.f32 %v3871_v33, %v335_v12  ;;  %v3995_v6 = vmul.f32 %v3873_v36, %v334_v18  ;;  %v482_v12 = vld [vmem:[#allocation3 + $0x300] sm:$0xff] }
  0x8e   : > { %949 = vmatprep.subr.mxu1 %v389_v22  ;;  %3271 = vmatmul.mubr.msk.f32.gmra.mxu1 %vm638_vm0, %v3930_v21  ;;  %v549_v22 = vld [vmem:[#allocation3 + $0x518] sm:$0xff]  ;;  %v474_v18 = vld [vmem:[#allocation3 + $0x2c0] sm:$0xff] }
  0x8f   : > { %950 = vmatpush1.msra.mxu1 %v388_v25  ;;  %894 = vmatprep.mubr.f32.mxu1 %v3732_v4  ;;  %v627_v25 = vld [vmem:[#allocation3 + $0x788] sm:$0xff] }
  0x90   : > { %951 = vmatprep.subr.mxu1 %v606_v28  ;;  %758 = vmatmul.mubr.f32.gmra.mxu0 %v3938_v26  ;;  %v542_v28 = vld [vmem:[#allocation3 + $0x4e0] sm:$0xff] }
  0x91   : > { %952 = vmatpush2.msra.mxu1 %v605_v30  ;;  %763 = vmatprep.mubr.f32.mxu0 %v3948_v34  ;;  %v536_v30 = vld [vmem:[#allocation3 + $0x4b0] sm:$0xff] }
  0x92   : > { %953 = vmatprep.subr.mxu1 %v599_v32  ;;  %3272 = vmatmul.mubr.msk.f32.gmra.mxu1 %vm638_vm0, %v3944_v31  ;;  %v626_v32 = vld [vmem:[#allocation3 + $0x780] sm:$0xff] }
  0x93   : > { %954 = vmatpush2.msra.mxu1 %v598_v35  ;;  %900 = vmatprep.mubr.f32.mxu1 %v3732_v4  ;;  %v535_v35 = vld [vmem:[#allocation3 + $0x4a8] sm:$0xff] }
  0x94   : > { %955 = vmatprep.subr.mxu1 %v592_v38  ;;  %764 = vmatmul.mubr.f32.gmra.mxu0 %v3952_v37  ;;  %v4001_v38 = vmul.f32 %v3871_v33, %v338_v27  ;;  %v619_v33 = vld [vmem:[#allocation3 + $0x748] sm:$0xff]  ;;  %v454_v27 = vld [vmem:[#allocation3 + $0x220] sm:$0xff] }
  0x95   : > { %956 = vmatpush2.msra.mxu1 %v591_v40  ;;  %1068 = vmatprep.subr.mxu0 %v634_v45  ;;  %v4005_v40 = vmul.f32 %v3873_v36, %v337_v29  ;;  %v620_v45 = vld [vmem:[#allocation3 + $0x750] sm:$0xff]  ;;  %v514_v36 = vld [vmem:[#allocation3 + $0x400] sm:$0xff]  ;;  %v447_v29 = vld [vmem:[#allocation3 + $0x1e8] sm:$0xff] }
  0x96   : > { %957 = vmatprep.subr.mxu1 %v585_v43  ;;  %1069 = vmatpush1.msra.mxu0 %v633_v50  ;;  %v522_v43 = vld [vmem:[#allocation3 + $0x440] sm:$0xff]  ;;  %v613_v50 = vld [vmem:[#allocation3 + $0x718] sm:$0xff] }
  0x97   : > { %958 = vmatpush2.msra.mxu1 %v584_v48  ;;  %769 = vmatprep.mubr.f32.mxu0 %v3964_v53  ;;  %v515_v48 = vld [vmem:[#allocation3 + $0x408] sm:$0xff] }
  0x98   : > { %959 = vmatprep.subr.mxu1 %v578_v51  ;;  %3273 = vmatmul.mubr.msk.f32.gmra.mxu1 %vm638_vm0, %v3960_v49  ;;  %v612_v51 = vld [vmem:[#allocation3 + $0x710] sm:$0xff] }
  0x99   : > { %960 = vmatpush2.msra.mxu1 %v577_v56  ;;  %770 = vmatmul.mubr.f32.gmra.mxu0 %v3967_v58  ;;  %v507_v56 = vld [vmem:[#allocation3 + $0x3c8] sm:$0xff] }
  0x9a   : > { %961 = vmatprep.subr.mxu1 %v571_v60  ;;  %906 = vmatprep.mubr.f32.mxu1 %v3732_v4  ;;  %v500_v60 = vld [vmem:[#allocation3 + $0x390] sm:$0xff] }
  0x9b   : > { %962 = vmatpush2.msra.mxu1 %v570_v63  ;;  %775 = vmatprep.mubr.f32.mxu0 %v3976_v5  ;;  %v496_v63 = vld [vmem:[#allocation3 + $0x370] sm:$0xff] }
  0x9c   : > { %963 = vmatprep.subr.mxu1 %v564_v2  ;;  %3274 = vmatmul.mubr.msk.f32.gmra.mxu1 %vm638_vm0, %v3972_v1  ;;  %v495_v2 = vld [vmem:[#allocation3 + $0x368] sm:$0xff] }
  0x9d   : > { %964 = vmatpush2.msra.mxu1 %v563_v8  ;;  %776 = vmatmul.mubr.f32.gmra.mxu0 %v3980_v10  ;;  %v488_v8 = vld [vmem:[#allocation3 + $0x330] sm:$0xff] }
  0x9e   : > { %965 = vmatprep.subr.mxu1 %v557_v14  ;;  %912 = vmatprep.mubr.f32.mxu1 %v3732_v4  ;;  %v481_v14 = vld [vmem:[#allocation3 + $0x2f8] sm:$0xff] }
  0x9f   : > { %966 = vmatpush2.msra.mxu1 %v556_v15  ;;  %781 = vmatprep.mubr.f32.mxu0 %v3990_v20  ;;  %v475_v15 = vld [vmem:[#allocation3 + $0x2c8] sm:$0xff] }
  0xa0   : > { %967 = vmatprep.subr.mxu1 %v550_v19  ;;  %3275 = vmatmul.mubr.msk.f32.gmra.mxu1 %vm638_vm0, %v3986_v17  ;;  %v468_v19 = vld [vmem:[#allocation3 + $0x290] sm:$0xff] }
  0xa1   : > { %968 = vmatpush2.msra.mxu1 %v549_v22  ;;  %1070 = vmatprep.subr.mxu0 %v627_v25  ;;  %v467_v22 = vld [vmem:[#allocation3 + $0x288] sm:$0xff]  ;;  %v460_v25 = vld [vmem:[#allocation3 + $0x250] sm:$0xff] }
  0xa2   : > { %969 = vmatprep.subr.mxu1 %v543_v24  ;;  %782 = vmatmul.mubr.f32.gmra.mxu0 %v3995_v6  ;;  %v461_v24 = vld [vmem:[#allocation3 + $0x258] sm:$0xff] }
  0xa3   : > { %970 = vmatpush2.msra.mxu1 %v542_v28  ;;  %1071 = vmatpush1.msra.mxu0 %v626_v32  ;;  %v453_v28 = vld [vmem:[#allocation3 + $0x218] sm:$0xff]  ;;  %v440_v32 = vld [vmem:[#allocation3 + $0x1b0] sm:$0xff] }
  0xa4   : > { %971 = vmatprep.subr.mxu1 %v536_v30  ;;  %983 = vmatprep.mubr.f32.mxu1 %v3880_v44  ;;  %v446_v30 = vld [vmem:[#allocation3 + $0x1e0] sm:$0xff] }
  0xa5   : > { %972 = vmatpush2.msra.mxu1 %v535_v35  ;;  %787 = vmatprep.mubr.f32.mxu0 %v4001_v38  ;;  %v439_v35 = vld [vmem:[#allocation3 + $0x1a8] sm:$0xff] }
  0xa6   : > { %973 = vmatprep.subr.mxu1 %v529_v39  ;;  %788 = vmatmul.mubr.f32.gmra.mxu0 %v4005_v40  ;;  %v433_v39 = vld [vmem:[#allocation3 + $0x178] sm:$0xff] }
  0xa7   : > { %974 = vmatpush2.msra.mxu1 %v528_v42  ;;  %1072 = vmatprep.subr.mxu0 %v620_v45  ;;  %v432_v42 = vld [vmem:[#allocation3 + $0x170] sm:$0xff]  ;;  %v426_v45 = vld [vmem:[#allocation3 + $0x140] sm:$0xff] }
  0xa8   : > { %975 = vmatprep.subr.mxu1 %v522_v43  ;;  %1073 = vmatpush1.msra.mxu0 %v619_v33  ;;  %v635_v43 = vld [vmem:[#allocation3 + $0x7c8] sm:$0xff] }
  0xa9   : > { %976 = vmatpush2.msra.mxu1 %v521_v46  ;;  %1074 = vmatprep.subr.mxu0 %v613_v50  ;;  %v425_v46 = vld [vmem:[#allocation3 + $0x138] sm:$0xff]  ;;  %v419_v33 = vld [vmem:[#allocation3 + $0x108] sm:$0xff]  ;;  %v412_v50 = vld [vmem:[#allocation3 + $0xd0] sm:$0xff] }
  0xaa   : > { %977 = vmatprep.subr.mxu1 %v515_v48  ;;  %1075 = vmatpush1.msra.mxu0 %v612_v51  ;;  %v418_v48 = vld [vmem:[#allocation3 + $0x100] sm:$0xff]  ;;  %v405_v51 = vld [vmem:[#allocation3 + $0x98] sm:$0xff] }
  0xab   : > { %978 = vmatpush2.msra.mxu1 %v514_v36  ;;  %1108 = vmatprep.mubr.f32.mxu0 %v3732_v4  ;;  %v411_v36 = vld [vmem:[#allocation3 + $0xc8] sm:$0xff] }
  0xac   : > { %979 = vmatprep.subr.mxu1 %v508_v55  ;;  %3276 = vmatmul.mubr.msk.f32.vlgmr.msra.gmra.mxu0 %vm638_vm0, %v3865_v9  ;;  %v404_v55 = vld [vmem:[#allocation3 + $0x90] sm:$0xff] }
  0xad   : > { %980 = vmatpush2.msra.mxu1 %v507_v56  ;;  %1114 = vmatprep.mubr.f32.mxu0 %v3732_v4  ;;  %v398_v56 = vld [vmem:[#allocation3 + $0x60] sm:$0xff] }
  0xae   : > { %981 = vmatprep.subr.mxu1 %v501_v59  ;;  %1318 = vmatprep.subr.mxu0 %v636_v61  ;;  %v397_v59 = vld [vmem:[#allocation3 + $0x58] sm:$0xff]  ;;  %v390_v61 = vld [vmem:[#allocation3 + $0x20] sm:$0xff] }
  0xaf   : > { %982 = vmatpush2.msra.mxu1 %v500_v60  ;;  %1319 = vmatpush1.msra.mxu0 %v635_v43  ;;  %v391_v60 = vld [vmem:[#allocation3 + $0x28] sm:$0xff] }
  0xb0   : > { %984 = vmatmul.mubr.f32.vlgmr.msra.gmra.mxu1 %v3883_v47  ;;  %1169 = vmatprep.subr.mxu1 %v496_v63  ;;  %v629_v63 = vld [vmem:[#allocation3 + $0x798] sm:$0xff]  ;;  %v559_v43 = vld [vmem:[#allocation3 + $0x568] sm:$0xff] }
  0xb1   : > { %1170 = vmatpush1.msra.mxu1 %v495_v2  ;;  %989 = vmatprep.mubr.f32.mxu1 %v3892_v54  ;;  %v608_v2 = vld [vmem:[#allocation3 + $0x6f0] sm:$0xff] }
  0xb2   : > { %1171 = vmatprep.subr.mxu1 %v489_v7  ;;  %3277 = vmatmul.mubr.msk.f32.gmra.mxu0 %vm638_vm0, %v3876_v41  ;;  %v607_v7 = vld [vmem:[#allocation3 + $0x6e8] sm:$0xff] }
  0xb3   : > { %1172 = vmatpush1.msra.mxu1 %v488_v8  ;;  %1120 = vmatprep.mubr.f32.mxu0 %v3732_v4  ;;  %v601_v8 = vld [vmem:[#allocation3 + $0x6b8] sm:$0xff] }
  0xb4   : > { %1173 = vmatprep.subr.mxu1 %v482_v12  ;;  %990 = vmatmul.mubr.f32.gmra.mxu1 %v3896_v57  ;;  %v628_v12 = vld [vmem:[#allocation3 + $0x790] sm:$0xff] }
  0xb5   : > { %1174 = vmatpush1.msra.mxu1 %v481_v14  ;;  %995 = vmatprep.mubr.f32.mxu1 %v3906_v0  ;;  %v600_v14 = vld [vmem:[#allocation3 + $0x6b0] sm:$0xff] }
  0xb6   : > { %1175 = vmatprep.subr.mxu1 %v475_v15  ;;  %3278 = vmatmul.mubr.msk.f32.gmra.mxu0 %vm638_vm0, %v3888_v52  ;;  %v594_v15 = vld [vmem:[#allocation3 + $0x680] sm:$0xff] }
  0xb7   : > { %1176 = vmatpush1.msra.mxu1 %v474_v18  ;;  %1126 = vmatprep.mubr.f32.mxu0 %v3732_v4  ;;  %v593_v18 = vld [vmem:[#allocation3 + $0x678] sm:$0xff] }
  0xb8   : > { %1177 = vmatprep.subr.mxu1 %v468_v19  ;;  %996 = vmatmul.mubr.f32.gmra.mxu1 %v3910_v3  ;;  %v587_v19 = vld [vmem:[#allocation3 + $0x648] sm:$0xff] }
  0xb9   : > { %1178 = vmatpush1.msra.mxu1 %v467_v22  ;;  %1001 = vmatprep.mubr.f32.mxu1 %v3920_v13  ;;  %v586_v22 = vld [vmem:[#allocation3 + $0x640] sm:$0xff] }
  0xba   : > { %1179 = vmatprep.subr.mxu1 %v461_v24  ;;  %3279 = vmatmul.mubr.msk.f32.gmra.mxu0 %vm638_vm0, %v3902_v62  ;;  %v622_v24 = vld [vmem:[#allocation3 + $0x760] sm:$0xff] }
  0xbb   : > { %1180 = vmatpush1.msra.mxu1 %v460_v25  ;;  %1132 = vmatprep.mubr.f32.mxu0 %v3732_v4  ;;  %v580_v25 = vld [vmem:[#allocation3 + $0x610] sm:$0xff] }
  0xbc   : > { %1181 = vmatprep.subr.mxu1 %v454_v27  ;;  %1002 = vmatmul.mubr.f32.gmra.mxu1 %v3924_v16  ;;  %v621_v27 = vld [vmem:[#allocation3 + $0x758] sm:$0xff] }
  0xbd   : > { %1182 = vmatpush1.msra.mxu1 %v453_v28  ;;  %1007 = vmatprep.mubr.f32.mxu1 %v3934_v23  ;;  %v579_v28 = vld [vmem:[#allocation3 + $0x608] sm:$0xff] }
  0xbe   : > { %1183 = vmatprep.subr.mxu1 %v447_v29  ;;  %3280 = vmatmul.mubr.msk.f32.gmra.mxu0 %vm638_vm0, %v3916_v11  ;;  %v615_v29 = vld [vmem:[#allocation3 + $0x728] sm:$0xff] }
  0xbf   : > { %1184 = vmatpush1.msra.mxu1 %v446_v30  ;;  %1138 = vmatprep.mubr.f32.mxu0 %v3732_v4  ;;  %v573_v30 = vld [vmem:[#allocation3 + $0x5d8] sm:$0xff] }
  0xc0   : > { %1185 = vmatprep.subr.mxu1 %v440_v32  ;;  %1008 = vmatmul.mubr.f32.gmra.mxu1 %v3938_v26  ;;  %v614_v32 = vld [vmem:[#allocation3 + $0x720] sm:$0xff] }
  0xc1   : > { %1186 = vmatpush1.msra.mxu1 %v439_v35  ;;  %1013 = vmatprep.mubr.f32.mxu1 %v3948_v34  ;;  %v572_v35 = vld [vmem:[#allocation3 + $0x5d0] sm:$0xff] }
  0xc2   : > { %1187 = vmatprep.subr.mxu1 %v433_v39  ;;  %3281 = vmatmul.mubr.msk.f32.gmra.mxu0 %vm638_vm0, %v3930_v21  ;;  %v566_v39 = vld [vmem:[#allocation3 + $0x5a0] sm:$0xff] }
  0xc3   : > { %1188 = vmatpush1.msra.mxu1 %v432_v42  ;;  %1144 = vmatprep.mubr.f32.mxu0 %v3732_v4  ;;  %v565_v42 = vld [vmem:[#allocation3 + $0x598] sm:$0xff] }
  0xc4   : > { %1189 = vmatprep.subr.mxu1 %v426_v45  ;;  %1014 = vmatmul.mubr.f32.gmra.mxu1 %v3952_v37  ;;  %v637_v45 = vld [vmem:[#allocation3 + $0x7d8] sm:$0xff] }
  0xc5   : > { %1190 = vmatpush1.msra.mxu1 %v425_v46  ;;  %1019 = vmatprep.mubr.f32.mxu1 %v3964_v53  ;;  %v558_v46 = vld [vmem:[#allocation3 + $0x560] sm:$0xff] }
  0xc6   : > { %1191 = vmatprep.subr.mxu1 %v419_v33  ;;  %3282 = vmatmul.mubr.msk.f32.gmra.mxu0 %vm638_vm0, %v3944_v31  ;;  %v552_v33 = vld [vmem:[#allocation3 + $0x530] sm:$0xff] }
  0xc7   : > { %1192 = vmatpush1.msra.mxu1 %v418_v48  ;;  %1150 = vmatprep.mubr.f32.mxu0 %v3732_v4  ;;  %v551_v48 = vld [vmem:[#allocation3 + $0x528] sm:$0xff] }
  0xc8   : > { %1193 = vmatprep.subr.mxu1 %v412_v50  ;;  %1020 = vmatmul.mubr.f32.gmra.mxu1 %v3967_v58  ;;  %v545_v50 = vld [vmem:[#allocation3 + $0x4f8] sm:$0xff] }
  0xc9   : > { %1194 = vmatpush1.msra.mxu1 %v411_v36  ;;  %1025 = vmatprep.mubr.f32.mxu1 %v3976_v5  ;;  %v544_v36 = vld [vmem:[#allocation3 + $0x4f0] sm:$0xff] }
  0xca   : > { %1195 = vmatprep.subr.mxu1 %v405_v51  ;;  %3283 = vmatmul.mubr.msk.f32.gmra.mxu0 %vm638_vm0, %v3960_v49  ;;  %v630_v51 = vld [vmem:[#allocation3 + $0x7a0] sm:$0xff] }
  0xcb   : > { %1196 = vmatpush1.msra.mxu1 %v404_v55  ;;  %1156 = vmatprep.mubr.f32.mxu0 %v3732_v4  ;;  %v538_v55 = vld [vmem:[#allocation3 + $0x4c0] sm:$0xff] }
  0xcc   : > { %1197 = vmatprep.subr.mxu1 %v398_v56  ;;  %1026 = vmatmul.mubr.f32.gmra.mxu1 %v3980_v10  ;;  %v537_v56 = vld [vmem:[#allocation3 + $0x4b8] sm:$0xff] }
  0xcd   : > { %1198 = vmatpush1.msra.mxu1 %v397_v59  ;;  %1031 = vmatprep.mubr.f32.mxu1 %v3990_v20  ;;  %v531_v59 = vld [vmem:[#allocation3 + $0x488] sm:$0xff] }
  0xce   : > { %1199 = vmatprep.subr.mxu1 %v391_v60  ;;  %1320 = vmatprep.subr.mxu0 %v629_v63  ;;  %v530_v60 = vld [vmem:[#allocation3 + $0x480] sm:$0xff]  ;;  %v524_v63 = vld [vmem:[#allocation3 + $0x450] sm:$0xff] }
  0xcf   : > { %1200 = vmatpush1.msra.mxu1 %v390_v61  ;;  %3284 = vmatmul.mubr.msk.f32.gmra.mxu0 %vm638_vm0, %v3972_v1  ;;  %v623_v61 = vld [vmem:[#allocation3 + $0x768] sm:$0xff] }
  0xd0   : > { %1201 = vmatprep.subr.mxu1 %v608_v2  ;;  %1032 = vmatmul.mubr.f32.gmra.mxu1 %v3995_v6  ;;  %v523_v2 = vld [vmem:[#allocation3 + $0x448] sm:$0xff] }
  0xd1   : > { %1202 = vmatpush2.msra.mxu1 %v607_v7  ;;  %1321 = vmatpush1.msra.mxu0 %v628_v12  ;;  %v517_v7 = vld [vmem:[#allocation3 + $0x418] sm:$0xff]  ;;  %v616_v12 = vld [vmem:[#allocation3 + $0x730] sm:$0xff] }
  0xd2   : > { %1203 = vmatprep.subr.mxu1 %v601_v8  ;;  %1037 = vmatprep.mubr.f32.mxu1 %v4001_v38  ;;  %v516_v8 = vld [vmem:[#allocation3 + $0x410] sm:$0xff] }
  0xd3   : > { %1204 = vmatpush2.msra.mxu1 %v600_v14  ;;  %1162 = vmatprep.mubr.f32.mxu0 %v3732_v4  ;;  %v510_v14 = vld [vmem:[#allocation3 + $0x3e0] sm:$0xff] }
  0xd4   : > { %1205 = vmatprep.subr.mxu1 %v594_v15  ;;  %3285 = vmatmul.mubr.msk.f32.gmra.mxu0 %vm638_vm0, %v3986_v17  ;;  %v509_v15 = vld [vmem:[#allocation3 + $0x3d8] sm:$0xff] }
  0xd5   : > { %1206 = vmatpush2.msra.mxu1 %v593_v18  ;;  %1322 = vmatprep.subr.mxu0 %v622_v24  ;;  %v503_v18 = vld [vmem:[#allocation3 + $0x3a8] sm:$0xff]  ;;  %v497_v24 = vld [vmem:[#allocation3 + $0x378] sm:$0xff] }
  0xd6   : > { %1207 = vmatprep.subr.mxu1 %v587_v19  ;;  %1038 = vmatmul.mubr.f32.gmra.mxu1 %v4005_v40  ;;  %v502_v19 = vld [vmem:[#allocation3 + $0x3a0] sm:$0xff] }
  0xd7   : > { %1208 = vmatpush2.msra.mxu1 %v586_v22  ;;  %1323 = vmatpush1.msra.mxu0 %v621_v27  ;;  %v609_v22 = vld [vmem:[#allocation3 + $0x6f8] sm:$0xff]  ;;  %v490_v27 = vld [vmem:[#allocation3 + $0x340] sm:$0xff] }
  0xd8   : > { %1209 = vmatprep.subr.mxu1 %v580_v25  ;;  %1324 = vmatprep.subr.mxu0 %v615_v29  ;;  %v602_v25 = vld [vmem:[#allocation3 + $0x6c0] sm:$0xff]  ;;  %v483_v29 = vld [vmem:[#allocation3 + $0x308] sm:$0xff] }
  0xd9   : > { %1210 = vmatpush2.msra.mxu1 %v579_v28  ;;  %1325 = vmatpush1.msra.mxu0 %v614_v32  ;;  %v595_v28 = vld [vmem:[#allocation3 + $0x688] sm:$0xff]  ;;  %v476_v32 = vld [vmem:[#allocation3 + $0x2d0] sm:$0xff] }
  0xda   : > { %1211 = vmatprep.subr.mxu1 %v573_v30  ;;  %1233 = vmatprep.mubr.f32.mxu1 %v3880_v44  ;;  %v588_v30 = vld [vmem:[#allocation3 + $0x650] sm:$0xff] }
  0xdb   : > { %1212 = vmatpush2.msra.mxu1 %v572_v35  ;;  %1358 = vmatprep.mubr.f32.mxu0 %v3732_v4  ;;  %v581_v35 = vld [vmem:[#allocation3 + $0x618] sm:$0xff] }
  0xdc   : > { %1213 = vmatprep.subr.mxu1 %v566_v39  ;;  %3286 = vmatmul.mubr.msk.f32.vlgmr.msra.gmra.mxu0 %vm638_vm0, %v3865_v9  ;;  %v469_v39 = vld [vmem:[#allocation3 + $0x298] sm:$0xff] }
  0xdd   : > { %1214 = vmatpush2.msra.mxu1 %v565_v42  ;;  %3469 = vmatprep.subr.mxu0 %v637_v45  ;;  %v574_v42 = vld [vmem:[#allocation3 + $0x5e0] sm:$0xff] }
  0xde   : > { %1215 = vmatprep.subr.mxu1 %v559_v43  ;;  %1364 = vmatprep.mubr.f32.mxu0 %v3732_v4  ;;  %v462_v43 = vld [vmem:[#allocation3 + $0x260] sm:$0xff] }
  0xdf   : > { %1216 = vmatpush2.msra.mxu1 %v558_v46  ;;  %3470 = vmatpush3.msra.mxu0 %v637_v45  ;;  %v567_v45 = vld [vmem:[#allocation3 + $0x5a8] sm:$0xff] }
  0xe0   : > { %1217 = vmatprep.subr.mxu1 %v552_v33  ;;  %3287 = vmatmul.mubr.msk.f32.gmra.mxu0 %vm638_vm0, %v3876_v41  ;;  %v455_v46 = vld [vmem:[#allocation3 + $0x228] sm:$0xff]  ;;  %v560_v33 = vld [vmem:[#allocation3 + $0x570] sm:$0xff] }
  0xe1   : > { %1218 = vmatpush2.msra.mxu1 %v551_v48  ;;  %1370 = vmatprep.mubr.f32.mxu0 %v3732_v4  ;;  %v448_v48 = vld [vmem:[#allocation3 + $0x1f0] sm:$0xff] }
  0xe2   : > { %1219 = vmatprep.subr.mxu1 %v545_v50  ;;  %3471 = vmatprep.subr.mxu0 %v630_v51  ;;  %v553_v50 = vld [vmem:[#allocation3 + $0x538] sm:$0xff] }
  0xe3   : > { %1220 = vmatpush2.msra.mxu1 %v544_v36  ;;  %3472 = vmatpush3.msra.mxu0 %v630_v51  ;;  %v441_v36 = vld [vmem:[#allocation3 + $0x1b8] sm:$0xff]  ;;  %v546_v51 = vld [vmem:[#allocation3 + $0x500] sm:$0xff] }
  0xe4   : > { %1221 = vmatprep.subr.mxu1 %v538_v55  ;;  %3288 = vmatmul.mubr.msk.f32.gmra.mxu0 %vm638_vm0, %v3888_v52  ;;  %v434_v55 = vld [vmem:[#allocation3 + $0x180] sm:$0xff] }
  0xe5   : > { %1222 = vmatpush2.msra.mxu1 %v537_v56  ;;  %1376 = vmatprep.mubr.f32.mxu0 %v3732_v4  ;;  %v539_v56 = vld [vmem:[#allocation3 + $0x4c8] sm:$0xff] }
  0xe6   : > { %1223 = vmatprep.subr.mxu1 %v531_v59  ;;  %3473 = vmatprep.subr.mxu0 %v623_v61  ;;  %v427_v59 = vld [vmem:[#allocation3 + $0x148] sm:$0xff] }
  0xe7   : > { %1224 = vmatpush2.msra.mxu1 %v530_v60  ;;  %3474 = vmatpush3.msra.mxu0 %v623_v61  ;;  %v532_v60 = vld [vmem:[#allocation3 + $0x490] sm:$0xff]  ;;  %v525_v61 = vld [vmem:[#allocation3 + $0x458] sm:$0xff] }
  0xe8   : > { %1225 = vmatprep.subr.mxu1 %v524_v63  ;;  %3289 = vmatmul.mubr.msk.f32.gmra.mxu0 %vm638_vm0, %v3902_v62  ;;  %v413_v63 = vld [vmem:[#allocation3 + $0xd8] sm:$0xff] }
  0xe9   : > { %1226 = vmatpush2.msra.mxu1 %v523_v2  ;;  %1382 = vmatprep.mubr.f32.mxu0 %v3732_v4  ;;  %v518_v2 = vld [vmem:[#allocation3 + $0x420] sm:$0xff] }
  0xea   : > { %1227 = vmatprep.subr.mxu1 %v517_v7  ;;  %3475 = vmatprep.subr.mxu0 %v616_v12  ;;  %v511_v7 = vld [vmem:[#allocation3 + $0x3e8] sm:$0xff] }
  0xeb   : > { %1228 = vmatpush2.msra.mxu1 %v516_v8  ;;  %3476 = vmatpush3.msra.mxu0 %v616_v12  ;;  %v399_v8 = vld [vmem:[#allocation3 + $0x68] sm:$0xff] }
  0xec   : > { %1229 = vmatprep.subr.mxu1 %v510_v14  ;;  %3290 = vmatmul.mubr.msk.f32.gmra.mxu0 %vm638_vm0, %v3916_v11 }
  0xed   : > { %1230 = vmatpush2.msra.mxu1 %v509_v15  ;;  %1388 = vmatprep.mubr.f32.mxu0 %v3732_v4 }
  0xee   : > { %1231 = vmatprep.subr.mxu1 %v503_v18 }
  0xef   : > { %1232 = vmatpush2.msra.mxu1 %v502_v19 }
  0xf0   : > { %1234 = vmatmul.mubr.f32.vlgmr.msra.gmra.mxu1 %v3883_v47  ;;  %3368 = vmatprep.subr.mxu1 %v609_v22 }
  0xf1   : > { %3369 = vmatpush3.msra.mxu1 %v497_v24  ;;  %1239 = vmatprep.mubr.f32.mxu1 %v3892_v54 }
  0xf2   : > { %3370 = vmatprep.subr.mxu1 %v602_v25  ;;  %3291 = vmatmul.mubr.msk.f32.gmra.mxu0 %vm638_vm0, %v3930_v21 }
  0xf3   : > { %3371 = vmatpush3.msra.mxu1 %v490_v27  ;;  %1394 = vmatprep.mubr.f32.mxu0 %v3732_v4 }
  0xf4   : > { %1240 = vmatmul.mubr.f32.gmra.mxu1 %v3896_v57  ;;  %3372 = vmatprep.subr.mxu1 %v595_v28 }
  0xf5   : > { %3373 = vmatpush3.msra.mxu1 %v483_v29  ;;  %1245 = vmatprep.mubr.f32.mxu1 %v3906_v0 }
  0xf6   : > { %3374 = vmatprep.subr.mxu1 %v588_v30  ;;  %3292 = vmatmul.mubr.msk.f32.gmra.mxu0 %vm638_vm0, %v3944_v31 }
  0xf7   : > { %3375 = vmatpush3.msra.mxu1 %v476_v32  ;;  %1400 = vmatprep.mubr.f32.mxu0 %v3732_v4 }
  0xf8   : > { %1246 = vmatmul.mubr.f32.gmra.mxu1 %v3910_v3  ;;  %3376 = vmatprep.subr.mxu1 %v581_v35 }
  0xf9   : > { %1251 = vmatprep.mubr.f32.mxu1 %v3920_v13  ;;  %3377 = vmatpush3.msra.mxu1 %v469_v39 }
  0xfa   : > { %3378 = vmatprep.subr.mxu1 %v574_v42  ;;  %3293 = vmatmul.mubr.msk.f32.gmra.mxu0 %vm638_vm0, %v3960_v49 }
  0xfb   : > { %3379 = vmatpush3.msra.mxu1 %v462_v43  ;;  %1406 = vmatprep.mubr.f32.mxu0 %v3732_v4 }
  0xfc   : > { %1252 = vmatmul.mubr.f32.gmra.mxu1 %v3924_v16  ;;  %3380 = vmatprep.subr.mxu1 %v567_v45 }
  0xfd   : > { %1257 = vmatprep.mubr.f32.mxu1 %v3934_v23  ;;  %3381 = vmatpush3.msra.mxu1 %v455_v46 }
  0xfe   : > { %3382 = vmatprep.subr.mxu1 %v560_v33  ;;  %3294 = vmatmul.mubr.msk.f32.gmra.mxu0 %vm638_vm0, %v3972_v1 }
  0xff   : > { %3383 = vmatpush3.msra.mxu1 %v448_v48  ;;  %1412 = vmatprep.mubr.f32.mxu0 %v3732_v4  ;;  %v420_v4 = vld [vmem:[#allocation3 + $0x110] sm:$0xff] }
 0x100   : > { %1258 = vmatmul.mubr.f32.gmra.mxu1 %v3938_v26  ;;  %3384 = vmatprep.subr.mxu1 %v553_v50 }
 0x101   : > { %1263 = vmatprep.mubr.f32.mxu1 %v3948_v34  ;;  %3385 = vmatpush3.msra.mxu1 %v441_v36 }
 0x102   : > { %3386 = vmatprep.subr.mxu1 %v546_v51  ;;  %3295 = vmatmul.mubr.msk.f32.gmra.mxu0 %vm638_vm0, %v3986_v17 }
 0x103   : > { %3387 = vmatpush3.msra.mxu1 %v434_v55  ;;  %3477 = vmatprep.mubr.msk.f32.mxu0 %vm638_vm0, %v3865_v9  ;;  %v406_v9 = vld [vmem:[#allocation3 + $0xa0] sm:$0xff] }
 0x104   : > { %1264 = vmatmul.mubr.f32.gmra.mxu1 %v3952_v37  ;;  %3388 = vmatprep.subr.mxu1 %v539_v56 }
 0x105   : > { %1269 = vmatprep.mubr.f32.mxu1 %v3964_v53  ;;  %3389 = vmatpush3.msra.mxu1 %v427_v59 }
 0x106   : > { %3390 = vmatprep.subr.mxu1 %v532_v60  ;;  %3478 = vmatmul.mubr.msk.f32.vlgmr.msra.gmra.mxu0 %vm638_vm0, %v3876_v41  ;;  %v504_v41 = vld [vmem:[#allocation3 + $0x3b0] sm:$0xff] }
 0x107   : > { %3391 = vmatpush3.msra.mxu1 %v420_v4  ;;  %3480 = vmatprep.mubr.msk.f32.mxu0 %vm638_vm0, %v3888_v52  ;;  %v392_v52 = vld [vmem:[#allocation3 + $0x30] sm:$0xff] }
 0x108   : > { %1270 = vmatmul.mubr.f32.gmra.mxu1 %v3967_v58  ;;  %3392 = vmatprep.subr.mxu1 %v525_v61 }
 0x109   : > { %1275 = vmatprep.mubr.f32.mxu1 %v3976_v5  ;;  %3393 = vmatpush3.msra.mxu1 %v413_v63 }
 0x10a   : > { %3394 = vmatprep.subr.mxu1 %v518_v2  ;;  %3481 = vmatmul.mubr.msk.f32.gmra.mxu0 %vm638_vm0, %v3902_v62 }
 0x10b   : > { %3395 = vmatpush3.msra.mxu1 %v406_v9  ;;  %3483 = vmatprep.mubr.msk.f32.mxu0 %vm638_vm0, %v3916_v11 }
 0x10c   : > { %1276 = vmatmul.mubr.f32.gmra.mxu1 %v3980_v10  ;;  %3396 = vmatprep.subr.mxu1 %v511_v7 }
 0x10d   : > { %1281 = vmatprep.mubr.f32.mxu1 %v3990_v20  ;;  %3397 = vmatpush3.msra.mxu1 %v399_v8 }
 0x10e   : > { %3398 = vmatprep.subr.mxu1 %v504_v41  ;;  %3484 = vmatmul.mubr.msk.f32.gmra.mxu0 %vm638_vm0, %v3930_v21 }
 0x10f   : > { %3399 = vmatpush3.msra.mxu1 %v392_v52  ;;  %3486 = vmatprep.mubr.msk.f32.mxu0 %vm638_vm0, %v3944_v31 }
 0x110   : > { %1282 = vmatmul.mubr.f32.gmra.mxu1 %v3995_v6 }
 0x111   : > { %1287 = vmatprep.mubr.f32.mxu1 %v4001_v38 }
 0x112   : > { %3487 = vmatmul.mubr.msk.f32.gmra.mxu0 %vm638_vm0, %v3960_v49 }
 0x113   : > { %3489 = vmatprep.mubr.msk.f32.mxu0 %vm638_vm0, %v3972_v1 }
 0x114   : > { %1288 = vmatmul.mubr.f32.gmra.mxu1 %v4005_v40 }
 0x115   : > { %1483 = vmatprep.mubr.f32.mxu1 %v3880_v44 }
 0x116   : > { %3490 = vmatmul.mubr.msk.f32.gmra.mxu0 %vm638_vm0, %v3986_v17 }
 0x118   : > { %1484 = vmatmul.mubr.f32.vlgmr.msra.gmra.mxu1 %v3883_v47 }
 0x119   : > { %1488 = vmatprep.mubr.f32.mxu1 %v3892_v54 }
 0x11c   : > { %1489 = vmatmul.mubr.f32.gmra.mxu1 %v3896_v57 }
 0x11d   : > { %1493 = vmatprep.mubr.f32.mxu1 %v3906_v0 }
 0x120   : > { %1494 = vmatmul.mubr.f32.gmra.mxu1 %v3910_v3 }
 0x121   : > { %1498 = vmatprep.mubr.f32.mxu1 %v3920_v13 }
 0x124   : > { %1499 = vmatmul.mubr.f32.gmra.mxu1 %v3924_v16 }
 0x125   : > { %1503 = vmatprep.mubr.f32.mxu1 %v3934_v23 }
 0x128   : > { %1504 = vmatmul.mubr.f32.gmra.mxu1 %v3938_v26 }
 0x129   : > { %1508 = vmatprep.mubr.f32.mxu1 %v3948_v34 }
 0x12c   : > { %1509 = vmatmul.mubr.f32.gmra.mxu1 %v3952_v37 }
 0x12d   : > { %1513 = vmatprep.mubr.f32.mxu1 %v3964_v53  ;;  %v860_v44 = vpop.f32.mrf.mxu1 }
 0x12f   : > { %v862_v47 = vpop.f32.mrf.mxu1 }
 0x130   : > { %1514 = vmatmul.mubr.f32.gmra.mxu1 %v3967_v58 }
 0x131   : > { %1518 = vmatprep.mubr.f32.mxu1 %v3976_v5 }
 0x134   : > { %1519 = vmatmul.mubr.f32.gmra.mxu1 %v3980_v10 }
 0x135   : > { %1523 = vmatprep.mubr.f32.mxu1 %v3990_v20 }
 0x138   : > { %1524 = vmatmul.mubr.f32.gmra.mxu1 %v3995_v6 }
 0x139   : > { %1528 = vmatprep.mubr.f32.mxu1 %v4001_v38 }
 0x13c   : > { %1529 = vmatmul.mubr.f32.gmra.mxu1 %v4005_v40 }
 0x13d   : > { %v866_v54 = vpop.f32.mrf.mxu1 }
 0x13f   : > { %v868_v62 = vpop.f32.mrf.mxu1 }
 0x140   : > { %v735_v57 = vpop.f32.mrf.mxu0 }
 0x141   : > { %v4149_v0 = vadd.f32 %v860_v44, %v735_v57 }
 0x142   : > { %v737_v3 = vpop.f32.mrf.mxu0  ;;  %v872_v11 = vpop.f32.mrf.mxu1 }
 0x143   : > { %5299 = vst [vmem:[#allocation10_spill] sm:$0xff] %v4149_v0  ;;  %v4151_v13 = vadd.f32 %v862_v47, %v737_v3 }
 0x144   : > { %v741_v16 = vpop.f32.mrf.mxu0  ;;  %v874_v21 = vpop.f32.mrf.mxu1 }
 0x145   : > { %5300 = vst [vmem:[#allocation11_spill] sm:$0xff] %v4151_v13  ;;  %v4153_v23 = vadd.f32 %v866_v54, %v741_v16 }
 0x146   : > { %v743_v26 = vpop.f32.mrf.mxu0  ;;  %v878_v31 = vpop.f32.mrf.mxu1 }
 0x147   : > { %5301 = vst [vmem:[#allocation12_spill] sm:$0xff] %v4153_v23  ;;  %v4155_v34 = vadd.f32 %v868_v62, %v743_v26 }
 0x148   : > { %v747_v37 = vpop.f32.mrf.mxu0  ;;  %v880_v49 = vpop.f32.mrf.mxu1 }
 0x149   : > { %5302 = vst [vmem:[#allocation13_spill] sm:$0xff] %v4155_v34  ;;  %v4157_v53 = vadd.f32 %v872_v11, %v747_v37 }
 0x14a   : > { %v749_v58 = vpop.f32.mrf.mxu0  ;;  %v884_v1 = vpop.f32.mrf.mxu1 }
 0x14b   : > { %5303 = vst [vmem:[#allocation14_spill] sm:$0xff] %v4157_v53  ;;  %v4159_v5 = vadd.f32 %v874_v21, %v749_v58 }
 0x14c   : > { %v753_v10 = vpop.f32.mrf.mxu0  ;;  %v886_v17 = vpop.f32.mrf.mxu1 }
 0x14d   : > { %5304 = vst [vmem:[#allocation15_spill] sm:$0xff] %v4159_v5  ;;  %v4161_v20 = vadd.f32 %v878_v31, %v753_v10 }
 0x14e   : > { %v755_v6 = vpop.f32.mrf.mxu0  ;;  %v890_v38 = vpop.f32.mrf.mxu1 }
 0x14f   : > { %5305 = vst [vmem:[#allocation16_spill] sm:$0xff] %v4161_v20  ;;  %v4163_v40 = vadd.f32 %v880_v49, %v755_v6 }
 0x150   : > { %v759_v12 = vpop.f32.mrf.mxu0  ;;  %v892_v14 = vpop.f32.mrf.mxu1 }
 0x151   : > { %5306 = vst [vmem:[#allocation17_spill] sm:$0xff] %v4163_v40  ;;  %v4165_v15 = vadd.f32 %v884_v1, %v759_v12 }
 0x152   : > { %v761_v18 = vpop.f32.mrf.mxu0  ;;  %v896_v19 = vpop.f32.mrf.mxu1 }
 0x153   : > { %5307 = vst [vmem:[#allocation18_spill] sm:$0xff] %v4165_v15  ;;  %v4167_v22 = vadd.f32 %v886_v17, %v761_v18 }
 0x154   : > { %v765_v24 = vpop.f32.mrf.mxu0  ;;  %v898_v25 = vpop.f32.mrf.mxu1 }
 0x155   : > { %5308 = vst [vmem:[#allocation19_spill] sm:$0xff] %v4167_v22  ;;  %v4169_v27 = vadd.f32 %v890_v38, %v765_v24 }
 0x156   : > { %v767_v28 = vpop.f32.mrf.mxu0 }
 0x157   : > { %5309 = vst [vmem:[#allocation20_spill] sm:$0xff] %v4169_v27  ;;  %v4171_v29 = vadd.f32 %v892_v14, %v767_v28 }
 0x158   : > { %v902_v30 = vpop.f32.mrf.mxu1 }
 0x159   : > { %5310 = vst [vmem:[#allocation21_spill] sm:$0xff] %v4171_v29  ;;  %v771_v32 = vpop.f32.mrf.mxu0 }
 0x15a   : > { %v904_v35 = vpop.f32.mrf.mxu1  ;;  %v4173_v39 = vadd.f32 %v896_v19, %v771_v32 }
 0x15b   : > { %v773_v42 = vpop.f32.mrf.mxu0 }
 0x15c   : > { %5311 = vst [vmem:[#allocation22_spill] sm:$0xff] %v4173_v39  ;;  %v4175_v43 = vadd.f32 %v898_v25, %v773_v42  ;;  %v908_v45 = vpop.f32.mrf.mxu1 }
 0x15d   : > { %v777_v46 = vpop.f32.mrf.mxu0 }
 0x15e   : > { %5312 = vst [vmem:[#allocation23_spill] sm:$0xff] %v4175_v43  ;;  %v4177_v33 = vadd.f32 %v902_v30, %v777_v46  ;;  %v910_v50 = vpop.f32.mrf.mxu1 }
 0x15f   : > { %v779_v48 = vpop.f32.mrf.mxu0 }
 0x160   : > { %5313 = vst [vmem:[#allocation24_spill] sm:$0xff] %v4177_v33  ;;  %v4179_v36 = vadd.f32 %v904_v35, %v779_v48  ;;  %v914_v56 = vpop.f32.mrf.mxu1 }
 0x162   : > { %5314 = vst [vmem:[#allocation25_spill] sm:$0xff] %v4179_v36  ;;  %v783_v51 = vpop.f32.mrf.mxu0  ;;  %v916_v63 = vpop.f32.mrf.mxu1 }
 0x163   : > { %v4181_v55 = vadd.f32 %v908_v45, %v783_v51 }
 0x164   : > { %v785_v59 = vpop.f32.mrf.mxu0 }
 0x165   : > { %5315 = vst [vmem:[#allocation26_spill] sm:$0xff] %v4181_v55  ;;  %v4183_v60 = vadd.f32 %v910_v50, %v785_v59 }
 0x166   : > { %v789_v4 = vpop.f32.mrf.mxu0 }
 0x167   : > { %5316 = vst [vmem:[#allocation27_spill] sm:$0xff] %v4183_v60  ;;  %v4185_v61 = vadd.f32 %v914_v56, %v789_v4 }
 0x168   : > { %v791_v2 = vpop.f32.mrf.mxu0 }
 0x169   : > { %5317 = vst [vmem:[#allocation28_spill] sm:$0xff] %v4185_v61  ;;  %v4187_v9 = vadd.f32 %v916_v63, %v791_v2 }
 0x16b   : > { %5318 = vst [vmem:[#allocation29_spill] sm:$0xff] %v4187_v9 }
 0x16c   : > { %v1110_v7 = vpop.f32.mrf.mxu0 }
 0x16e   : > { %v1112_v8 = vpop.f32.mrf.mxu0 }
 0x170   : > { %v985_v41 = vpop.f32.mrf.mxu1 }
 0x171   : > { %v4189_v52 = vadd.f32 %v1110_v7, %v985_v41 }
 0x172   : > { %v987_v44 = vpop.f32.mrf.mxu1  ;;  %v1116_v47 = vpop.f32.mrf.mxu0 }
 0x173   : > { %5319 = vst [vmem:[#allocation30_spill] sm:$0xff] %v4189_v52  ;;  %v4191_v54 = vadd.f32 %v1112_v8, %v987_v44 }
 0x174   : > { %v991_v57 = vpop.f32.mrf.mxu1  ;;  %v1118_v62 = vpop.f32.mrf.mxu0 }
 0x175   : > { %v4193_v3 = vadd.f32 %v1116_v47, %v991_v57 }
 0x176   : > { %v993_v11 = vpop.f32.mrf.mxu1  ;;  %v1122_v16 = vpop.f32.mrf.mxu0 }
 0x177   : > { %v4195_v21 = vadd.f32 %v1118_v62, %v993_v11 }
 0x178   : > { %v997_v26 = vpop.f32.mrf.mxu1  ;;  %v1124_v31 = vpop.f32.mrf.mxu0 }
 0x179   : > { %v4197_v37 = vadd.f32 %v1122_v16, %v997_v26 }
 0x17a   : > { %v999_v49 = vpop.f32.mrf.mxu1  ;;  %v1128_v58 = vpop.f32.mrf.mxu0 }
 0x17b   : > { %v4199_v1 = vadd.f32 %v1124_v31, %v999_v49 }
 0x17c   : > { %v1003_v10 = vpop.f32.mrf.mxu1  ;;  %v1130_v17 = vpop.f32.mrf.mxu0 }
 0x17d   : > { %v4201_v6 = vadd.f32 %v1128_v58, %v1003_v10 }
 0x17e   : > { %v1005_v38 = vpop.f32.mrf.mxu1  ;;  %v1134_v12 = vpop.f32.mrf.mxu0 }
 0x17f   : > { %5320 = vst [vmem:[#allocation31_spill] sm:$0xff] %v4201_v6  ;;  %v4203_v14 = vadd.f32 %v1130_v17, %v1005_v38 }
 0x180   : > { %v1009_v18 = vpop.f32.mrf.mxu1  ;;  %v1136_v19 = vpop.f32.mrf.mxu0 }
 0x181   : > { %v4205_v24 = vadd.f32 %v1134_v12, %v1009_v18 }
 0x182   : > { %v1011_v25 = vpop.f32.mrf.mxu1  ;;  %v1140_v28 = vpop.f32.mrf.mxu0 }
 0x183   : > { %v4207_v30 = vadd.f32 %v1136_v19, %v1011_v25 }
 0x184   : > { %v1015_v32 = vpop.f32.mrf.mxu1  ;;  %v1142_v35 = vpop.f32.mrf.mxu0 }
 0x185   : > { %5321 = vst [vmem:[#allocation32_spill] sm:$0xff] %v4207_v30  ;;  %v4209_v42 = vadd.f32 %v1140_v28, %v1015_v32 }
 0x186   : > { %v1017_v45 = vpop.f32.mrf.mxu1  ;;  %v1146_v48 = vpop.f32.mrf.mxu0 }
 0x187   : > { %5322 = vst [vmem:[#allocation33_spill] sm:$0xff] %v4209_v42  ;;  %v4211_v46 = vadd.f32 %v1142_v35, %v1017_v45 }
 0x188   : > { %v1021_v50 = vpop.f32.mrf.mxu1  ;;  %v1148_v56 = vpop.f32.mrf.mxu0 }
 0x189   : > { %5323 = vst [vmem:[#allocation34_spill] sm:$0xff] %v4211_v46  ;;  %v4213_v51 = vadd.f32 %v1146_v48, %v1021_v50 }
 0x18a   : > { %v1023_v59 = vpop.f32.mrf.mxu1  ;;  %v1152_v63 = vpop.f32.mrf.mxu0 }
 0x18b   : > { %5324 = vst [vmem:[#allocation35_spill] sm:$0xff] %v4213_v51  ;;  %v4215_v4 = vadd.f32 %v1148_v56, %v1023_v59 }
 0x18c   : > { %v1027_v2 = vpop.f32.mrf.mxu1  ;;  %v1154_v8 = vpop.f32.mrf.mxu0 }
 0x18d   : > { %5325 = vst [vmem:[#allocation36_spill] sm:$0xff] %v4215_v4  ;;  %v4217_v7 = vadd.f32 %v1152_v63, %v1027_v2 }
 0x18e   : > { %v1029_v41 = vpop.f32.mrf.mxu1 }
 0x18f   : > { %5326 = vst [vmem:[#allocation37_spill] sm:$0xff] %v4217_v7  ;;  %v4219_v44 = vadd.f32 %v1154_v8, %v1029_v41  ;;  %v1158_v57 = vpop.f32.mrf.mxu0 }
 0x190   : > { %v1033_v47 = vpop.f32.mrf.mxu1 }
 0x191   : > { %5327 = vst [vmem:[#allocation38_spill] sm:$0xff] %v4219_v44  ;;  %v4221_v62 = vadd.f32 %v1158_v57, %v1033_v47  ;;  %v1160_v16 = vpop.f32.mrf.mxu0 }
 0x192   : > { %v1035_v11 = vpop.f32.mrf.mxu1 }
 0x193   : > { %5328 = vst [vmem:[#allocation39_spill] sm:$0xff] %v4221_v62  ;;  %v4223_v26 = vadd.f32 %v1160_v16, %v1035_v11 }
 0x194   : > { %v1164_v31 = vpop.f32.mrf.mxu0 }
 0x195   : > { %5329 = vst [vmem:[#allocation40_spill] sm:$0xff] %v4223_v26  ;;  %v1782_v26 = vmul.f32 %v4173_v39, %v4173_v39 }
 0x196   : > { %v1039_v49 = vpop.f32.mrf.mxu1  ;;  %v1166_v10 = vpop.f32.mrf.mxu0 }
 0x197   : > { %v4225_v58 = vadd.f32 %v1164_v31, %v1039_v49 }
 0x198   : > { %v1041_v17 = vpop.f32.mrf.mxu1 }
 0x199   : > { %5330 = vst [vmem:[#allocation41_spill] sm:$0xff] %v4225_v58  ;;  %v4227_v38 = vadd.f32 %v1166_v10, %v1041_v17  ;;  %v1741_v58 = vmul.f32 %v4151_v13, %v4151_v13 }
 0x19b   : > { %5331 = vst [vmem:[#allocation42_spill] sm:$0xff] %v4227_v38 }
 0x19c   : > { %v4229_v12 = vpop.f32.mrf.mxu0 }
 0x19e   : > { %v4231_v18 = vpop.f32.mrf.mxu0 }
 0x1a0   : > { %v4233_v19 = vpop.f32.mrf.mxu0 }
 0x1a2   : > { %v4235_v25 = vpop.f32.mrf.mxu0 }
 0x1a4   : > { %v4237_v28 = vpop.f32.mrf.mxu0 }
 0x1a6   : > { %v4239_v32 = vpop.f32.mrf.mxu0 }
 0x1a7   : > { %5332 = vst [vmem:[#allocation43_spill] sm:$0xff] %v4239_v32  ;;  %v1742_v32 = vmul.f32 %v4189_v52, %v4189_v52 }
 0x1a8   : > { %v4241_v35 = vpop.f32.mrf.mxu0 }
 0x1a9   : > { %5333 = vst [vmem:[#allocation44_spill] sm:$0xff] %v4241_v35 }
 0x1aa   : > { %v4243_v45 = vpop.f32.mrf.mxu0 }
 0x1ab   : > { %5334 = vst [vmem:[#allocation45_spill] sm:$0xff] %v4243_v45 }
 0x1ac   : > { %v4245_v48 = vpop.f32.mrf.mxu0 }
 0x1ad   : > { %5335 = vst [vmem:[#allocation46_spill] sm:$0xff] %v4245_v48  ;;  %v1754_v48 = vmul.f32 %v4157_v53, %v4157_v53 }
 0x1ae   : > { %v4247_v50 = vpop.f32.mrf.mxu0 }
 0x1af   : > { %5336 = vst [vmem:[#allocation47_spill] sm:$0xff] %v4247_v50  ;;  %v1755_v50 = vmul.f32 %v4159_v5, %v4159_v5 }
 0x1b0   : > { %v4249_v56 = vpop.f32.mrf.mxu1 }
 0x1b2   : > { %v4251_v59 = vpop.f32.mrf.mxu1  ;;  %v4253_v63 = vpop.f32.mrf.mxu0 }
 0x1b3   : > { %5337 = vst [vmem:[#allocation48_spill] sm:$0xff] %v4253_v63  ;;  %v1748_v63 = vmul.f32 %v4155_v34, %v4155_v34 }
 0x1b4   : > { %v4255_v2 = vpop.f32.mrf.mxu1  ;;  %v4257_v8 = vpop.f32.mrf.mxu0 }
 0x1b5   : > { %5338 = vst [vmem:[#allocation49_spill] sm:$0xff] %v4257_v8 }
 0x1b6   : > { %v4259_v41 = vpop.f32.mrf.mxu1  ;;  %v4263_v57 = vpop.f32.mrf.mxu0 }
 0x1b7   : > { %5339 = vst [vmem:[#allocation50_spill] sm:$0xff] %v4263_v57 }
 0x1b8   : > { %v4261_v47 = vpop.f32.mrf.mxu1  ;;  %v4269_v31 = vpop.f32.mrf.mxu0 }
 0x1b9   : > { %5341 = vst [vmem:[#allocation52_spill] sm:$0xff] %v4269_v31  ;;  %v1740_v31 = vmul.f32 %v4149_v0, %v4149_v0 }
 0x1ba   : > { %v4265_v11 = vpop.f32.mrf.mxu1  ;;  %v4275_v17 = vpop.f32.mrf.mxu0 }
 0x1bb   : > { %5344 = vst [vmem:[#allocation55_spill] sm:$0xff] %v4275_v17  ;;  %v1649_v17 = vadd.f32 %v4151_v13, %v4149_v0  ;;  %v1761_v0 = vmul.f32 %v4161_v20, %v4161_v20 }
 0x1bc   : > { %v4267_v16 = vpop.f32.mrf.mxu1  ;;  %v4283_v57 = vpop.f32.mrf.mxu0 }
 0x1bd   : > { %5340 = vst [vmem:[#allocation51_spill] sm:$0xff] %v4267_v16  ;;  %5347 = vst [vmem:[#allocation58_spill] sm:$0xff] %v4283_v57  ;;  %v1762_v57 = vmul.f32 %v4163_v40, %v4163_v40  ;;  %v1677_v16 = vadd.f32 %v4163_v40, %v4161_v20  ;;  %v1695_v40 = vadd.f32 %v4171_v29, %v4169_v27 }
 0x1be   : > { %v4271_v49 = vpop.f32.mrf.mxu1  ;;  %v4307_v35 = vpop.f32.mrf.mxu0  ;;  %v1790_v20 = vmul.f32 %v4179_v36, %v4179_v36 }
 0x1bf   : > { %5342 = vst [vmem:[#allocation53_spill] sm:$0xff] %v4271_v49  ;;  %v1659_v49 = vadd.f32 %v4155_v34, %v4153_v23  ;;  %5350 = vst [vmem:[#allocation61_spill] sm:$0xff] %v4307_v35  ;;  %v1668_v34 = vadd.f32 %v4159_v5, %v4157_v53  ;;  %v1768_v35 = vmul.f32 %v4165_v15, %v4165_v15 }
 0x1c0   : > { %v4273_v10 = vpop.f32.mrf.mxu1  ;;  %v1704_v53 = vadd.f32 %v4175_v43, %v4173_v39  ;;  %v1743_v39 = vmul.f32 %v4191_v54, %v4191_v54 }
 0x1c1   : > { %5343 = vst [vmem:[#allocation54_spill] sm:$0xff] %v4273_v10  ;;  %v1769_v10 = vmul.f32 %v4167_v22, %v4167_v22 }
 0x1c2   : > { %v4277_v38 = vpop.f32.mrf.mxu1 }
 0x1c3   : > { %5345 = vst [vmem:[#allocation56_spill] sm:$0xff] %v4277_v38  ;;  %v1747_v38 = vmul.f32 %v4153_v23, %v4153_v23  ;;  %v1828_v23 = vadd.f32 %v1755_v50, %v1754_v48  ;;  %v1686_v48 = vadd.f32 %v4167_v22, %v4165_v15  ;;  %v1846_v50 = vadd.f32 %v1769_v10, %v1768_v35 }
 0x1c4   : > { %v4281_v8 = vpop.f32.mrf.mxu1  ;;  %v1797_v22 = vmul.f32 %v4183_v60, %v4183_v60  ;;  %v1789_v35 = vmul.f32 %v4177_v33, %v4177_v33  ;;  %v4349_v10 = vadd.f32 %v4179_v36, %v4177_v33  ;;  %v1803_v36 = vmul.f32 %v4185_v61, %v4185_v61 }
 0x1c5   : > { %5346 = vst [vmem:[#allocation57_spill] sm:$0xff] %v4281_v8  ;;  %v1810_v8 = vadd.f32 %v1741_v58, %v1740_v31  ;;  %v1819_v13 = vadd.f32 %v1748_v63, %v1747_v38  ;;  %v1776_v58 = vmul.f32 %v4171_v29, %v4171_v29  ;;  %v1783_v31 = vmul.f32 %v4175_v43, %v4175_v43 }
 0x1c6   : > { %v4291_v45 = vpop.f32.mrf.mxu1  ;;  %v1837_v63 = vadd.f32 %v1762_v57, %v1761_v0  ;;  %v4337_v57 = vpop.f32.mrf.mxu0  ;;  %v1804_v29 = vmul.f32 %v4187_v9, %v4187_v9  ;;  %v1756_v33 = vmul.f32 %v4197_v37, %v4197_v37  ;;  %v1763_v15 = vmul.f32 %v4201_v6, %v4201_v6 }
 0x1c7   : > { %5348 = vst [vmem:[#allocation59_spill] sm:$0xff] %v4291_v45  ;;  %5353 = vst [vmem:[#allocation64_spill] sm:$0xff] %v4337_v57  ;;  %v1811_v43 = vadd.f32 %v1810_v8, %v1742_v32  ;;  %v1722_v32 = vadd.f32 %v4183_v60, %v4181_v55  ;;  %v1669_v60 = vadd.f32 %v1668_v34, %v4197_v37 }
 0x1c8   : > { %v4305_v45 = vpop.f32.mrf.mxu1  ;;  %v1687_v34 = vadd.f32 %v1686_v48, %v4205_v24  ;;  %v1705_v48 = vadd.f32 %v1704_v53, %v4213_v51 }
 0x1c9   : > { %5349 = vst [vmem:[#allocation60_spill] sm:$0xff] %v4305_v45  ;;  %v1775_v45 = vmul.f32 %v4169_v27, %v4169_v27  ;;  %v4362_v27 = vadd.f32 %v1790_v20, %v1789_v35  ;;  %v4380_v20 = vadd.f32 %v4187_v9, %v4185_v61  ;;  %v4384_v35 = vadd.f32 %v1804_v29, %v1803_v36 }
 0x1ca   : > { %v4321_v38 = vpop.f32.mrf.mxu1  ;;  %v1829_v9 = vadd.f32 %v1828_v23, %v1756_v33  ;;  %v1757_v29 = vmul.f32 %v4199_v1, %v4199_v1  ;;  %v1678_v36 = vadd.f32 %v1677_v16, %v4201_v6  ;;  %v1771_v23 = vmul.f32 %v4207_v30, %v4207_v30 }
 0x1cb   : > { %5351 = vst [vmem:[#allocation62_spill] sm:$0xff] %v4321_v38  ;;  %v1855_v5 = vadd.f32 %v1776_v58, %v1775_v45  ;;  %v4341_v38 = vadd.f32 %v1783_v31, %v1782_v26  ;;  %v1749_v45 = vmul.f32 %v4193_v3, %v4193_v3  ;;  %v1796_v26 = vmul.f32 %v4181_v55, %v4181_v55 }
 0x1cc   : > { %v4335_v0 = vpop.f32.mrf.mxu1  ;;  %v1650_v31 = vadd.f32 %v1649_v17, %v4189_v52  ;;  %v1770_v17 = vmul.f32 %v4205_v24, %v4205_v24  ;;  %v1660_v52 = vadd.f32 %v1659_v49, %v4193_v3  ;;  %v1777_v55 = vmul.f32 %v4209_v42, %v4209_v42 }
 0x1cd   : > { %5352 = vst [vmem:[#allocation63_spill] sm:$0xff] %v4335_v0  ;;  %v4376_v8 = vadd.f32 %v1797_v22, %v1796_v26  ;;  %v1820_v0 = vadd.f32 %v1819_v13, %v1749_v45  ;;  %v1812_v26 = vadd.f32 %v1811_v43, %v1743_v39  ;;  %v1838_v13 = vadd.f32 %v1837_v63, %v1763_v15 }
 0x1ce   : > { %v4355_v58 = vpop.f32.mrf.mxu1  ;;  %v1651_v22 = vadd.f32 %v1650_v31, %v4191_v54  ;;  %v1764_v39 = vmul.f32 %v4203_v14, %v4203_v14  ;;  %v1847_v43 = vadd.f32 %v1846_v50, %v1770_v17  ;;  %v1661_v33 = vadd.f32 %v1660_v52, %v4195_v21 }
 0x1cf   : > { %5354 = vst [vmem:[#allocation65_spill] sm:$0xff] %v4355_v58  ;;  %v4372_v58 = vpop.f32.mrf.mxu0  ;;  %v1696_v31 = vadd.f32 %v1695_v40, %v4209_v42  ;;  %v4411_v15 = vadd.f32 %v4229_v12, %v4249_v56  ;;  %v1856_v61 = vadd.f32 %v1855_v5, %v1777_v55  ;;  %v1778_v6 = vmul.f32 %v4211_v46, %v4211_v46 }
 0x1d0   : > { %v4370_v57 = vpop.f32.mrf.mxu1  ;;  %5356 = vst [vmem:[#allocation67_spill] sm:$0xff] %v4372_v58  ;;  %v1750_v58 = vmul.f32 %v4195_v21, %v4195_v21  ;;  %v1784_v50 = vmul.f32 %v4213_v51, %v4213_v51  ;;  %v1670_v52 = vadd.f32 %v1669_v60, %v4199_v1  ;;  %v4421_v17 = vadd.f32 %v1829_v9, %v1757_v29 }
 0x1d1   : > { %5355 = vst [vmem:[#allocation66_spill] sm:$0xff] %v4370_v57  ;;  %v4400_v45 = vpop.f32.mrf.mxu0  ;;  %v4424_v40 = vadd.f32 %v1678_v36, %v4203_v14  ;;  %v4428_v12 = vadd.f32 %v4233_v19, %v4255_v2  ;;  %v4430_v56 = vadd.f32 %v1838_v13, %v1764_v39  ;;  %v4433_v53 = vadd.f32 %v1687_v34, %v4207_v30 }
 0x1d2   : > { %v4389_v57 = vpop.f32.mrf.mxu1  ;;  %v1821_v63 = vadd.f32 %v1820_v0, %v1750_v58  ;;  %v4435_v0 = vadd.f32 %v1847_v43, %v1771_v23  ;;  %v1791_v60 = vmul.f32 %v4217_v7, %v4217_v7  ;;  %v4440_v9 = vadd.f32 %v1696_v31, %v4211_v46 }
 0x1d3   : > { %v3479_v55 = vpop.f32.mrf.mxu0  ;;  %v1744_v58 = vmul.f32 %v4411_v15, %v4411_v15  ;;  %v4446_v19 = vadd.f32 %v4231_v18, %v4251_v59  ;;  %v1652_v29 = vadd.f32 %v1651_v22, %v4411_v15  ;;  %v4449_v36 = vadd.f32 %v1856_v61, %v1778_v6 }
 0x1d4   : > { %v4398_v49 = vpop.f32.mrf.mxu1  ;;  %v1865_v13 = vadd.f32 %v4341_v38, %v1784_v50  ;;  %v4453_v39 = vadd.f32 %v1705_v48, %v4215_v4  ;;  %v1785_v43 = vmul.f32 %v4215_v4, %v4215_v4  ;;  %v1714_v23 = vadd.f32 %v4349_v10, %v4217_v7 }
 0x1d5   : > { %v1751_v18 = vmul.f32 %v4428_v12, %v4428_v12  ;;  %v4463_v59 = vadd.f32 %v4235_v25, %v4259_v41  ;;  %v1600_v61 = vpop.f32.mrf.mxu0  ;;  %v1874_v38 = vadd.f32 %v4362_v27, %v1791_v60  ;;  %v1792_v22 = vmul.f32 %v4219_v44, %v4219_v44 }
 0x1d6   : > { %v4413_v16 = vpop.f32.mrf.mxu1  ;;  %v1723_v31 = vadd.f32 %v1722_v32, %v4221_v62  ;;  %v1745_v10 = vmul.f32 %v4446_v19, %v4446_v19  ;;  %v4475_v50 = vadd.f32 %v4237_v28, %v4261_v47  ;;  %v1798_v27 = vmul.f32 %v4221_v62, %v4221_v62  ;;  %v5360_v62 = vld [vmem:[#allocation44_spill] sm:$0xff] }
 0x1d7   : > { %v3482_v41 = vpop.f32.mrf.mxu0  ;;  %v1752_v47 = vmul.f32 %v4463_v59, %v4463_v59  ;;  %v1822_v4 = vadd.f32 %v1821_v63, %v1751_v18 }
 0x1d8   : > { %v3400_v5 = vpop.f32.mrf.mxu1  ;;  %v1883_v18 = vadd.f32 %v4376_v8, %v1798_v27 }
 0x1d9   : > { %v1610_v63 = vpop.f32.mrf.mxu0 }
 0x1da   : > { %v3401_v2 = vpop.f32.mrf.mxu1 }
 0x1db   : > { %v3402_v34 = vadd.f32 %v3401_v2, %v3400_v5  ;;  %v1653_v5 = vadd.f32 %v1652_v29, %v4446_v19  ;;  %v1813_v2 = vadd.f32 %v1812_v26, %v1744_v58  ;;  %v4489_v26 = vadd.f32 %v1714_v23, %v4219_v44 }
 0x1dc   : > { %v3403_v6 = vpop.f32.mrf.mxu1  ;;  %v1662_v58 = vadd.f32 %v1661_v33, %v4428_v12  ;;  %v5358_v33 = vld [vmem:[#allocation40_spill] sm:$0xff] }
 0x1dd   : > { %v4469_v48 = vadd.f32 %v3402_v34, %v1600_v61  ;;  %v4484_v61 = vadd.f32 %v1865_v13, %v1785_v43  ;;  %v1758_v13 = vmul.f32 %v4475_v50, %v4475_v50  ;;  %v5357_v43 = vld [vmem:[#allocation43_spill] sm:$0xff]  ;;  %v1814_v23 = vadd.f32 %v1813_v2, %v1745_v10  ;;  %v5362_v2 = vld [vmem:[#allocation46_spill] sm:$0xff] }
 0x1de   : > { %v3404_v25 = vpop.f32.mrf.mxu1 }
 0x1df   : > { %v3405_v60 = vadd.f32 %v3404_v25, %v3403_v6  ;;  %v1655_v32 = vsel %vm1654_vm1, %v4469_v48, 0.0  ;;  %v1746_v34 = vmul.f32 %v4469_v48, %v4469_v48  ;;  %v4495_v25 = vadd.f32 %v1874_v38, %v1792_v22 }
 0x1e0   : > { %v3406_v7 = vpop.f32.mrf.mxu1  ;;  %v1656_v28 = vadd.f32 %v1655_v32, %v1653_v5  ;;  %v4501_v5 = vadd.f32 %v5357_v43, %v4265_v11  ;;  %v1671_v22 = vadd.f32 %v1670_v52, %v4475_v50  ;;  %v5361_v52 = vld [vmem:[#allocation54_spill] sm:$0xff] }
 0x1e1   : > { %v4492_v29 = vadd.f32 %v3479_v55, %v3405_v60  ;;  %v1815_v6 = vsel %vm1654_vm1, %v1746_v34, 0.0  ;;  %v4505_v55 = vadd.f32 %v1723_v31, %v5358_v33  ;;  %v5359_v34 = vld [vmem:[#allocation51_spill] sm:$0xff]  ;;  %v1663_v31 = vadd.f32 %v1662_v58, %v4463_v59 }
 0x1e2   : > { %v3407_v32 = vpop.f32.mrf.mxu1  ;;  %1657 = vadd.xlane.f32.xlu0 %v1656_v28  ;;  %v4512_v44 = vadd.f32 %v5360_v62, %v5359_v34  ;;  %v1816_v43 = vadd.f32 %v1815_v6, %v1814_v23  ;;  %v1823_v28 = vadd.f32 %v1822_v4, %v1752_v47  ;;  %v1759_v10 = vmul.f32 %v4501_v5, %v4501_v5  ;;  %v3485_v4 = vpop.f32.mrf.mxu0 }
 0x1e3   : > { %v3408_v60 = vadd.f32 %v3407_v32, %v3406_v7  ;;  %v1753_v38 = vmul.f32 %v4492_v29, %v4492_v29  ;;  %v1664_v7 = vsel %vm1654_vm1, %v4492_v29, 0.0  ;;  %v4524_v27 = vadd.f32 %v5362_v2, %v5361_v52  ;;  %v5364_v32 = vld [vmem:[#allocation53_spill] sm:$0xff]  ;;  %v5367_v52 = vld [vmem:[#allocation47_spill] sm:$0xff] }
 0x1e4   : > { %v3409_v11 = vpop.f32.mrf.mxu1  ;;  %v1831_v47 = vadd.f32 %v4421_v17, %v1758_v13  ;;  %v1680_v34 = vadd.f32 %v4424_v40, %v4512_v44  ;;  %v1665_v17 = vadd.f32 %v1664_v7, %v1663_v31  ;;  %v1672_v13 = vadd.f32 %v1671_v22, %v4501_v5  ;;  %v1620_v22 = vpop.f32.mrf.mxu0 }
 0x1e5   : > { %v4514_v51 = vadd.f32 %v3408_v60, %v1610_v63  ;;  %v1824_v8 = vsel %vm1654_vm1, %v1753_v38, 0.0  ;;  %5363 = vst [vmem:[#allocation43_spill] sm:$0xff] %v4524_v27  ;;  %v5365_v63 = vld [vmem:[#allocation45_spill] sm:$0xff]  ;;  %v1689_v40 = vadd.f32 %v4433_v53, %v4524_v27  ;;  %v5369_v53 = vld [vmem:[#allocation48_spill] sm:$0xff] }
 0x1e6   : > { %v3410_v62 = vpop.f32.mrf.mxu1  ;;  %1817 = vadd.xlane.f32.xlu0 %v1816_v43  ;;  %v1825_v6 = vadd.f32 %v1824_v8, %v1823_v28  ;;  %v4529_v23 = vadd.f32 %v5365_v63, %v5364_v32  ;;  %v1765_v43 = vmul.f32 %v4512_v44, %v4512_v44  ;;  %v5366_v8 = vld [vmem:[#allocation56_spill] sm:$0xff]  ;;  %v1832_v63 = vadd.f32 %v1831_v47, %v1759_v10 }
 0x1e7   : > { %v3411_v58 = vadd.f32 %v3410_v62, %v3409_v11  ;;  %v1673_v60 = vsel %vm1654_vm1, %v4514_v51, 0.0  ;;  %v1760_v38 = vmul.f32 %v4514_v51, %v4514_v51  ;;  %v1799_v11 = vmul.f32 %v5358_v33, %v5358_v33 }
 0x1e8   : > { %v3412_v28 = vpop.f32.mrf.mxu1  ;;  %1826 = vadd.xlane.f32.xlu1 %v1825_v6  ;;  %v4544_v2 = vadd.f32 %v5367_v52, %v5366_v8  ;;  %v1772_v6 = vmul.f32 %v4524_v27, %v4524_v27  ;;  %v1674_v7 = vadd.f32 %v1673_v60, %v1672_v13  ;;  %v1766_v33 = vmul.f32 %v4529_v23, %v4529_v23  ;;  %v5370_v13 = vld [vmem:[#allocation60_spill] sm:$0xff] }
 0x1e9   : > { %v4546_v62 = vadd.f32 %v3482_v41, %v3411_v58  ;;  %v1833_v32 = vsel %vm1654_vm1, %v1760_v38, 0.0  ;;  %v5368_v38 = vld [vmem:[#allocation57_spill] sm:$0xff]  ;;  %v1681_v60 = vadd.f32 %v1680_v34, %v4529_v23  ;;  %v1840_v10 = vadd.f32 %v4430_v56, %v1765_v43 }
 0x1ea   : > { %v3413_v31 = vpop.f32.mrf.mxu1  ;;  %1666 = vadd.xlane.f32.xlu0 %v1665_v17  ;;  %v4561_v52 = vadd.f32 %v5369_v53, %v5368_v38  ;;  %v1834_v17 = vadd.f32 %v1833_v32, %v1832_v63  ;;  %v4565_v47 = vadd.f32 %v1883_v18, %v1799_v11  ;;  %v5373_v38 = vld [vmem:[#allocation59_spill] sm:$0xff]  ;;  %v5374_v53 = vld [vmem:[#allocation49_spill] sm:$0xff]  ;;  %v1690_v56 = vadd.f32 %v1689_v40, %v4544_v2 }
 0x1eb   : > { %v3414_v8 = vadd.f32 %v3413_v31, %v3412_v28  ;;  %v1682_v41 = vsel %vm1654_vm1, %v4546_v62, 0.0  ;;  %v1767_v58 = vmul.f32 %v4546_v62, %v4546_v62  ;;  %v1773_v28 = vmul.f32 %v4544_v2, %v4544_v2  ;;  %v5371_v31 = vld [vmem:[#allocation50_spill] sm:$0xff] }
 0x1ec   : > { %v3415_v46 = vpop.f32.mrf.mxu1  ;;  %1675 = vadd.xlane.f32.xlu1 %v1674_v7  ;;  %v4571_v42 = vadd.f32 %v5371_v31, %v5370_v13  ;;  %v4577_v30 = vadd.f32 %v5374_v53, %v5373_v38  ;;  %v1683_v34 = vadd.f32 %v1682_v41, %v1681_v60  ;;  %v3488_v7 = vpop.f32.mrf.mxu0  ;;  %v1849_v18 = vadd.f32 %v4435_v0, %v1772_v6  ;;  %v5375_v0 = vld [vmem:[#allocation62_spill] sm:$0xff]  ;;  %v5376_v6 = vld [vmem:[#allocation52_spill] sm:$0xff]  ;;  %v5377_v38 = vld [vmem:[#allocation41_spill] sm:$0xff] }
 0x1ed   : > { %v4573_v27 = vadd.f32 %v3414_v8, %v1620_v22  ;;  %v1842_v63 = vsel %vm1654_vm1, %v1767_v58, 0.0  ;;  %v1698_v8 = vadd.f32 %v4440_v9, %v4561_v52  ;;  %v1779_v41 = vmul.f32 %v4561_v52, %v4561_v52 }
 0x1ee   : > { %5372 = vst [vmem:[#allocation51_spill] sm:$0xff] %v4571_v42  ;;  %v3416_v32 = vpop.f32.mrf.mxu1  ;;  %1835 = vadd.xlane.f32.xlu0 %v1834_v17  ;;  %v1841_v60 = vadd.f32 %v1840_v10, %v1766_v33  ;;  %v4594_v13 = vadd.f32 %v5376_v6, %v5375_v0  ;;  %v1732_v9 = vadd.f32 %v4380_v20, %v5377_v38  ;;  %v1630_v33 = vpop.f32.mrf.mxu0  ;;  %v5379_v20 = vld [vmem:[#allocation55_spill] sm:$0xff] }
 0x1ef   : > { %v3417_v43 = vadd.f32 %v3416_v32, %v3415_v46  ;;  %v1691_v11 = vsel %vm1654_vm1, %v4573_v27, 0.0  ;;  %v1774_v22 = vmul.f32 %v4573_v27, %v4573_v27  ;;  %v1707_v46 = vadd.f32 %v4453_v39, %v4571_v42 }
 0x1f0   : > { %v3418_v17 = vpop.f32.mrf.mxu1  ;;  %1684 = vadd.xlane.f32.xlu1 %v1683_v34  ;;  %v1692_v40 = vadd.f32 %v1691_v11, %v1690_v56  ;;  %v1786_v53 = vmul.f32 %v4571_v42, %v4571_v42  ;;  %v1843_v10 = vadd.f32 %v1842_v63, %v1841_v60  ;;  %v1850_v34 = vadd.f32 %v1849_v18, %v1773_v28  ;;  %v5378_v11 = vld [vmem:[#allocation63_spill] sm:$0xff] }
 0x1f1   : > { %v4596_v58 = vadd.f32 %v3485_v4, %v3417_v43  ;;  %v1851_v31 = vsel %vm1654_vm1, %v1774_v22, 0.0  ;;  %v1780_v39 = vmul.f32 %v4577_v30, %v4577_v30  ;;  %v4611_v22 = vadd.f32 %v5379_v20, %v5378_v11  ;;  %v5381_v11 = vld [vmem:[#allocation58_spill] sm:$0xff] }
 0x1f2   : > { %v3419_v32 = vpop.f32.mrf.mxu1  ;;  %1693 = vadd.xlane.f32.xlu0 %v1692_v40  ;;  %v1852_v40 = vadd.f32 %v1851_v31, %v1850_v34  ;;  %v1699_v63 = vadd.f32 %v1698_v8, %v4577_v30  ;;  %v1858_v28 = vadd.f32 %v4449_v36, %v1779_v41  ;;  %v1805_v18 = vmul.f32 %v5377_v38, %v5377_v38  ;;  %v5383_v31 = vld [vmem:[#allocation61_spill] sm:$0xff]  ;;  %v3491_v41 = vpop.f32.mrf.mxu0 }
 0x1f3   : > { %v3420_v56 = vadd.f32 %v3419_v32, %v3418_v17  ;;  %v1700_v4 = vsel %vm1654_vm1, %v4596_v58, 0.0  ;;  %v1781_v43 = vmul.f32 %v4596_v58, %v4596_v58  ;;  %v1787_v17 = vmul.f32 %v4594_v13, %v4594_v13  ;;  %v5380_v32 = vld [vmem:[#allocation65_spill] sm:$0xff] }
 0x1f4   : > { %v3421_v0 = vpop.f32.mrf.mxu1  ;;  %1844 = vadd.xlane.f32.xlu1 %v1843_v10  ;;  %v1708_v6 = vadd.f32 %v1707_v46, %v4594_v13  ;;  %v4624_v20 = vadd.f32 %v5381_v11, %v5380_v32  ;;  %v5382_v10 = vld [vmem:[#allocation66_spill] sm:$0xff]  ;;  %v1701_v36 = vadd.f32 %v1700_v4, %v1699_v63  ;;  %v1867_v38 = vadd.f32 %v4484_v61, %v1786_v53  ;;  %v5384_v53 = vld [vmem:[#allocation64_spill] sm:$0xff] }
 0x1f5   : > { %v4619_v60 = vadd.f32 %v3420_v56, %v1630_v33  ;;  %v4628_v34 = vadd.f32 %v5383_v31, %v5382_v10  ;;  %v1860_v46 = vsel %vm1654_vm1, %v1781_v43, 0.0  ;;  %v1716_v32 = vadd.f32 %v4489_v26, %v4611_v22 }
 0x1f6   : > { %v3422_v8 = vpop.f32.mrf.mxu1  ;;  %1853 = vadd.xlane.f32.xlu0 %v1852_v40  ;;  %v1793_v11 = vmul.f32 %v4611_v22, %v4611_v22  ;;  %v1859_v63 = vadd.f32 %v1858_v28, %v1780_v39  ;;  %v1892_v61 = vadd.f32 %v4384_v35, %v1805_v18  ;;  %v1868_v28 = vadd.f32 %v1867_v38, %v1787_v17  ;;  %v5386_v17 = vld [vmem:[#allocation42_spill] sm:$0xff] }
 0x1f7   : > { %v3423_v42 = vadd.f32 %v3422_v8, %v3421_v0  ;;  %v1709_v33 = vsel %vm1654_vm1, %v4619_v60, 0.0  ;;  %v1788_v56 = vmul.f32 %v4619_v60, %v4619_v60  ;;  %v4643_v0 = vadd.f32 %v5384_v53, %v4389_v57 }
 0x1f8   : > { %v3424_v40 = vpop.f32.mrf.mxu1  ;;  %1702 = vadd.xlane.f32.xlu1 %v1701_v36  ;;  %v1710_v4 = vadd.f32 %v1709_v33, %v1708_v6  ;;  %v1725_v26 = vadd.f32 %v4505_v55, %v4628_v34  ;;  %v1800_v31 = vmul.f32 %v4628_v34, %v4628_v34  ;;  %v1640_v6 = vpop.f32.mrf.mxu0  ;;  %v1861_v39 = vadd.f32 %v1860_v46, %v1859_v63  ;;  %v5385_v55 = vld [vmem:[#allocation67_spill] sm:$0xff] }
 0x1f9   : > { %v4645_v43 = vadd.f32 %v3488_v7, %v3423_v42  ;;  %v1869_v10 = vsel %vm1654_vm1, %v1788_v56, 0.0  ;;  %v1794_v35 = vmul.f32 %v4624_v20, %v4624_v20  ;;  %v4660_v18 = vadd.f32 %v5385_v55, %v4398_v49 }
 0x1fa   : > { %v3425_v8 = vpop.f32.mrf.mxu1  ;;  %1711 = vadd.xlane.f32.xlu0 %v1710_v4  ;;  %v1870_v33 = vadd.f32 %v1869_v10, %v1868_v28  ;;  %v1717_v46 = vadd.f32 %v1716_v32, %v4624_v20  ;;  %v1876_v38 = vadd.f32 %v4495_v25, %v1793_v11  ;;  %v1733_v56 = vadd.f32 %v1732_v9, %v5386_v17 }
 0x1fb   : > { %v3426_v57 = vadd.f32 %v3425_v8, %v3424_v40  ;;  %v1718_v42 = vsel %vm1654_vm1, %v4645_v43, 0.0  ;;  %v1795_v7 = vmul.f32 %v4645_v43, %v4645_v43  ;;  %v1806_v40 = vmul.f32 %v5386_v17, %v5386_v17 }
 0x1fc   : > { %v3427_v36 = vpop.f32.mrf.mxu1  ;;  %1862 = vadd.xlane.f32.xlu1 %v1861_v39  ;;  %v1801_v4 = vmul.f32 %v4643_v0, %v4643_v0  ;;  %v4673_v49 = vadd.f32 %v4400_v45, %v4413_v16  ;;  %v1719_v10 = vadd.f32 %v1718_v42, %v1717_v46  ;;  %v1726_v32 = vadd.f32 %v1725_v26, %v4643_v0 }
 0x1fd   : > { %v4669_v63 = vadd.f32 %v3426_v57, %v1640_v6  ;;  %v1885_v25 = vadd.f32 %v4565_v47, %v1800_v31  ;;  %v1878_v8 = vsel %vm1654_vm1, %v1795_v7, 0.0  ;;  %v1734_v39 = vadd.f32 %v1733_v56, %v4660_v18 }
 0x1fe   : > { %v3428_v53 = vpop.f32.mrf.mxu1  ;;  %1871 = vadd.xlane.f32.xlu0 %v1870_v33  ;;  %v1807_v45 = vmul.f32 %v4660_v18, %v4660_v18  ;;  %v1877_v28 = vadd.f32 %v1876_v38, %v1794_v35  ;;  %v1893_v31 = vadd.f32 %v1892_v61, %v1806_v40  ;;  %v1808_v7 = vmul.f32 %v4673_v49, %v4673_v49 }
 0x1ff   : > { %v3429_v9 = vadd.f32 %v3428_v53, %v3427_v36  ;;  %v1727_v11 = vsel %vm1654_vm1, %v4669_v63, 0.0  ;;  %v1802_v6 = vmul.f32 %v4669_v63, %v4669_v63  ;;  %v1886_v42 = vadd.f32 %v1885_v25, %v1801_v4 }
 0x200   : > { %1720 = vadd.xlane.f32.xlu1 %v1719_v10  ;;  %v1728_v16 = vadd.f32 %v1727_v11, %v1726_v32  ;;  %v1879_v57 = vadd.f32 %v1878_v8, %v1877_v28  ;;  %v1894_v35 = vadd.f32 %v1893_v31, %v1807_v45  ;;  %v3733_v46 = vmov 0  }
 0x201   : > { %v4685_v26 = vadd.f32 %v3491_v41, %v3429_v9  ;;  %v1887_v47 = vsel %vm1654_vm1, %v1802_v6, 0.0  ;;  %v1735_v41 = vadd.f32 %v1734_v39, %v4673_v49  ;;  %3605 = vset.pattern.permute.xlu0 %v3733_v46  ;;  %3606 = vset.pattern.permute.xlu1 %v3733_v46 }
 0x202   : > { %1729 = vadd.xlane.f32.xlu0 %v1728_v16  ;;  %v1888_v33 = vadd.f32 %v1887_v47, %v1886_v42  ;;  %v1895_v56 = vadd.f32 %v1894_v35, %v1808_v7 }
 0x203   : > { %v1736_v55 = vsel %vm1654_vm1, %v4685_v26, 0.0  ;;  %v1809_v36 = vmul.f32 %v4685_v26, %v4685_v26 }
 0x204   : > { %1880 = vadd.xlane.f32.xlu1 %v1879_v57  ;;  %v1737_v61 = vadd.f32 %v1736_v55, %v1735_v41 }
 0x205   : > { %v1896_v38 = vsel %vm1654_vm1, %v1809_v36, 0.0 }
 0x206   : > { %1889 = vadd.xlane.f32.xlu0 %v1888_v33  ;;  %v1897_v40 = vadd.f32 %v1896_v38, %v1895_v56 }
 0x208   : > { %1738 = vadd.xlane.f32.xlu1 %v1737_v61 }
 0x20c   : > { %1898 = vadd.xlane.f32.xlu1 %v1897_v40 }
 0x26b   : > { %v1658_v4 = vpop.xlane.xlu0 %1657 }
 0x26c   : > { %v1900_v53 = vmul.f32 0.0012755102, %v1658_v4 }
 0x26e   : > { %v1920_v32 = vmul.f32 %v1900_v53, %v1900_v53 }
 0x26f   : > { %v1818_v10 = vpop.xlane.xlu0 %1817 }
 0x270   : > { %v1910_v25 = vmul.f32 0.0012755102, %v1818_v10 }
 0x271   : > { %v1827_v9 = vpop.xlane.xlu1 %1826 }
 0x272   : > { %v1930_v11 = vsub.f32 %v1910_v25, %v1920_v32  ;;  %v1911_v16 = vmul.f32 0.0012755102, %v1827_v9 }
 0x273   : > { %v1667_v8 = vpop.xlane.xlu0 %1666 }
 0x274   : > { %v1950_v6 = vadd.f32 1e-05, %v1930_v11  ;;  %v1901_v39 = vmul.f32 0.0012755102, %v1667_v8  ;;  %v1940_v8 = vld [vmem:[%s5256_s3] sm:$0xff] }
 0x275   : > { %v1676_v45 = vpop.xlane.xlu1 %1675 }
 0x276   : > { %3611 = vrsqrt.f32 %v1950_v6  ;;  %v1921_v28 = vmul.f32 %v1901_v39, %v1901_v39  ;;  %v4696_v47 = vmul.f32 0.0012755102, %v1676_v45 }
 0x277   : > { %v1836_v31 = vpop.xlane.xlu0 %1835 }
 0x278   : > { %v1931_v57 = vsub.f32 %v1911_v16, %v1921_v28  ;;  %v1922_v42 = vmul.f32 %v4696_v47, %v4696_v47  ;;  %v1912_v7 = vmul.f32 0.0012755102, %v1836_v31 }
 0x279   : > { %v1685_v55 = vpop.xlane.xlu1 %1684 }
 0x27a   : > { %v1951_v36 = vadd.f32 1e-05, %v1931_v57  ;;  %v1932_v33 = vsub.f32 %v1912_v7, %v1922_v42  ;;  %v4700_v41 = vmul.f32 0.0012755102, %v1685_v55  ;;  %v1941_v55 = vld [vmem:[%s5256_s3 + $0x8] sm:$0xff] }
 0x27b   : > { %v1694_v35 = vpop.xlane.xlu0 %1693 }
 0x27c   : > { %3613 = vrsqrt.f32 %v1951_v36  ;;  %v1952_v46 = vadd.f32 1e-05, %v1932_v33  ;;  %v1923_v38 = vmul.f32 %v4700_v41, %v4700_v41  ;;  %v4704_v40 = vmul.f32 0.0012755102, %v1694_v35 }
 0x27d   : > { %v1845_v61 = vpop.xlane.xlu1 %1844 }
 0x27e   : > { %v1913_v56 = vmul.f32 0.0012755102, %v1845_v61  ;;  %3615 = vrsqrt.f32 %v1952_v46  ;;  %v1924_v45 = vmul.f32 %v4704_v40, %v4704_v40 }
 0x27f   : > { %v1854_v4 = vpop.xlane.xlu0 %1853 }
 0x280   : > { %v1933_v10 = vsub.f32 %v1913_v56, %v1923_v38  ;;  %v1914_v32 = vmul.f32 0.0012755102, %v1854_v4 }
 0x281   : > { %v1703_v25 = vpop.xlane.xlu1 %1702 }
 0x282   : > { %v1953_v9 = vadd.f32 1e-05, %v1933_v10  ;;  %v4706_v11 = vmul.f32 0.0012755102, %v1703_v25  ;;  %v1934_v28 = vsub.f32 %v1914_v32, %v1924_v45  ;;  %v1981_v25 = vld [vmem:[%s5257_s4 + $0x8] sm:$0xff] }
 0x283   : > { %v3612_v6 = vpop.eup %3611  ;;  %v1712_v16 = vpop.xlane.xlu0 %1711 }
 0x284   : > { %3617 = vrsqrt.f32 %v1953_v9  ;;  %v1970_v57 = vmul.f32 %v3612_v6, %v1940_v8  ;;  %v1925_v42 = vmul.f32 %v4706_v11, %v4706_v11  ;;  %v1954_v46 = vadd.f32 1e-05, %v1934_v28  ;;  %v1980_v9 = vld [vmem:[%s5257_s4] sm:$0xff] }
 0x285   : > { %v1863_v31 = vpop.xlane.xlu1 %1862  ;;  %v4720_v32 = vmul.f32 0.0012755102, %v1712_v16 }
 0x286   : > { %v1915_v7 = vmul.f32 0.0012755102, %v1863_v31  ;;  %2012 = vperm.xlu0 %3605, %v1970_v57   ;;  %v1990_v10 = vmul.f32 %v1970_v57, %v1900_v53 }
 0x287   : > { %v1872_v36 = vpop.xlane.xlu0 %1871 }
 0x288   : > { %v1935_v33 = vsub.f32 %v1915_v7, %v1925_v42  ;;  %v1916_v6 = vmul.f32 0.0012755102, %v1872_v36  ;;  %v2000_v42 = vsub.f32 %v1980_v9, %v1990_v10  ;;  %v1942_v7 = vld [vmem:[%s5256_s3 + $0x10] sm:$0xff]  ;;  %v1983_v9 = vld [vmem:[%s5257_s4 + $0x18] sm:$0xff] }
 0x289   : > { %v3614_v35 = vpop.eup %3613  ;;  %v1721_v61 = vpop.xlane.xlu1 %1720 }
 0x28a   : > { %v1971_v38 = vmul.f32 %v3614_v35, %v1941_v55  ;;  %v1955_v56 = vadd.f32 1e-05, %v1935_v33  ;;  %v4718_v4 = vmul.f32 0.0012755102, %v1721_v61  ;;  %v1943_v55 = vld [vmem:[%s5256_s3 + $0x18] sm:$0xff] }
 0x28b   : > { %v1730_v45 = vpop.xlane.xlu0 %1729  ;;  %v3616_v31 = vpop.eup %3615 }
 0x28c   : > { %v1991_v8 = vmul.f32 %v1971_v38, %v1901_v39  ;;  %3619 = vrsqrt.f32 %v1955_v56  ;;  %2017 = vperm.xlu1 %3606, %v1971_v38   ;;  %v1927_v53 = vmul.f32 %v4718_v4, %v4718_v4  ;;  %v1926_v39 = vmul.f32 %v4720_v32, %v4720_v32 }
 0x28d   : > { %3621 = vrsqrt.f32 %v1954_v46  ;;  %v1881_v28 = vpop.xlane.xlu1 %1880  ;;  %v1972_v61 = vmul.f32 %v3616_v31, %v1942_v7 }
 0x28e   : > { %v1917_v16 = vmul.f32 0.0012755102, %v1881_v28  ;;  %v2001_v57 = vsub.f32 %v1981_v25, %v1991_v8  ;;  %v1936_v35 = vsub.f32 %v1916_v6, %v1926_v39  ;;  %v4741_v8 = vmul.f32 0.0012755102, %v1730_v45  ;;  %v1982_v39 = vld [vmem:[%s5257_s4 + $0x10] sm:$0xff]  ;;  %v1945_v45 = vld [vmem:[%s5256_s3 + $0x28] sm:$0xff] }
 0x28f   : > { %v1890_v25 = vpop.xlane.xlu0 %1889  ;;  %v1992_v6 = vmul.f32 %v1972_v61, %v4696_v47 }
 0x290   : > { %v1937_v36 = vsub.f32 %v1917_v16, %v1927_v53  ;;  %2137 = vperm.xlu0 %3605, %v2001_v57   ;;  %2132 = vperm.xlu1 %3606, %v2000_v42   ;;  %v1956_v53 = vadd.f32 1e-05, %v1936_v35  ;;  %v1918_v57 = vmul.f32 0.0012755102, %v1890_v25  ;;  %v1944_v25 = vld [vmem:[%s5256_s3 + $0x20] sm:$0xff] }
 0x291   : > { %v3618_v33 = vpop.eup %3617  ;;  %v1739_v46 = vpop.xlane.xlu1 %1738 }
 0x292   : > { %v1957_v38 = vadd.f32 1e-05, %v1937_v36  ;;  %v1909_v56 = vmul.f32 0.0012755102, %v1739_v46  ;;  %v1973_v10 = vmul.f32 %v3618_v33, %v1943_v55  ;;  %v1928_v55 = vmul.f32 %v4741_v8, %v4741_v8 }
 0x293   : > { %v2002_v46 = vsub.f32 %v1982_v39, %v1992_v6 }
 0x294   : > { %3623 = vrsqrt.f32 %v1957_v38  ;;  %2022 = vperm.xlu1 %3606, %v1972_v61   ;;  %v1993_v28 = vmul.f32 %v1973_v10, %v4700_v41  ;;  %v1929_v31 = vmul.f32 %v1909_v56, %v1909_v56  ;;  %v1938_v33 = vsub.f32 %v1918_v57, %v1928_v55  ;;  %v1985_v38 = vld [vmem:[%s5257_s4 + $0x28] sm:$0xff] }
 0x295   : > { %v1899_v16 = vpop.xlane.xlu1 %1898  ;;  %3625 = vrsqrt.f32 %v1956_v53 }
 0x296   : > { %v1919_v42 = vmul.f32 0.0012755102, %v1899_v16  ;;  %v2003_v7 = vsub.f32 %v1983_v9, %v1993_v28  ;;  %v1947_v16 = vld [vmem:[%s5256_s3 + $0x38] sm:$0xff] }
 0x298   : > { %v1939_v41 = vsub.f32 %v1919_v42, %v1929_v31  ;;  %2147 = vperm.xlu0 %3605, %v2003_v7   ;;  %2027 = vperm.xlu1 %3606, %v1973_v10   ;;  %v1958_v10 = vadd.f32 1e-05, %v1938_v33  ;;  %v1987_v42 = vld [vmem:[%s5257_s4 + $0x38] sm:$0xff] }
 0x299   : > { %v3620_v36 = vpop.eup %3619 }
 0x29a   : > { %v3622_v47 = vpop.eup %3621  ;;  %v1959_v35 = vadd.f32 1e-05, %v1939_v41  ;;  %v1975_v61 = vmul.f32 %v3620_v36, %v1945_v45  ;;  %v1946_v41 = vld [vmem:[%s5256_s3 + $0x30] sm:$0xff] }
 0x29b   : > { %v1974_v53 = vmul.f32 %v3622_v47, %v1944_v25  ;;  %v1986_v25 = vld [vmem:[%s5257_s4 + $0x30] sm:$0xff] }
 0x29c   : > { %3627 = vrsqrt.f32 %v1959_v35  ;;  %2142 = vperm.xlu1 %3606, %v2002_v46   ;;  %v1995_v9 = vmul.f32 %v1975_v61, %v4706_v11  ;;  %v1984_v11 = vld [vmem:[%s5257_s4 + $0x20] sm:$0xff] }
 0x29d   : > { %3629 = vrsqrt.f32 %v1958_v10  ;;  %v1994_v31 = vmul.f32 %v1974_v53, %v4704_v40  ;;  %v1949_v40 = vld [vmem:[%s5256_s3 + $0x48] sm:$0xff] }
 0x29e   : > { %v2005_v28 = vsub.f32 %v1985_v38, %v1995_v9  ;;  %v1948_v9 = vld [vmem:[%s5256_s3 + $0x40] sm:$0xff] }
 0x29f   : > { %v2004_v55 = vsub.f32 %v1984_v11, %v1994_v31  ;;  %v5387_v31 = vld [vmem:[#allocation10_spill] sm:$0xff]  ;;  %v5388_v11 = vld [vmem:[#allocation11_spill] sm:$0xff] }
 0x2a0   : > { %2157 = vperm.xlu0 %3605, %v2005_v28   ;;  %2032 = vperm.xlu1 %3606, %v1974_v53  }
 0x2a1   : > { %v3624_v6 = vpop.eup %3623 }
 0x2a2   : > { %v1977_v57 = vmul.f32 %v3624_v6, %v1947_v16  ;;  %v3626_v39 = vpop.eup %3625 }
 0x2a3   : > { %v1976_v47 = vmul.f32 %v3626_v39, %v1946_v41  ;;  %v5390_v41 = vld [vmem:[#allocation12_spill] sm:$0xff] }
 0x2a4   : > { %2037 = vperm.xlu1 %3606, %v1975_v61   ;;  %v1997_v7 = vmul.f32 %v1977_v57, %v4718_v4  ;;  %v1989_v4 = vld [vmem:[%s5257_s4 + $0x48] sm:$0xff] }
 0x2a5   : > { %v1996_v61 = vmul.f32 %v1976_v47, %v4720_v32  ;;  %v1988_v32 = vld [vmem:[%s5257_s4 + $0x40] sm:$0xff] }
 0x2a6   : > { %v2007_v45 = vsub.f32 %v1987_v42, %v1997_v7 }
 0x2a7   : > { %v2006_v10 = vsub.f32 %v1986_v25, %v1996_v61 }
 0x2a8   : > { %2167 = vperm.xlu0 %3605, %v2007_v45   ;;  %2152 = vperm.xlu1 %3606, %v2004_v55  }
 0x2a9   : > { %v3628_v36 = vpop.eup %3627 }
 0x2aa   : > { %v1979_v33 = vmul.f32 %v3628_v36, %v1949_v40  ;;  %v3630_v38 = vpop.eup %3629  ;;  %v5391_v36 = vld [vmem:[#allocation13_spill] sm:$0xff] }
 0x2ab   : > { %v1978_v28 = vmul.f32 %v3630_v38, %v1948_v9 }
 0x2ac   : > { %2042 = vperm.xlu1 %3606, %v1976_v47   ;;  %2057 = vperm.xlu0 %3605, %v1979_v33   ;;  %v1999_v35 = vmul.f32 %v1979_v33, %v1909_v56 }
 0x2ad   : > { %v1998_v53 = vmul.f32 %v1978_v28, %v4741_v8 }
 0x2ae   : > { %v2009_v46 = vsub.f32 %v1989_v4, %v1999_v35 }
 0x2af   : > { %v2008_v56 = vsub.f32 %v1988_v32, %v1998_v53 }
 0x2b0   : > { %2047 = vperm.xlu1 %3606, %v1977_v57   ;;  %2177 = vperm.xlu0 %3605, %v2009_v46   ;;  %v5389_v57 = vld [vmem:[#allocation30_spill] sm:$0xff] }
 0x2b4   : > { %2162 = vperm.xlu1 %3606, %v2006_v10  }
 0x2b8   : > { %2052 = vperm.xlu1 %3606, %v1978_v28  }
 0x2bc   : > { %2172 = vperm.xlu1 %3606, %v2008_v56  }
 0x301   : > { %v2013_v16 = vpop.permute.xlu0 %2012 }
 0x302   : > { %v2060_v42 = vmul.f32 %v2013_v16, %v5387_v31  ;;  %v2061_v7 = vmul.f32 %v2013_v16, %v5388_v11  ;;  %v2062_v39 = vmul.f32 %v2013_v16, %v5389_v57  ;;  %v2063_v45 = vmul.f32 %v2013_v16, %v4191_v54 }
 0x303   : > { %v2064_v55 = vmul.f32 %v2013_v16, %v4411_v15  ;;  %v2065_v8 = vmul.f32 %v2013_v16, %v4446_v19  ;;  %v2066_v35 = vmul.f32 %v2013_v16, %v4469_v48 }
 0x307   : > { %v2018_v6 = vpop.permute.xlu1 %2017 }
 0x308   : > { %v2067_v40 = vmul.f32 %v2018_v6, %v5390_v41  ;;  %v2068_v47 = vmul.f32 %v2018_v6, %v5391_v36  ;;  %v2069_v33 = vmul.f32 %v2018_v6, %v4193_v3  ;;  %v2070_v4 = vmul.f32 %v2018_v6, %v4195_v21  ;;  %v5395_v41 = vld [vmem:[#allocation17_spill] sm:$0xff]  ;;  %v5396_v36 = vld [vmem:[#allocation31_spill] sm:$0xff] }
 0x309   : > { %v2071_v46 = vmul.f32 %v2018_v6, %v4428_v12  ;;  %v2072_v61 = vmul.f32 %v2018_v6, %v4463_v59  ;;  %v2073_v54 = vmul.f32 %v2018_v6, %v4492_v29  ;;  %v5392_v6 = vld [vmem:[#allocation14_spill] sm:$0xff] }
 0x30b   : > { %v2138_v38 = vpop.permute.xlu0 %2137  ;;  %v2133_v15 = vpop.permute.xlu1 %2132 }
 0x30c   : > { %v2187_v25 = vadd.f32 %v2138_v38, %v2067_v40  ;;  %v2188_v19 = vadd.f32 %v2138_v38, %v2068_v47  ;;  %v2189_v9 = vadd.f32 %v2138_v38, %v2069_v33  ;;  %v2190_v10 = vadd.f32 %v2138_v38, %v2070_v4 }
 0x30d   : > { %v2191_v28 = vadd.f32 %v2138_v38, %v2071_v46  ;;  %v2192_v53 = vadd.f32 %v2138_v38, %v2072_v61  ;;  %v2193_v32 = vadd.f32 %v2138_v38, %v2073_v54  ;;  %v2180_v3 = vadd.f32 %v2133_v15, %v2060_v42  ;;  %v5393_v42 = vld [vmem:[#allocation15_spill] sm:$0xff] }
 0x30e   : > { %2257 = vst [vmem:[#allocation2 + $0x38] sm:$0xff] %v2187_v25  ;;  %2258 = vst [vmem:[#allocation2 + $0x40] sm:$0xff] %v2188_v19  ;;  %v2181_v21 = vadd.f32 %v2133_v15, %v2061_v7  ;;  %v2182_v12 = vadd.f32 %v2133_v15, %v2062_v39  ;;  %v2183_v48 = vadd.f32 %v2133_v15, %v2063_v45 }
 0x30f   : > { %2259 = vst [vmem:[#allocation2 + $0x48] sm:$0xff] %v2189_v9  ;;  %2260 = vst [vmem:[#allocation2 + $0x50] sm:$0xff] %v2190_v10  ;;  %v2184_v59 = vadd.f32 %v2133_v15, %v2064_v55  ;;  %v2185_v29 = vadd.f32 %v2133_v15, %v2065_v8  ;;  %v2186_v56 = vadd.f32 %v2133_v15, %v2066_v35  ;;  %v2023_v16 = vpop.permute.xlu1 %2022  ;;  %v5394_v55 = vld [vmem:[#allocation16_spill] sm:$0xff] }
 0x310   : > { %2261 = vst [vmem:[#allocation2 + $0x58] sm:$0xff] %v2191_v28  ;;  %2262 = vst [vmem:[#allocation2 + $0x60] sm:$0xff] %v2192_v53  ;;  %v2074_v31 = vmul.f32 %v2023_v16, %v5392_v6  ;;  %v2075_v11 = vmul.f32 %v2023_v16, %v5393_v42  ;;  %v2076_v7 = vmul.f32 %v2023_v16, %v4197_v37  ;;  %v5401_v42 = vld [vmem:[#allocation20_spill] sm:$0xff] }
 0x311   : > { %2263 = vst.msk [vmem:[#allocation2 + $0x68] sm:$0xff] %vm1654_vm1, %v2193_v32  ;;  %2250 = vst [vmem:[#allocation2] sm:$0xff] %v2180_v3  ;;  %v2077_v57 = vmul.f32 %v2023_v16, %v4199_v1  ;;  %v2078_v39 = vmul.f32 %v2023_v16, %v4475_v50  ;;  %v2079_v4 = vmul.f32 %v2023_v16, %v4501_v5  ;;  %v5397_v32 = vld [vmem:[#allocation18_spill] sm:$0xff] }
 0x312   : > { %2251 = vst [vmem:[#allocation2 + $0x8] sm:$0xff] %v2181_v21  ;;  %2252 = vst [vmem:[#allocation2 + $0x10] sm:$0xff] %v2182_v12  ;;  %v2080_v15 = vmul.f32 %v2023_v16, %v4514_v51  ;;  %v5398_v12 = vld [vmem:[#allocation19_spill] sm:$0xff] }
 0x313   : > { %2253 = vst [vmem:[#allocation2 + $0x18] sm:$0xff] %v2183_v48  ;;  %2254 = vst [vmem:[#allocation2 + $0x20] sm:$0xff] %v2184_v59  ;;  %v2028_v45 = vpop.permute.xlu1 %2027  ;;  %v2148_v35 = vpop.permute.xlu0 %2147  ;;  %v5400_v16 = vld [vmem:[#allocation43_spill] sm:$0xff] }
 0x314   : > { %2255 = vst [vmem:[#allocation2 + $0x28] sm:$0xff] %v2185_v29  ;;  %2256 = vst.msk [vmem:[#allocation2 + $0x30] sm:$0xff] %vm1654_vm1, %v2186_v56  ;;  %v2081_v8 = vmul.f32 %v2028_v45, %v5394_v55  ;;  %v2082_v40 = vmul.f32 %v2028_v45, %v5395_v41  ;;  %v2083_v47 = vmul.f32 %v2028_v45, %v5396_v36  ;;  %v5399_v29 = vld [vmem:[#allocation32_spill] sm:$0xff]  ;;  %v5404_v55 = vld [vmem:[#allocation34_spill] sm:$0xff] }
 0x315   : > { %v2084_v33 = vmul.f32 %v2028_v45, %v4203_v14  ;;  %v2085_v46 = vmul.f32 %v2028_v45, %v4512_v44  ;;  %v2086_v37 = vmul.f32 %v2028_v45, %v4529_v23  ;;  %v2087_v1 = vmul.f32 %v2028_v45, %v4546_v62 }
 0x316   : > { %v2201_v61 = vadd.f32 %v2148_v35, %v2081_v8  ;;  %v2202_v50 = vadd.f32 %v2148_v35, %v2082_v40  ;;  %v2203_v54 = vadd.f32 %v2148_v35, %v2083_v47 }
 0x317   : > { %v2204_v38 = vadd.f32 %v2148_v35, %v2084_v33  ;;  %v2205_v25 = vadd.f32 %v2148_v35, %v2085_v46  ;;  %v2206_v19 = vadd.f32 %v2148_v35, %v2086_v37  ;;  %v2207_v9 = vadd.f32 %v2148_v35, %v2087_v1  ;;  %v2143_v10 = vpop.permute.xlu1 %2142 }
 0x318   : > { %2271 = vst [vmem:[#allocation2 + $0xa8] sm:$0xff] %v2201_v61  ;;  %2272 = vst [vmem:[#allocation2 + $0xb0] sm:$0xff] %v2202_v50  ;;  %v2194_v14 = vadd.f32 %v2143_v10, %v2074_v31  ;;  %v2195_v44 = vadd.f32 %v2143_v10, %v2075_v11  ;;  %v2196_v5 = vadd.f32 %v2143_v10, %v2076_v7  ;;  %v5402_v7 = vld [vmem:[#allocation21_spill] sm:$0xff] }
 0x319   : > { %2273 = vst [vmem:[#allocation2 + $0xb8] sm:$0xff] %v2203_v54  ;;  %2274 = vst [vmem:[#allocation2 + $0xc0] sm:$0xff] %v2204_v38  ;;  %v2197_v23 = vadd.f32 %v2143_v10, %v2077_v57  ;;  %v2198_v62 = vadd.f32 %v2143_v10, %v2078_v39  ;;  %v2199_v28 = vadd.f32 %v2143_v10, %v2079_v4  ;;  %v5403_v39 = vld [vmem:[#allocation33_spill] sm:$0xff] }
 0x31a   : > { %2275 = vst [vmem:[#allocation2 + $0xc8] sm:$0xff] %v2205_v25  ;;  %2276 = vst [vmem:[#allocation2 + $0xd0] sm:$0xff] %v2206_v19  ;;  %v2200_v53 = vadd.f32 %v2143_v10, %v2080_v15 }
 0x31b   : > { %2277 = vst.msk [vmem:[#allocation2 + $0xd8] sm:$0xff] %vm1654_vm1, %v2207_v9  ;;  %2264 = vst [vmem:[#allocation2 + $0x70] sm:$0xff] %v2194_v14  ;;  %v2033_v51 = vpop.permute.xlu1 %2032  ;;  %v2158_v21 = vpop.permute.xlu0 %2157  ;;  %v5405_v9 = vld [vmem:[#allocation22_spill] sm:$0xff]  ;;  %v5406_v14 = vld [vmem:[#allocation23_spill] sm:$0xff] }
 0x31c   : > { %2265 = vst [vmem:[#allocation2 + $0x78] sm:$0xff] %v2195_v44  ;;  %2266 = vst [vmem:[#allocation2 + $0x80] sm:$0xff] %v2196_v5  ;;  %v2088_v3 = vmul.f32 %v2033_v51, %v5397_v32  ;;  %v2089_v48 = vmul.f32 %v2033_v51, %v5398_v12  ;;  %v2090_v59 = vmul.f32 %v2033_v51, %v4205_v24  ;;  %v5407_v5 = vld [vmem:[#allocation35_spill] sm:$0xff]  ;;  %v5410_v32 = vld [vmem:[#allocation28_spill] sm:$0xff] }
 0x31d   : > { %2267 = vst [vmem:[#allocation2 + $0x88] sm:$0xff] %v2197_v23  ;;  %2268 = vst [vmem:[#allocation2 + $0x90] sm:$0xff] %v2198_v62  ;;  %v2091_v56 = vmul.f32 %v2033_v51, %v5399_v29  ;;  %v2092_v6 = vmul.f32 %v2033_v51, %v5400_v16  ;;  %v2093_v41 = vmul.f32 %v2033_v51, %v4544_v2  ;;  %v5408_v62 = vld [vmem:[#allocation36_spill] sm:$0xff] }
 0x31e   : > { %2269 = vst [vmem:[#allocation2 + $0x98] sm:$0xff] %v2199_v28  ;;  %2270 = vst.msk [vmem:[#allocation2 + $0xa0] sm:$0xff] %vm1654_vm1, %v2200_v53  ;;  %v2094_v46 = vmul.f32 %v2033_v51, %v4573_v27  ;;  %v5409_v53 = vld [vmem:[#allocation51_spill] sm:$0xff] }
 0x31f   : > { %v2038_v31 = vpop.permute.xlu1 %2037 }
 0x320   : > { %v2095_v11 = vmul.f32 %v2038_v31, %v5401_v42  ;;  %v2096_v57 = vmul.f32 %v2038_v31, %v5402_v7  ;;  %v2097_v45 = vmul.f32 %v2038_v31, %v5403_v39  ;;  %v2098_v8 = vmul.f32 %v2038_v31, %v5404_v55 }
 0x321   : > { %v2099_v40 = vmul.f32 %v2038_v31, %v4561_v52  ;;  %v2100_v36 = vmul.f32 %v2038_v31, %v4577_v30  ;;  %v2101_v24 = vmul.f32 %v2038_v31, %v4596_v58 }
 0x322   : > { %v2215_v47 = vadd.f32 %v2158_v21, %v2095_v11  ;;  %v2216_v33 = vadd.f32 %v2158_v21, %v2096_v57  ;;  %v2217_v4 = vadd.f32 %v2158_v21, %v2097_v45  ;;  %v2218_v35 = vadd.f32 %v2158_v21, %v2098_v8 }
 0x323   : > { %v2219_v37 = vadd.f32 %v2158_v21, %v2099_v40  ;;  %v2220_v1 = vadd.f32 %v2158_v21, %v2100_v36  ;;  %v2221_v61 = vadd.f32 %v2158_v21, %v2101_v24  ;;  %v4837_v50 = vpop.permute.xlu0 %2167  ;;  %v2153_v54 = vpop.permute.xlu1 %2152  ;;  %v5411_v21 = vld [vmem:[#allocation29_spill] sm:$0xff]  ;;  %v5413_v40 = vld [vmem:[#allocation24_spill] sm:$0xff] }
 0x324   : > { %2285 = vst [vmem:[#allocation2 + $0x118] sm:$0xff] %v2215_v47  ;;  %2286 = vst [vmem:[#allocation2 + $0x120] sm:$0xff] %v2216_v33  ;;  %v2208_v2 = vadd.f32 %v2153_v54, %v2088_v3  ;;  %v2209_v30 = vadd.f32 %v2153_v54, %v2089_v48  ;;  %v2210_v52 = vadd.f32 %v2153_v54, %v2090_v59  ;;  %v5412_v48 = vld [vmem:[#allocation41_spill] sm:$0xff] }
 0x325   : > { %2287 = vst [vmem:[#allocation2 + $0x128] sm:$0xff] %v2217_v4  ;;  %2288 = vst [vmem:[#allocation2 + $0x130] sm:$0xff] %v2218_v35  ;;  %v2211_v58 = vadd.f32 %v2153_v54, %v2091_v56  ;;  %v2212_v38 = vadd.f32 %v2153_v54, %v2092_v6  ;;  %v2213_v27 = vadd.f32 %v2153_v54, %v2093_v41 }
 0x326   : > { %2289 = vst [vmem:[#allocation2 + $0x138] sm:$0xff] %v2219_v37  ;;  %2290 = vst [vmem:[#allocation2 + $0x140] sm:$0xff] %v2220_v1  ;;  %v2214_v15 = vadd.f32 %v2153_v54, %v2094_v46 }
 0x327   : > { %2291 = vst.msk [vmem:[#allocation2 + $0x148] sm:$0xff] %vm1654_vm1, %v2221_v61  ;;  %2278 = vst [vmem:[#allocation2 + $0xe0] sm:$0xff] %v2208_v2  ;;  %v2058_v25 = vpop.permute.xlu0 %2057  ;;  %v2043_v19 = vpop.permute.xlu1 %2042 }
 0x328   : > { %2279 = vst [vmem:[#allocation2 + $0xe8] sm:$0xff] %v2209_v30  ;;  %2280 = vst [vmem:[#allocation2 + $0xf0] sm:$0xff] %v2210_v52  ;;  %v2102_v10 = vmul.f32 %v2043_v19, %v5405_v9  ;;  %v2103_v44 = vmul.f32 %v2043_v19, %v5406_v14  ;;  %v2104_v23 = vmul.f32 %v2043_v19, %v5407_v5 }
 0x329   : > { %2281 = vst [vmem:[#allocation2 + $0xf8] sm:$0xff] %v2211_v58  ;;  %2282 = vst [vmem:[#allocation2 + $0x100] sm:$0xff] %v2212_v38  ;;  %v2105_v28 = vmul.f32 %v2043_v19, %v5408_v62  ;;  %v2106_v51 = vmul.f32 %v2043_v19, %v5409_v53  ;;  %v2123_v3 = vmul.f32 %v2058_v25, %v5410_v32 }
 0x32a   : > { %2283 = vst [vmem:[#allocation2 + $0x108] sm:$0xff] %v2213_v27  ;;  %2284 = vst.msk [vmem:[#allocation2 + $0x110] sm:$0xff] %vm1654_vm1, %v2214_v15  ;;  %v2124_v12 = vmul.f32 %v2058_v25, %v5411_v21  ;;  %v2125_v59 = vmul.f32 %v2058_v25, %v5412_v48  ;;  %v2126_v29 = vmul.f32 %v2058_v25, %v5386_v17  ;;  %v5415_v17 = vld [vmem:[#allocation37_spill] sm:$0xff] }
 0x32b   : > { %v2107_v56 = vmul.f32 %v2043_v19, %v4594_v13  ;;  %v2127_v16 = vmul.f32 %v2058_v25, %v4660_v18  ;;  %v2128_v6 = vmul.f32 %v2058_v25, %v4673_v49  ;;  %v2129_v31 = vmul.f32 %v2058_v25, %v4685_v26  ;;  %v2178_v42 = vpop.permute.xlu0 %2177  ;;  %v2048_v11 = vpop.permute.xlu1 %2047  ;;  %v5414_v13 = vld [vmem:[#allocation25_spill] sm:$0xff]  ;;  %v5416_v26 = vld [vmem:[#allocation38_spill] sm:$0xff] }
 0x32c   : > { %v2243_v7 = vadd.f32 %v2178_v42, %v2123_v3  ;;  %v2244_v57 = vadd.f32 %v2178_v42, %v2124_v12  ;;  %v2245_v39 = vadd.f32 %v2178_v42, %v2125_v59  ;;  %v2246_v45 = vadd.f32 %v2178_v42, %v2126_v29 }
 0x32d   : > { %v2247_v55 = vadd.f32 %v2178_v42, %v2127_v16  ;;  %v2248_v8 = vadd.f32 %v2178_v42, %v2128_v6  ;;  %v2249_v41 = vadd.f32 %v2178_v42, %v2129_v31  ;;  %v2109_v36 = vmul.f32 %v2048_v11, %v5413_v40 }
 0x32e   : > { %2313 = vst [vmem:[#allocation2 + $0x1f8] sm:$0xff] %v2243_v7  ;;  %2314 = vst [vmem:[#allocation2 + $0x200] sm:$0xff] %v2244_v57  ;;  %v2110_v18 = vmul.f32 %v2048_v11, %v5414_v13  ;;  %v2111_v49 = vmul.f32 %v2048_v11, %v5415_v17  ;;  %v2112_v24 = vmul.f32 %v2048_v11, %v5416_v26 }
 0x32f   : > { %2315 = vst [vmem:[#allocation2 + $0x208] sm:$0xff] %v2245_v39  ;;  %2316 = vst [vmem:[#allocation2 + $0x210] sm:$0xff] %v2246_v45  ;;  %v2113_v47 = vmul.f32 %v2048_v11, %v4611_v22  ;;  %v2108_v33 = vmul.f32 %v2043_v19, %v4619_v60  ;;  %v2114_v4 = vmul.f32 %v2048_v11, %v4624_v20  ;;  %v2163_v37 = vpop.permute.xlu1 %2162  ;;  %v5418_v19 = vld [vmem:[#allocation27_spill] sm:$0xff] }
 0x330   : > { %2317 = vst [vmem:[#allocation2 + $0x218] sm:$0xff] %v2247_v55  ;;  %2318 = vst [vmem:[#allocation2 + $0x220] sm:$0xff] %v2248_v8  ;;  %v2115_v35 = vmul.f32 %v2048_v11, %v4645_v43  ;;  %v2229_v46 = vadd.f32 %v4837_v50, %v2109_v36  ;;  %v2230_v1 = vadd.f32 %v4837_v50, %v2110_v18 }
 0x331   : > { %2319 = vst.msk [vmem:[#allocation2 + $0x228] sm:$0xff] %vm1654_vm1, %v2249_v41  ;;  %v2231_v61 = vadd.f32 %v4837_v50, %v2111_v49  ;;  %v2232_v54 = vadd.f32 %v4837_v50, %v2112_v24  ;;  %v2233_v22 = vadd.f32 %v4837_v50, %v2113_v47  ;;  %v2234_v60 = vadd.f32 %v4837_v50, %v2114_v4 }
 0x332   : > { %v2235_v2 = vadd.f32 %v4837_v50, %v2115_v35  ;;  %2299 = vst [vmem:[#allocation2 + $0x188] sm:$0xff] %v2229_v46  ;;  %v2222_v30 = vadd.f32 %v2163_v37, %v2102_v10  ;;  %v2223_v20 = vadd.f32 %v2163_v37, %v2103_v44  ;;  %2300 = vst [vmem:[#allocation2 + $0x190] sm:$0xff] %v2230_v1  ;;  %v5417_v50 = vld [vmem:[#allocation26_spill] sm:$0xff]  ;;  %v5419_v10 = vld [vmem:[#allocation39_spill] sm:$0xff] }
 0x333   : > { %2301 = vst [vmem:[#allocation2 + $0x198] sm:$0xff] %v2231_v61  ;;  %2302 = vst [vmem:[#allocation2 + $0x1a0] sm:$0xff] %v2232_v54  ;;  %v2224_v43 = vadd.f32 %v2163_v37, %v2104_v23  ;;  %v2225_v52 = vadd.f32 %v2163_v37, %v2105_v28  ;;  %v2226_v58 = vadd.f32 %v2163_v37, %v2106_v51  ;;  %v2053_v15 = vpop.permute.xlu1 %2052  ;;  %v5420_v44 = vld [vmem:[#allocation40_spill] sm:$0xff] }
 0x334   : > { %2303 = vst [vmem:[#allocation2 + $0x1a8] sm:$0xff] %v2233_v22  ;;  %v2227_v38 = vadd.f32 %v2163_v37, %v2107_v56  ;;  %2304 = vst [vmem:[#allocation2 + $0x1b0] sm:$0xff] %v2234_v60  ;;  %v2228_v27 = vadd.f32 %v2163_v37, %v2108_v33  ;;  %v2116_v25 = vmul.f32 %v2053_v15, %v5417_v50 }
 0x335   : > { %2305 = vst.msk [vmem:[#allocation2 + $0x1b8] sm:$0xff] %vm1654_vm1, %v2235_v2  ;;  %2292 = vst [vmem:[#allocation2 + $0x150] sm:$0xff] %v2222_v30  ;;  %v2117_v9 = vmul.f32 %v2053_v15, %v5418_v19  ;;  %v2118_v14 = vmul.f32 %v2053_v15, %v5419_v10  ;;  %v2119_v5 = vmul.f32 %v2053_v15, %v5420_v44 }
 0x336   : > { %2293 = vst [vmem:[#allocation2 + $0x158] sm:$0xff] %v2223_v20  ;;  %2294 = vst [vmem:[#allocation2 + $0x160] sm:$0xff] %v2224_v43  ;;  %v2120_v23 = vmul.f32 %v2053_v15, %v4628_v34  ;;  %v2121_v62 = vmul.f32 %v2053_v15, %v4643_v0  ;;  %v2122_v28 = vmul.f32 %v2053_v15, %v4669_v63 }
 0x337   : > { %2295 = vst [vmem:[#allocation2 + $0x168] sm:$0xff] %v2225_v52  ;;  %2296 = vst [vmem:[#allocation2 + $0x170] sm:$0xff] %v2226_v58  ;;  %v2173_v53 = vpop.permute.xlu1 %2172 }
 0x338   : > { %2297 = vst [vmem:[#allocation2 + $0x178] sm:$0xff] %v2227_v38  ;;  %2298 = vst.msk [vmem:[#allocation2 + $0x180] sm:$0xff] %vm1654_vm1, %v2228_v27  ;;  %v2236_v51 = vadd.f32 %v2173_v53, %v2116_v25  ;;  %v2237_v32 = vadd.f32 %v2173_v53, %v2117_v9  ;;  %v2238_v3 = vadd.f32 %v2173_v53, %v2118_v14 }
 0x339   : > { %v2239_v21 = vadd.f32 %v2173_v53, %v2119_v5  ;;  %v2240_v12 = vadd.f32 %v2173_v53, %v2120_v23  ;;  %v2241_v48 = vadd.f32 %v2173_v53, %v2121_v62  ;;  %v2242_v59 = vadd.f32 %v2173_v53, %v2122_v28 }
 0x33a   : > { %2306 = vst [vmem:[#allocation2 + $0x1c0] sm:$0xff] %v2236_v51  ;;  %2307 = vst [vmem:[#allocation2 + $0x1c8] sm:$0xff] %v2237_v32 }
 0x33b   : > { %2308 = vst [vmem:[#allocation2 + $0x1d0] sm:$0xff] %v2238_v3  ;;  %2309 = vst [vmem:[#allocation2 + $0x1d8] sm:$0xff] %v2239_v21 }
 0x33c   : > { %2310 = vst [vmem:[#allocation2 + $0x1e0] sm:$0xff] %v2240_v12  ;;  %2311 = vst [vmem:[#allocation2 + $0x1e8] sm:$0xff] %v2241_v48 }
 0x33d   : > { %2312 = vst.msk [vmem:[#allocation2 + $0x1f0] sm:$0xff] %vm1654_vm1, %v2242_v59 }
 0x33e PF: > { %v2399_v34 = vld [vmem:[#allocation2 + $0x200] sm:$0xff]  ;;  %v2401_v0 = vld [vmem:[#allocation2 + $0x210] sm:$0xff]  ;;  %v2398_v63 = vld [vmem:[#allocation2 + $0x1f8] sm:$0xff]  ;;  %vm2405_vm2 = vcmask 654336   ;;  %v3734_v58 = vmov 0.0   ;;  %vm3735_vm3 = vmmov 0  }
 0x33f   : > { %2463 = vmatprep.subr.mxu0 %v2399_v34  ;;  %2618 = vmatprep.subr.mxu1 %v2401_v0  ;;  %v2400_v29 = vld [vmem:[#allocation2 + $0x208] sm:$0xff]  ;;  %v2385_v42 = vld [vmem:[#allocation2 + $0x190] sm:$0xff]  ;;  %v2387_v11 = vld [vmem:[#allocation2 + $0x1a0] sm:$0xff]  ;;  %vm3062_vm4 = vcmask 130048  }
 0x340   : > { %2464 = vmatpush1.msra.mxu0 %v2398_v63  ;;  %2619 = vmatpush1.msra.mxu1 %v2400_v29  ;;  %v2384_v7 = vld [vmem:[#allocation2 + $0x188] sm:$0xff]  ;;  %v2386_v57 = vld [vmem:[#allocation2 + $0x198] sm:$0xff]  ;;  %v2377_v55 = vld [vmem:[#allocation2 + $0x150] sm:$0xff] }
 0x341   : > { %v2392_v56 = vld [vmem:[#allocation2 + $0x1c8] sm:$0xff]  ;;  %v2391_v6 = vld [vmem:[#allocation2 + $0x1c0] sm:$0xff]  ;;  %v2378_v39 = vld [vmem:[#allocation2 + $0x158] sm:$0xff]  ;;  %2515 = vmatprep.mubr.f32.mxu0 %v3734_v58  ;;  %2670 = vmatprep.mubr.f32.mxu1 %v3734_v58 }
 0x342   : > { %v2394_v16 = vld [vmem:[#allocation2 + $0x1d8] sm:$0xff]  ;;  %v2393_v31 = vld [vmem:[#allocation2 + $0x1d0] sm:$0xff]  ;;  %2465 = vmatprep.subr.mxu0 %v2392_v56  ;;  %v2380_v45 = vld [vmem:[#allocation2 + $0x168] sm:$0xff] }
 0x343   : > { %2620 = vmatprep.subr.mxu1 %v2394_v16  ;;  %2466 = vmatpush1.msra.mxu0 %v2391_v6  ;;  %v2379_v8 = vld [vmem:[#allocation2 + $0x160] sm:$0xff]  ;;  %v2373_v40 = vld [vmem:[#allocation2 + $0x130] sm:$0xff]  ;;  %v2370_v36 = vld [vmem:[#allocation2 + $0x118] sm:$0xff] }
 0x344   : > { %2621 = vmatpush1.msra.mxu1 %v2393_v31  ;;  %2467 = vmatprep.subr.mxu0 %v2385_v42  ;;  %v2371_v41 = vld [vmem:[#allocation2 + $0x120] sm:$0xff]  ;;  %v2372_v13 = vld [vmem:[#allocation2 + $0x128] sm:$0xff]  ;;  %v2366_v17 = vld [vmem:[#allocation2 + $0xf8] sm:$0xff] }
 0x345   : > { %2622 = vmatprep.subr.mxu1 %v2387_v11  ;;  %2468 = vmatpush1.msra.mxu0 %v2384_v7  ;;  %v2364_v18 = vld [vmem:[#allocation2 + $0xe8] sm:$0xff]  ;;  %v2363_v49 = vld [vmem:[#allocation2 + $0xe0] sm:$0xff]  ;;  %v2365_v26 = vld [vmem:[#allocation2 + $0xf0] sm:$0xff] }
 0x346   : > { %2623 = vmatpush1.msra.mxu1 %v2386_v57  ;;  %2469 = vmatprep.subr.mxu0 %v2378_v39  ;;  %v2357_v24 = vld [vmem:[#allocation2 + $0xb0] sm:$0xff]  ;;  %v2359_v47 = vld [vmem:[#allocation2 + $0xc0] sm:$0xff]  ;;  %v2356_v33 = vld [vmem:[#allocation2 + $0xa8] sm:$0xff] }
 0x347   : > { %2624 = vmatprep.subr.mxu1 %v2380_v45  ;;  %2470 = vmatpush1.msra.mxu0 %v2377_v55  ;;  %v2358_v4 = vld [vmem:[#allocation2 + $0xb8] sm:$0xff]  ;;  %v2352_v46 = vld [vmem:[#allocation2 + $0x88] sm:$0xff]  ;;  %v2349_v37 = vld [vmem:[#allocation2 + $0x70] sm:$0xff] }
 0x348   : > { %2625 = vmatpush1.msra.mxu1 %v2379_v8  ;;  %2471 = vmatprep.subr.mxu0 %v2371_v41  ;;  %v2350_v35 = vld [vmem:[#allocation2 + $0x78] sm:$0xff]  ;;  %v2351_v1 = vld [vmem:[#allocation2 + $0x80] sm:$0xff]  ;;  %v2345_v54 = vld [vmem:[#allocation2 + $0x50] sm:$0xff] }
 0x349   : > { %2626 = vmatprep.subr.mxu1 %v2373_v40  ;;  %2472 = vmatpush1.msra.mxu0 %v2370_v36  ;;  %v2343_v61 = vld [vmem:[#allocation2 + $0x40] sm:$0xff]  ;;  %v2342_v22 = vld [vmem:[#allocation2 + $0x38] sm:$0xff]  ;;  %v2344_v60 = vld [vmem:[#allocation2 + $0x48] sm:$0xff] }
 0x34a   : > { %2627 = vmatpush1.msra.mxu1 %v2372_v13  ;;  %2473 = vmatprep.subr.mxu0 %v2364_v18  ;;  %v2336_v2 = vld [vmem:[#allocation2 + $0x8] sm:$0xff]  ;;  %v2338_v30 = vld [vmem:[#allocation2 + $0x18] sm:$0xff]  ;;  %v2335_v20 = vld [vmem:[#allocation2] sm:$0xff] }
 0x34b   : > { %2628 = vmatprep.subr.mxu1 %v2366_v17  ;;  %2474 = vmatpush1.msra.mxu0 %v2363_v49  ;;  %v2337_v43 = vld [vmem:[#allocation2 + $0x10] sm:$0xff]  ;;  %v4881_v52 = vld [vmem:[%s3849_s28] sm:$0xff]  ;;  %v2402_v27 = vld [vmem:[#allocation2 + $0x218] sm:$0xff] }
 0x34c   : > { %2629 = vmatpush1.msra.mxu1 %v2365_v26  ;;  %2475 = vmatprep.subr.mxu0 %v2357_v24  ;;  %v2403_v38 = vld [vmem:[#allocation2 + $0x220] sm:$0xff]  ;;  %v2404_v15 = vld [vmem:[#allocation2 + $0x228] sm:$0xff]  ;;  %v2389_v9 = vld [vmem:[#allocation2 + $0x1b0] sm:$0xff] }
 0x34d   : > { %2630 = vmatprep.subr.mxu1 %v2359_v47  ;;  %2476 = vmatpush1.msra.mxu0 %v2356_v33  ;;  %v4891_v50 = vld [vmem:[%s3849_s28 + $0x8] sm:$0xff]  ;;  %v2395_v19 = vld [vmem:[#allocation2 + $0x1e0] sm:$0xff]  ;;  %v4901_v10 = vld [vmem:[%s3849_s28 + $0x10] sm:$0xff] }
 0x34e   : > { %2631 = vmatpush1.msra.mxu1 %v2358_v4  ;;  %2477 = vmatprep.subr.mxu0 %v2350_v35  ;;  %v2396_v25 = vld [vmem:[#allocation2 + $0x1e8] sm:$0xff]  ;;  %v2397_v14 = vld [vmem:[#allocation2 + $0x1f0] sm:$0xff]  ;;  %v2382_v5 = vld [vmem:[#allocation2 + $0x178] sm:$0xff] }
 0x34f   : > { %2632 = vmatprep.subr.mxu1 %v2352_v46  ;;  %2478 = vmatpush1.msra.mxu0 %v2349_v37  ;;  %v2388_v44 = vld [vmem:[#allocation2 + $0x1a8] sm:$0xff]  ;;  %v4911_v23 = vld [vmem:[%s3849_s28 + $0x18] sm:$0xff]  ;;  %v2381_v28 = vld [vmem:[#allocation2 + $0x170] sm:$0xff] }
 0x350   : > { %2633 = vmatpush1.msra.mxu1 %v2351_v1  ;;  %2479 = vmatprep.subr.mxu0 %v2343_v61  ;;  %v2390_v62 = vld [vmem:[#allocation2 + $0x1b8] sm:$0xff]  ;;  %v2375_v53 = vld [vmem:[#allocation2 + $0x140] sm:$0xff]  ;;  %v2368_v21 = vld [vmem:[#allocation2 + $0x108] sm:$0xff] }
 0x351   : > { %2634 = vmatprep.subr.mxu1 %v2345_v54  ;;  %2480 = vmatpush1.msra.mxu0 %v2342_v22  ;;  %v4921_v51 = vld [vmem:[%s3849_s28 + $0x20] sm:$0xff]  ;;  %v2374_v3 = vld [vmem:[#allocation2 + $0x138] sm:$0xff]  ;;  %v4932_v12 = vld [vmem:[%s3849_s28 + $0x28] sm:$0xff] }
 0x352   : > { %2635 = vmatpush1.msra.mxu1 %v2344_v60  ;;  %2481 = vmatprep.subr.mxu0 %v2336_v2  ;;  %v2383_v32 = vld [vmem:[#allocation2 + $0x180] sm:$0xff]  ;;  %v2376_v48 = vld [vmem:[#allocation2 + $0x148] sm:$0xff]  ;;  %v2361_v34 = vld [vmem:[#allocation2 + $0xd0] sm:$0xff] }
 0x353   : > { %2636 = vmatprep.subr.mxu1 %v2338_v30  ;;  %2482 = vmatpush1.msra.mxu0 %v2335_v20  ;;  %v2367_v59 = vld [vmem:[#allocation2 + $0x100] sm:$0xff]  ;;  %v4942_v0 = vld [vmem:[%s3849_s28 + $0x30] sm:$0xff]  ;;  %v2360_v29 = vld [vmem:[#allocation2 + $0xc8] sm:$0xff] }
 0x354   : > { %2637 = vmatpush1.msra.mxu1 %v2337_v43  ;;  %3306 = vmatmul.mubr.msk.f32.vlgmr.msra.gmra.mxu0 %vm2405_vm2, %v4881_v52  ;;  %v2369_v63 = vld [vmem:[#allocation2 + $0x110] sm:$0xff]  ;;  %v2354_v56 = vld [vmem:[#allocation2 + $0x98] sm:$0xff]  ;;  %v2347_v42 = vld [vmem:[#allocation2 + $0x60] sm:$0xff] }
 0x355   : > { %3321 = vmatmul.mubr.msk.f32.vlgmr.msra.gmra.mxu1 %vm2405_vm2, %v4881_v52  ;;  %2773 = vmatprep.subr.mxu0 %v2403_v38  ;;  %v4952_v16 = vld [vmem:[%s3849_s28 + $0x38] sm:$0xff]  ;;  %v2353_v31 = vld [vmem:[#allocation2 + $0x90] sm:$0xff]  ;;  %v4962_v11 = vld [vmem:[%s3849_s28 + $0x40] sm:$0xff] }
 0x356   : > { %3492 = vmatprep.subr.mxu1 %v3734_v58  ;;  %2774 = vmatpush1.msra.mxu0 %v2402_v27  ;;  %v2362_v6 = vld [vmem:[#allocation2 + $0xd8] sm:$0xff]  ;;  %v2355_v7 = vld [vmem:[#allocation2 + $0xa0] sm:$0xff]  ;;  %v2340_v39 = vld [vmem:[#allocation2 + $0x28] sm:$0xff] }
 0x357   : > { %3493 = vmatpush3.msra.mxu1 %v2404_v15  ;;  %2521 = vmatprep.mubr.f32.mxu0 %v3734_v58  ;;  %v2346_v57 = vld [vmem:[#allocation2 + $0x58] sm:$0xff]  ;;  %v4972_v45 = vld [vmem:[%s3849_s28 + $0x48] sm:$0xff]  ;;  %v2339_v8 = vld [vmem:[#allocation2 + $0x20] sm:$0xff] }
 0x358   : > { %2676 = vmatprep.mubr.f32.mxu1 %v3734_v58  ;;  %3307 = vmatmul.mubr.msk.f32.gmra.mxu0 %vm2405_vm2, %v4891_v50  ;;  %v2348_v55 = vld [vmem:[#allocation2 + $0x68] sm:$0xff]  ;;  %v4982_v41 = vld [vmem:[%s3849_s28 + $0x50] sm:$0xff]  ;;  %v4992_v36 = vld [vmem:[%s3849_s28 + $0x58] sm:$0xff] }
 0x359   : > { %3322 = vmatmul.mubr.msk.f32.gmra.mxu1 %vm2405_vm2, %v4891_v50  ;;  %2775 = vmatprep.subr.mxu0 %v2396_v25  ;;  %v2341_v40 = vld [vmem:[#allocation2 + $0x30] sm:$0xff]  ;;  %v5001_v13 = vld [vmem:[%s3849_s28 + $0x60] sm:$0xff]  ;;  %v5010_v18 = vld [vmem:[%s3849_s28 + $0x68] sm:$0xff] }
 0x35a   : > { %2527 = vmatprep.mubr.f32.mxu0 %v3734_v58  ;;  %2682 = vmatprep.mubr.f32.mxu1 %v3734_v58  ;;  %v5019_v17 = vld [vmem:[%s3849_s28 + $0x70] sm:$0xff] }
 0x35b   : > { %2776 = vmatpush1.msra.mxu0 %v2395_v19  ;;  %3494 = vmatprep.subr.mxu1 %v3734_v58 }
 0x35c   : > { %2777 = vmatprep.subr.mxu0 %v2389_v9  ;;  %3308 = vmatmul.mubr.msk.f32.gmra.mxu0 %vm2405_vm2, %v4901_v10 }
 0x35d   : > { %3323 = vmatmul.mubr.msk.f32.gmra.mxu1 %vm2405_vm2, %v4901_v10  ;;  %2533 = vmatprep.mubr.f32.mxu0 %v3734_v58 }
 0x35e   : > { %3495 = vmatpush3.msra.mxu1 %v2397_v14  ;;  %2688 = vmatprep.mubr.f32.mxu1 %v3734_v58 }
 0x35f   : > { %2778 = vmatpush1.msra.mxu0 %v2388_v44  ;;  %3496 = vmatprep.subr.mxu1 %v3734_v58 }
 0x360   : > { %2779 = vmatprep.subr.mxu0 %v2382_v5  ;;  %3309 = vmatmul.mubr.msk.f32.gmra.mxu0 %vm2405_vm2, %v4911_v23 }
 0x361   : > { %3324 = vmatmul.mubr.msk.f32.gmra.mxu1 %vm2405_vm2, %v4911_v23  ;;  %2539 = vmatprep.mubr.f32.mxu0 %v3734_v58 }
 0x362   : > { %3497 = vmatpush3.msra.mxu1 %v2390_v62  ;;  %2694 = vmatprep.mubr.f32.mxu1 %v3734_v58 }
 0x363   : > { %2780 = vmatpush1.msra.mxu0 %v2381_v28  ;;  %3498 = vmatprep.subr.mxu1 %v3734_v58 }
 0x364   : > { %2781 = vmatprep.subr.mxu0 %v2375_v53  ;;  %3310 = vmatmul.mubr.msk.f32.gmra.mxu0 %vm2405_vm2, %v4921_v51 }
 0x365   : > { %3325 = vmatmul.mubr.msk.f32.gmra.mxu1 %vm2405_vm2, %v4921_v51  ;;  %2545 = vmatprep.mubr.f32.mxu0 %v3734_v58 }
 0x366   : > { %2700 = vmatprep.mubr.f32.mxu1 %v3734_v58  ;;  %3499 = vmatpush3.msra.mxu1 %v2383_v32 }
 0x367   : > { %2782 = vmatpush1.msra.mxu0 %v2374_v3  ;;  %3500 = vmatprep.subr.mxu1 %v3734_v58 }
 0x368   : > { %2783 = vmatprep.subr.mxu0 %v2368_v21  ;;  %3311 = vmatmul.mubr.msk.f32.gmra.mxu0 %vm2405_vm2, %v4932_v12 }
 0x369   : > { %3326 = vmatmul.mubr.msk.f32.gmra.mxu1 %vm2405_vm2, %v4932_v12  ;;  %2551 = vmatprep.mubr.f32.mxu0 %v3734_v58 }
 0x36a   : > { %2706 = vmatprep.mubr.f32.mxu1 %v3734_v58  ;;  %3501 = vmatpush3.msra.mxu1 %v2376_v48 }
 0x36b   : > { %2784 = vmatpush1.msra.mxu0 %v2367_v59  ;;  %3502 = vmatprep.subr.mxu1 %v3734_v58 }
 0x36c   : > { %2785 = vmatprep.subr.mxu0 %v2361_v34  ;;  %3312 = vmatmul.mubr.msk.f32.gmra.mxu0 %vm2405_vm2, %v4942_v0 }
 0x36d   : > { %3327 = vmatmul.mubr.msk.f32.gmra.mxu1 %vm2405_vm2, %v4942_v0  ;;  %2557 = vmatprep.mubr.f32.mxu0 %v3734_v58 }
 0x36e   : > { %2712 = vmatprep.mubr.f32.mxu1 %v3734_v58  ;;  %3503 = vmatpush3.msra.mxu1 %v2369_v63 }
 0x36f   : > { %2786 = vmatpush1.msra.mxu0 %v2360_v29  ;;  %3504 = vmatprep.subr.mxu1 %v3734_v58 }
 0x370   : > { %2787 = vmatprep.subr.mxu0 %v2354_v56  ;;  %3313 = vmatmul.mubr.msk.f32.gmra.mxu0 %vm2405_vm2, %v4952_v16 }
 0x371   : > { %3328 = vmatmul.mubr.msk.f32.gmra.mxu1 %vm2405_vm2, %v4952_v16  ;;  %2563 = vmatprep.mubr.f32.mxu0 %v3734_v58 }
 0x372   : > { %2718 = vmatprep.mubr.f32.mxu1 %v3734_v58  ;;  %3505 = vmatpush3.msra.mxu1 %v2362_v6 }
 0x373   : > { %2788 = vmatpush1.msra.mxu0 %v2353_v31  ;;  %3506 = vmatprep.subr.mxu1 %v3734_v58 }
 0x374   : > { %2789 = vmatprep.subr.mxu0 %v2347_v42  ;;  %3314 = vmatmul.mubr.msk.f32.gmra.mxu0 %vm2405_vm2, %v4962_v11 }
 0x375   : > { %3329 = vmatmul.mubr.msk.f32.gmra.mxu1 %vm2405_vm2, %v4962_v11  ;;  %2569 = vmatprep.mubr.f32.mxu0 %v3734_v58 }
 0x376   : > { %2724 = vmatprep.mubr.f32.mxu1 %v3734_v58  ;;  %3507 = vmatpush3.msra.mxu1 %v2355_v7 }
 0x377   : > { %2790 = vmatpush1.msra.mxu0 %v2346_v57  ;;  %3508 = vmatprep.subr.mxu1 %v3734_v58 }
 0x378   : > { %2791 = vmatprep.subr.mxu0 %v2340_v39  ;;  %3315 = vmatmul.mubr.msk.f32.gmra.mxu0 %vm2405_vm2, %v4972_v45 }
 0x379   : > { %3330 = vmatmul.mubr.msk.f32.gmra.mxu1 %vm2405_vm2, %v4972_v45  ;;  %2575 = vmatprep.mubr.f32.mxu0 %v3734_v58 }
 0x37a   : > { %2730 = vmatprep.mubr.f32.mxu1 %v3734_v58  ;;  %3509 = vmatpush3.msra.mxu1 %v2348_v55 }
 0x37b   : > { %2792 = vmatpush1.msra.mxu0 %v2339_v8  ;;  %3510 = vmatprep.subr.mxu1 %v3734_v58 }
 0x37c   : > { %3316 = vmatmul.mubr.msk.f32.gmra.mxu0 %vm2405_vm2, %v4982_v41  ;;  %3511 = vmatpush3.msra.mxu1 %v2341_v40 }
 0x37d   : > { %3331 = vmatmul.mubr.msk.f32.gmra.mxu1 %vm2405_vm2, %v4982_v41  ;;  %2581 = vmatprep.mubr.f32.mxu0 %v3734_v58 }
 0x37e   : > { %2736 = vmatprep.mubr.f32.mxu1 %v3734_v58 }
 0x380   : > { %3317 = vmatmul.mubr.msk.f32.gmra.mxu0 %vm2405_vm2, %v4992_v36 }
 0x381   : > { %3332 = vmatmul.mubr.msk.f32.gmra.mxu1 %vm2405_vm2, %v4992_v36  ;;  %2587 = vmatprep.mubr.f32.mxu0 %v3734_v58 }
 0x382   : > { %2742 = vmatprep.mubr.f32.mxu1 %v3734_v58 }
 0x384   : > { %3318 = vmatmul.mubr.msk.f32.gmra.mxu0 %vm2405_vm2, %v5001_v13 }
 0x385   : > { %3333 = vmatmul.mubr.msk.f32.gmra.mxu1 %vm2405_vm2, %v5001_v13  ;;  %2593 = vmatprep.mubr.f32.mxu0 %v3734_v58 }
 0x386   : > { %2748 = vmatprep.mubr.f32.mxu1 %v3734_v58 }
 0x388   : > { %3319 = vmatmul.mubr.msk.f32.gmra.mxu0 %vm2405_vm2, %v5010_v18 }
 0x389   : > { %3334 = vmatmul.mubr.msk.f32.gmra.mxu1 %vm2405_vm2, %v5010_v18  ;;  %2599 = vmatprep.mubr.f32.mxu0 %v3734_v58 }
 0x38a   : > { %2754 = vmatprep.mubr.f32.mxu1 %v3734_v58 }
 0x38c   : > { %3320 = vmatmul.mubr.msk.f32.gmra.mxu0 %vm2405_vm2, %v5019_v17 }
 0x38d   : > { %3335 = vmatmul.mubr.msk.f32.gmra.mxu1 %vm2405_vm2, %v5019_v17  ;;  %2825 = vmatprep.mubr.f32.mxu0 %v3734_v58 }
 0x38e   : > { %3512 = vmatprep.mubr.msk.f32.mxu1 %vm3735_vm3, %v3734_v58 }
 0x390   : > { %3336 = vmatmul.mubr.msk.f32.vlgmr.msra.gmra.mxu0 %vm2405_vm2, %v4881_v52 }
 0x391   : > { %3513 = vmatmul.mubr.msk.f32.vlgmr.msra.gmra.mxu1 %vm2405_vm2, %v4881_v52  ;;  %2831 = vmatprep.mubr.f32.mxu0 %v3734_v58 }
 0x392   : > { %3515 = vmatprep.mubr.msk.f32.mxu1 %vm3735_vm3, %v3734_v58 }
 0x394   : > { %3337 = vmatmul.mubr.msk.f32.gmra.mxu0 %vm2405_vm2, %v4891_v50 }
 0x395   : > { %3516 = vmatmul.mubr.msk.f32.gmra.mxu1 %vm2405_vm2, %v4891_v50  ;;  %2837 = vmatprep.mubr.f32.mxu0 %v3734_v58 }
 0x396   : > { %3518 = vmatprep.mubr.msk.f32.mxu1 %vm3735_vm3, %v3734_v58 }
 0x398   : > { %3338 = vmatmul.mubr.msk.f32.gmra.mxu0 %vm2405_vm2, %v4901_v10 }
 0x399   : > { %3519 = vmatmul.mubr.msk.f32.gmra.mxu1 %vm2405_vm2, %v4901_v10  ;;  %2843 = vmatprep.mubr.f32.mxu0 %v3734_v58 }
 0x39a   : > { %3521 = vmatprep.mubr.msk.f32.mxu1 %vm3735_vm3, %v3734_v58 }
 0x39c   : > { %3339 = vmatmul.mubr.msk.f32.gmra.mxu0 %vm2405_vm2, %v4911_v23 }
 0x39d   : > { %3522 = vmatmul.mubr.msk.f32.gmra.mxu1 %vm2405_vm2, %v4911_v23  ;;  %2849 = vmatprep.mubr.f32.mxu0 %v3734_v58 }
 0x39e   : > { %3524 = vmatprep.mubr.msk.f32.mxu1 %vm3735_vm3, %v3734_v58 }
 0x3a0   : > { %3340 = vmatmul.mubr.msk.f32.gmra.mxu0 %vm2405_vm2, %v4921_v51 }
 0x3a1   : > { %3525 = vmatmul.mubr.msk.f32.gmra.mxu1 %vm2405_vm2, %v4921_v51  ;;  %2855 = vmatprep.mubr.f32.mxu0 %v3734_v58 }
 0x3a2   : > { %3527 = vmatprep.mubr.msk.f32.mxu1 %vm3735_vm3, %v3734_v58 }
 0x3a4   : > { %3341 = vmatmul.mubr.msk.f32.gmra.mxu0 %vm2405_vm2, %v4932_v12 }
 0x3a5   : > { %3528 = vmatmul.mubr.msk.f32.gmra.mxu1 %vm2405_vm2, %v4932_v12  ;;  %2861 = vmatprep.mubr.f32.mxu0 %v3734_v58 }
 0x3a6   : > { %3530 = vmatprep.mubr.msk.f32.mxu1 %vm3735_vm3, %v3734_v58 }
 0x3a8   : > { %3342 = vmatmul.mubr.msk.f32.gmra.mxu0 %vm2405_vm2, %v4942_v0 }
 0x3a9   : > { %3531 = vmatmul.mubr.msk.f32.gmra.mxu1 %vm2405_vm2, %v4942_v0  ;;  %2867 = vmatprep.mubr.f32.mxu0 %v3734_v58 }
 0x3aa   : > { %3533 = vmatprep.mubr.msk.f32.mxu1 %vm3735_vm3, %v3734_v58 }
 0x3ac   : > { %3343 = vmatmul.mubr.msk.f32.gmra.mxu0 %vm2405_vm2, %v4952_v16 }
 0x3ad   : > { %3534 = vmatmul.mubr.msk.f32.gmra.mxu1 %vm2405_vm2, %v4952_v16  ;;  %2873 = vmatprep.mubr.f32.mxu0 %v3734_v58 }
 0x3ae   : > { %3536 = vmatprep.mubr.msk.f32.mxu1 %vm3735_vm3, %v3734_v58 }
 0x3b0   : > { %3344 = vmatmul.mubr.msk.f32.gmra.mxu0 %vm2405_vm2, %v4962_v11 }
 0x3b1   : > { %3537 = vmatmul.mubr.msk.f32.gmra.mxu1 %vm2405_vm2, %v4962_v11  ;;  %2879 = vmatprep.mubr.f32.mxu0 %v3734_v58 }
 0x3b2   : > { %3539 = vmatprep.mubr.msk.f32.mxu1 %vm3735_vm3, %v3734_v58 }
 0x3b4   : > { %3345 = vmatmul.mubr.msk.f32.gmra.mxu0 %vm2405_vm2, %v4972_v45 }
 0x3b5   : > { %3540 = vmatmul.mubr.msk.f32.gmra.mxu1 %vm2405_vm2, %v4972_v45  ;;  %2885 = vmatprep.mubr.f32.mxu0 %v3734_v58 }
 0x3b6   : > { %3542 = vmatprep.mubr.msk.f32.mxu1 %vm3735_vm3, %v3734_v58 }
 0x3b8   : > { %3346 = vmatmul.mubr.msk.f32.gmra.mxu0 %vm2405_vm2, %v4982_v41 }
 0x3b9   : > { %3543 = vmatmul.mubr.msk.f32.gmra.mxu1 %vm2405_vm2, %v4982_v41  ;;  %2891 = vmatprep.mubr.f32.mxu0 %v3734_v58 }
 0x3ba   : > { %3545 = vmatprep.mubr.msk.f32.mxu1 %vm3735_vm3, %v3734_v58 }
 0x3bc   : > { %3347 = vmatmul.mubr.msk.f32.gmra.mxu0 %vm2405_vm2, %v4992_v36 }
 0x3bd   : > { %3546 = vmatmul.mubr.msk.f32.gmra.mxu1 %vm2405_vm2, %v4992_v36  ;;  %2897 = vmatprep.mubr.f32.mxu0 %v3734_v58 }
 0x3be   : > { %3548 = vmatprep.mubr.msk.f32.mxu1 %vm3735_vm3, %v3734_v58 }
 0x3c0   : > { %3348 = vmatmul.mubr.msk.f32.gmra.mxu0 %vm2405_vm2, %v5001_v13 }
 0x3c1   : > { %3549 = vmatmul.mubr.msk.f32.gmra.mxu1 %vm2405_vm2, %v5001_v13  ;;  %2903 = vmatprep.mubr.f32.mxu0 %v3734_v58 }
 0x3c2   : > { %3551 = vmatprep.mubr.msk.f32.mxu1 %vm3735_vm3, %v3734_v58 }
 0x3c4   : > { %3349 = vmatmul.mubr.msk.f32.gmra.mxu0 %vm2405_vm2, %v5010_v18 }
 0x3c5   : > { %3552 = vmatmul.mubr.msk.f32.gmra.mxu1 %vm2405_vm2, %v5010_v18  ;;  %2909 = vmatprep.mubr.f32.mxu0 %v3734_v58 }
 0x3c6   : > { %3554 = vmatprep.mubr.msk.f32.mxu1 %vm3735_vm3, %v3734_v58 }
 0x3c8   : > { %3350 = vmatmul.mubr.msk.f32.gmra.mxu0 %vm2405_vm2, %v5019_v17 }
 0x3c9   : > { %3555 = vmatmul.mubr.msk.f32.gmra.mxu1 %vm2405_vm2, %v5019_v17 }
 0x414   : > { %v2517_v49 = vpop.f32.mrf.mxu0 }
 0x415   : > { %v2672_v26 = vpop.f32.mrf.mxu1  ;;  %3056 = vst [vmem:[%s3854_s7] sm:$0xff] %v2517_v49 }
 0x416   : > { %3058 = vst [vmem:[%s3854_s7 + $0x10] sm:$0xff] %v2672_v26  ;;  %v2519_v24 = vpop.f32.mrf.mxu0 }
 0x417   : > { %v2674_v47 = vpop.f32.mrf.mxu1  ;;  %3057 = vst [vmem:[%s3854_s7 + $0x8] sm:$0xff] %v2519_v24 }
 0x418   : > { %3059 = vst [vmem:[%s3854_s7 + $0x18] sm:$0xff] %v2674_v47  ;;  %v2523_v33 = vpop.f32.mrf.mxu0 }
 0x419   : > { %v2678_v4 = vpop.f32.mrf.mxu1  ;;  %3064 = vst [vmem:[%s3854_s7 + $0x38] sm:$0xff] %v2523_v33 }
 0x41a   : > { %3066 = vst [vmem:[%s3854_s7 + $0x48] sm:$0xff] %v2678_v4  ;;  %v2525_v35 = vpop.f32.mrf.mxu0 }
 0x41b   : > { %v2680_v46 = vpop.f32.mrf.mxu1  ;;  %3065 = vst [vmem:[%s3854_s7 + $0x40] sm:$0xff] %v2525_v35 }
 0x41c   : > { %3067 = vst [vmem:[%s3854_s7 + $0x50] sm:$0xff] %v2680_v46  ;;  %v2529_v37 = vpop.f32.mrf.mxu0 }
 0x41d   : > { %v2684_v1 = vpop.f32.mrf.mxu1  ;;  %3071 = vst [vmem:[%s3854_s7 + $0x70] sm:$0xff] %v2529_v37 }
 0x41e   : > { %3073 = vst [vmem:[%s3854_s7 + $0x80] sm:$0xff] %v2684_v1  ;;  %v2531_v61 = vpop.f32.mrf.mxu0 }
 0x41f   : > { %v2686_v54 = vpop.f32.mrf.mxu1  ;;  %3072 = vst [vmem:[%s3854_s7 + $0x78] sm:$0xff] %v2531_v61 }
 0x420   : > { %3074 = vst [vmem:[%s3854_s7 + $0x88] sm:$0xff] %v2686_v54  ;;  %v2535_v22 = vpop.f32.mrf.mxu0 }
 0x421   : > { %v2690_v60 = vpop.f32.mrf.mxu1  ;;  %3078 = vst [vmem:[%s3854_s7 + $0xa8] sm:$0xff] %v2535_v22 }
 0x422   : > { %3080 = vst [vmem:[%s3854_s7 + $0xb8] sm:$0xff] %v2690_v60  ;;  %v2537_v2 = vpop.f32.mrf.mxu0 }
 0x423   : > { %v2692_v30 = vpop.f32.mrf.mxu1  ;;  %3079 = vst [vmem:[%s3854_s7 + $0xb0] sm:$0xff] %v2537_v2 }
 0x424   : > { %3081 = vst [vmem:[%s3854_s7 + $0xc0] sm:$0xff] %v2692_v30  ;;  %v2541_v20 = vpop.f32.mrf.mxu0 }
 0x425   : > { %v2696_v43 = vpop.f32.mrf.mxu1  ;;  %3085 = vst [vmem:[%s3854_s7 + $0xe0] sm:$0xff] %v2541_v20 }
 0x426   : > { %3087 = vst [vmem:[%s3854_s7 + $0xf0] sm:$0xff] %v2696_v43  ;;  %v2543_v52 = vpop.f32.mrf.mxu0 }
 0x427   : > { %v2698_v58 = vpop.f32.mrf.mxu1  ;;  %3086 = vst [vmem:[%s3854_s7 + $0xe8] sm:$0xff] %v2543_v52 }
 0x428   : > { %3088 = vst [vmem:[%s3854_s7 + $0xf8] sm:$0xff] %v2698_v58  ;;  %v2547_v38 = vpop.f32.mrf.mxu0 }
 0x429   : > { %v2702_v27 = vpop.f32.mrf.mxu1  ;;  %3092 = vst [vmem:[%s3854_s7 + $0x118] sm:$0xff] %v2547_v38 }
 0x42a   : > { %3094 = vst [vmem:[%s3854_s7 + $0x128] sm:$0xff] %v2702_v27  ;;  %v2549_v15 = vpop.f32.mrf.mxu0 }
 0x42b   : > { %v2704_v50 = vpop.f32.mrf.mxu1  ;;  %3093 = vst [vmem:[%s3854_s7 + $0x120] sm:$0xff] %v2549_v15 }
 0x42c   : > { %3095 = vst [vmem:[%s3854_s7 + $0x130] sm:$0xff] %v2704_v50  ;;  %v2553_v25 = vpop.f32.mrf.mxu0 }
 0x42d   : > { %v2708_v19 = vpop.f32.mrf.mxu1  ;;  %3099 = vst [vmem:[%s3854_s7 + $0x150] sm:$0xff] %v2553_v25 }
 0x42e   : > { %3101 = vst [vmem:[%s3854_s7 + $0x160] sm:$0xff] %v2708_v19  ;;  %v2555_v9 = vpop.f32.mrf.mxu0 }
 0x42f   : > { %v2710_v10 = vpop.f32.mrf.mxu1  ;;  %3100 = vst [vmem:[%s3854_s7 + $0x158] sm:$0xff] %v2555_v9 }
 0x430   : > { %3102 = vst [vmem:[%s3854_s7 + $0x168] sm:$0xff] %v2710_v10  ;;  %v2559_v14 = vpop.f32.mrf.mxu0 }
 0x431   : > { %v2714_v44 = vpop.f32.mrf.mxu1  ;;  %3106 = vst [vmem:[%s3854_s7 + $0x188] sm:$0xff] %v2559_v14 }
 0x432   : > { %3108 = vst [vmem:[%s3854_s7 + $0x198] sm:$0xff] %v2714_v44  ;;  %v2561_v5 = vpop.f32.mrf.mxu0 }
 0x433   : > { %v2716_v23 = vpop.f32.mrf.mxu1  ;;  %3107 = vst [vmem:[%s3854_s7 + $0x190] sm:$0xff] %v2561_v5 }
 0x434   : > { %3109 = vst [vmem:[%s3854_s7 + $0x1a0] sm:$0xff] %v2716_v23  ;;  %v2565_v62 = vpop.f32.mrf.mxu0 }
 0x435   : > { %v2720_v28 = vpop.f32.mrf.mxu1  ;;  %3113 = vst [vmem:[%s3854_s7 + $0x1c0] sm:$0xff] %v2565_v62 }
 0x436   : > { %3115 = vst [vmem:[%s3854_s7 + $0x1d0] sm:$0xff] %v2720_v28  ;;  %v2567_v53 = vpop.f32.mrf.mxu0 }
 0x437   : > { %v2722_v51 = vpop.f32.mrf.mxu1  ;;  %3114 = vst [vmem:[%s3854_s7 + $0x1c8] sm:$0xff] %v2567_v53 }
 0x438   : > { %3116 = vst [vmem:[%s3854_s7 + $0x1d8] sm:$0xff] %v2722_v51  ;;  %v2571_v32 = vpop.f32.mrf.mxu0 }
 0x439   : > { %v2726_v3 = vpop.f32.mrf.mxu1  ;;  %3120 = vst [vmem:[%s3854_s7 + $0x1f8] sm:$0xff] %v2571_v32 }
 0x43a   : > { %3122 = vst [vmem:[%s3854_s7 + $0x208] sm:$0xff] %v2726_v3  ;;  %v2573_v21 = vpop.f32.mrf.mxu0 }
 0x43b   : > { %v2728_v12 = vpop.f32.mrf.mxu1  ;;  %3121 = vst [vmem:[%s3854_s7 + $0x200] sm:$0xff] %v2573_v21 }
 0x43c   : > { %3123 = vst [vmem:[%s3854_s7 + $0x210] sm:$0xff] %v2728_v12  ;;  %v2577_v48 = vpop.f32.mrf.mxu0 }
 0x43d   : > { %v2732_v59 = vpop.f32.mrf.mxu1  ;;  %3127 = vst [vmem:[%s3854_s7 + $0x230] sm:$0xff] %v2577_v48 }
 0x43e   : > { %3129 = vst [vmem:[%s3854_s7 + $0x240] sm:$0xff] %v2732_v59  ;;  %v2579_v34 = vpop.f32.mrf.mxu0 }
 0x43f   : > { %v2734_v0 = vpop.f32.mrf.mxu1  ;;  %3128 = vst [vmem:[%s3854_s7 + $0x238] sm:$0xff] %v2579_v34 }
 0x440   : > { %3130 = vst [vmem:[%s3854_s7 + $0x248] sm:$0xff] %v2734_v0  ;;  %v2583_v63 = vpop.f32.mrf.mxu0 }
 0x441   : > { %v2738_v29 = vpop.f32.mrf.mxu1  ;;  %3134 = vst [vmem:[%s3854_s7 + $0x268] sm:$0xff] %v2583_v63 }
 0x442   : > { %3136 = vst [vmem:[%s3854_s7 + $0x278] sm:$0xff] %v2738_v29  ;;  %v2585_v56 = vpop.f32.mrf.mxu0 }
 0x443   : > { %v2740_v16 = vpop.f32.mrf.mxu1  ;;  %3135 = vst [vmem:[%s3854_s7 + $0x270] sm:$0xff] %v2585_v56 }
 0x444   : > { %3137 = vst [vmem:[%s3854_s7 + $0x280] sm:$0xff] %v2740_v16  ;;  %v2589_v6 = vpop.f32.mrf.mxu0 }
 0x445   : > { %v2744_v31 = vpop.f32.mrf.mxu1  ;;  %3141 = vst [vmem:[%s3854_s7 + $0x2a0] sm:$0xff] %v2589_v6 }
 0x446   : > { %3143 = vst [vmem:[%s3854_s7 + $0x2b0] sm:$0xff] %v2744_v31  ;;  %v2591_v42 = vpop.f32.mrf.mxu0 }
 0x447   : > { %v2746_v11 = vpop.f32.mrf.mxu1  ;;  %3142 = vst [vmem:[%s3854_s7 + $0x2a8] sm:$0xff] %v2591_v42 }
 0x448   : > { %3144 = vst [vmem:[%s3854_s7 + $0x2b8] sm:$0xff] %v2746_v11  ;;  %v2595_v7 = vpop.f32.mrf.mxu0 }
 0x449   : > { %v2750_v57 = vpop.f32.mrf.mxu1  ;;  %3148 = vst [vmem:[%s3854_s7 + $0x2d8] sm:$0xff] %v2595_v7 }
 0x44a   : > { %3150 = vst [vmem:[%s3854_s7 + $0x2e8] sm:$0xff] %v2750_v57  ;;  %v2597_v39 = vpop.f32.mrf.mxu0 }
 0x44b   : > { %v2752_v45 = vpop.f32.mrf.mxu1  ;;  %3149 = vst [vmem:[%s3854_s7 + $0x2e0] sm:$0xff] %v2597_v39 }
 0x44c   : > { %3151 = vst [vmem:[%s3854_s7 + $0x2f0] sm:$0xff] %v2752_v45  ;;  %v2601_v55 = vpop.f32.mrf.mxu0 }
 0x44d   : > { %v2756_v8 = vpop.f32.mrf.mxu1  ;;  %3155 = vst [vmem:[%s3854_s7 + $0x310] sm:$0xff] %v2601_v55 }
 0x44e   : > { %3157 = vst [vmem:[%s3854_s7 + $0x320] sm:$0xff] %v2756_v8  ;;  %v2603_v41 = vpop.f32.mrf.mxu0 }
 0x44f   : > { %v2758_v40 = vpop.f32.mrf.mxu1  ;;  %3156 = vst [vmem:[%s3854_s7 + $0x318] sm:$0xff] %v2603_v41 }
 0x450   : > { %3158 = vst [vmem:[%s3854_s7 + $0x328] sm:$0xff] %v2758_v40  ;;  %v2827_v36 = vpop.f32.mrf.mxu0 }
 0x451   : > { %v2982_v13 = vpop.f32.mrf.mxu1  ;;  %3060 = vst [vmem:[%s3854_s7 + $0x20] sm:$0xff] %v2827_v36 }
 0x452   : > { %3063 = vst.msk [vmem:[%s3854_s7 + $0x30] sm:$0xff] %vm3062_vm4, %v2982_v13  ;;  %v2829_v18 = vpop.f32.mrf.mxu0 }
 0x453   : > { %v3514_v17 = vpop.f32.mrf.mxu1  ;;  %3061 = vst [vmem:[%s3854_s7 + $0x28] sm:$0xff] %v2829_v18 }
 0x454   : > { %v2833_v49 = vpop.f32.mrf.mxu0 }
 0x455   : > { %v2987_v26 = vpop.f32.mrf.mxu1  ;;  %3068 = vst [vmem:[%s3854_s7 + $0x58] sm:$0xff] %v2833_v49 }
 0x456   : > { %3070 = vst.msk [vmem:[%s3854_s7 + $0x68] sm:$0xff] %vm3062_vm4, %v2987_v26  ;;  %v2835_v24 = vpop.f32.mrf.mxu0 }
 0x457   : > { %v3517_v47 = vpop.f32.mrf.mxu1  ;;  %3069 = vst [vmem:[%s3854_s7 + $0x60] sm:$0xff] %v2835_v24 }
 0x458   : > { %v2839_v33 = vpop.f32.mrf.mxu0 }
 0x459   : > { %v2992_v4 = vpop.f32.mrf.mxu1  ;;  %3075 = vst [vmem:[%s3854_s7 + $0x90] sm:$0xff] %v2839_v33 }
 0x45a   : > { %3077 = vst.msk [vmem:[%s3854_s7 + $0xa0] sm:$0xff] %vm3062_vm4, %v2992_v4  ;;  %v2841_v35 = vpop.f32.mrf.mxu0 }
 0x45b   : > { %v3520_v46 = vpop.f32.mrf.mxu1  ;;  %3076 = vst [vmem:[%s3854_s7 + $0x98] sm:$0xff] %v2841_v35 }
 0x45c   : > { %v2845_v37 = vpop.f32.mrf.mxu0 }
 0x45d   : > { %v2997_v1 = vpop.f32.mrf.mxu1  ;;  %3082 = vst [vmem:[%s3854_s7 + $0xc8] sm:$0xff] %v2845_v37 }
 0x45e   : > { %3084 = vst.msk [vmem:[%s3854_s7 + $0xd8] sm:$0xff] %vm3062_vm4, %v2997_v1  ;;  %v2847_v61 = vpop.f32.mrf.mxu0 }
 0x45f   : > { %v3523_v54 = vpop.f32.mrf.mxu1  ;;  %3083 = vst [vmem:[%s3854_s7 + $0xd0] sm:$0xff] %v2847_v61 }
 0x460   : > { %v2851_v22 = vpop.f32.mrf.mxu0 }
 0x461   : > { %v3002_v60 = vpop.f32.mrf.mxu1  ;;  %3089 = vst [vmem:[%s3854_s7 + $0x100] sm:$0xff] %v2851_v22 }
 0x462   : > { %3091 = vst.msk [vmem:[%s3854_s7 + $0x110] sm:$0xff] %vm3062_vm4, %v3002_v60  ;;  %v2853_v2 = vpop.f32.mrf.mxu0 }
 0x463   : > { %v3526_v30 = vpop.f32.mrf.mxu1  ;;  %3090 = vst [vmem:[%s3854_s7 + $0x108] sm:$0xff] %v2853_v2 }
 0x464   : > { %v2857_v20 = vpop.f32.mrf.mxu0 }
 0x465   : > { %v3007_v43 = vpop.f32.mrf.mxu1  ;;  %3096 = vst [vmem:[%s3854_s7 + $0x138] sm:$0xff] %v2857_v20 }
 0x466   : > { %3098 = vst.msk [vmem:[%s3854_s7 + $0x148] sm:$0xff] %vm3062_vm4, %v3007_v43  ;;  %v2859_v52 = vpop.f32.mrf.mxu0 }
 0x467   : > { %v3529_v58 = vpop.f32.mrf.mxu1  ;;  %3097 = vst [vmem:[%s3854_s7 + $0x140] sm:$0xff] %v2859_v52 }
 0x468   : > { %v2863_v38 = vpop.f32.mrf.mxu0 }
 0x469   : > { %v3012_v27 = vpop.f32.mrf.mxu1  ;;  %3103 = vst [vmem:[%s3854_s7 + $0x170] sm:$0xff] %v2863_v38 }
 0x46a   : > { %3105 = vst.msk [vmem:[%s3854_s7 + $0x180] sm:$0xff] %vm3062_vm4, %v3012_v27  ;;  %v2865_v15 = vpop.f32.mrf.mxu0 }
 0x46b   : > { %v3532_v50 = vpop.f32.mrf.mxu1  ;;  %3104 = vst [vmem:[%s3854_s7 + $0x178] sm:$0xff] %v2865_v15 }
 0x46c   : > { %v2869_v25 = vpop.f32.mrf.mxu0 }
 0x46d   : > { %v3017_v19 = vpop.f32.mrf.mxu1  ;;  %3110 = vst [vmem:[%s3854_s7 + $0x1a8] sm:$0xff] %v2869_v25 }
 0x46e   : > { %3112 = vst.msk [vmem:[%s3854_s7 + $0x1b8] sm:$0xff] %vm3062_vm4, %v3017_v19  ;;  %v2871_v9 = vpop.f32.mrf.mxu0 }
 0x46f   : > { %v3535_v10 = vpop.f32.mrf.mxu1  ;;  %3111 = vst [vmem:[%s3854_s7 + $0x1b0] sm:$0xff] %v2871_v9 }
 0x470   : > { %v2875_v14 = vpop.f32.mrf.mxu0 }
 0x471   : > { %v3022_v44 = vpop.f32.mrf.mxu1  ;;  %3117 = vst [vmem:[%s3854_s7 + $0x1e0] sm:$0xff] %v2875_v14 }
 0x472   : > { %3119 = vst.msk [vmem:[%s3854_s7 + $0x1f0] sm:$0xff] %vm3062_vm4, %v3022_v44  ;;  %v2877_v5 = vpop.f32.mrf.mxu0 }
 0x473   : > { %v3538_v23 = vpop.f32.mrf.mxu1  ;;  %3118 = vst [vmem:[%s3854_s7 + $0x1e8] sm:$0xff] %v2877_v5 }
 0x474   : > { %v2881_v62 = vpop.f32.mrf.mxu0 }
 0x475   : > { %v3027_v28 = vpop.f32.mrf.mxu1  ;;  %3124 = vst [vmem:[%s3854_s7 + $0x218] sm:$0xff] %v2881_v62 }
 0x476   : > { %3126 = vst.msk [vmem:[%s3854_s7 + $0x228] sm:$0xff] %vm3062_vm4, %v3027_v28  ;;  %v2883_v53 = vpop.f32.mrf.mxu0 }
 0x477   : > { %v3541_v51 = vpop.f32.mrf.mxu1  ;;  %3125 = vst [vmem:[%s3854_s7 + $0x220] sm:$0xff] %v2883_v53 }
 0x478   : > { %v2887_v32 = vpop.f32.mrf.mxu0 }
 0x479   : > { %v3032_v3 = vpop.f32.mrf.mxu1  ;;  %3131 = vst [vmem:[%s3854_s7 + $0x250] sm:$0xff] %v2887_v32 }
 0x47a   : > { %3133 = vst.msk [vmem:[%s3854_s7 + $0x260] sm:$0xff] %vm3062_vm4, %v3032_v3  ;;  %v2889_v21 = vpop.f32.mrf.mxu0 }
 0x47b   : > { %v3544_v12 = vpop.f32.mrf.mxu1  ;;  %3132 = vst [vmem:[%s3854_s7 + $0x258] sm:$0xff] %v2889_v21 }
 0x47c   : > { %v2893_v48 = vpop.f32.mrf.mxu0 }
 0x47d   : > { %v3037_v59 = vpop.f32.mrf.mxu1  ;;  %3138 = vst [vmem:[%s3854_s7 + $0x288] sm:$0xff] %v2893_v48 }
 0x47e   : > { %3140 = vst.msk [vmem:[%s3854_s7 + $0x298] sm:$0xff] %vm3062_vm4, %v3037_v59  ;;  %v2895_v34 = vpop.f32.mrf.mxu0 }
 0x47f   : > { %v3547_v0 = vpop.f32.mrf.mxu1  ;;  %3139 = vst [vmem:[%s3854_s7 + $0x290] sm:$0xff] %v2895_v34 }
 0x480   : > { %v2899_v63 = vpop.f32.mrf.mxu0 }
 0x481   : > { %v3042_v29 = vpop.f32.mrf.mxu1  ;;  %3145 = vst [vmem:[%s3854_s7 + $0x2c0] sm:$0xff] %v2899_v63 }
 0x482   : > { %3147 = vst.msk [vmem:[%s3854_s7 + $0x2d0] sm:$0xff] %vm3062_vm4, %v3042_v29  ;;  %v2901_v56 = vpop.f32.mrf.mxu0 }
 0x483   : > { %v3550_v16 = vpop.f32.mrf.mxu1  ;;  %3146 = vst [vmem:[%s3854_s7 + $0x2c8] sm:$0xff] %v2901_v56 }
 0x484   : > { %v2905_v6 = vpop.f32.mrf.mxu0 }
 0x485   : > { %v3047_v31 = vpop.f32.mrf.mxu1  ;;  %3152 = vst [vmem:[%s3854_s7 + $0x2f8] sm:$0xff] %v2905_v6 }
 0x486   : > { %3154 = vst.msk [vmem:[%s3854_s7 + $0x308] sm:$0xff] %vm3062_vm4, %v3047_v31  ;;  %v2907_v42 = vpop.f32.mrf.mxu0 }
 0x487   : > { %v3553_v11 = vpop.f32.mrf.mxu1  ;;  %3153 = vst [vmem:[%s3854_s7 + $0x300] sm:$0xff] %v2907_v42 }
 0x488   : > { %v2911_v7 = vpop.f32.mrf.mxu0 }
 0x489   : > { %v3052_v57 = vpop.f32.mrf.mxu1  ;;  %3159 = vst [vmem:[%s3854_s7 + $0x330] sm:$0xff] %v2911_v7 }
 0x48a   : > { %3161 = vst.msk [vmem:[%s3854_s7 + $0x340] sm:$0xff] %vm3062_vm4, %v3052_v57  ;;  %v2913_v39 = vpop.f32.mrf.mxu0 }
 0x48b   : > { %v3556_v45 = vpop.f32.mrf.mxu1  ;;  %3160 = vst [vmem:[%s3854_s7 + $0x338] sm:$0xff] %v2913_v39 }
 0x48c PF: > { %s18_s21 = sadd.s32 1, %s3723_s21  }
 0x48d   : > { %p15_p2 = scmp.ge.s32.totalorder %s18_s21, 6  }
 0x48f   :  { %17 = sbr.rel (!%p15_p2) target bundleno = 2 (0x2), region = 91 }
 0x494   :  { %3186 = vsyncpa [#allocation4], 1 }
 0x495   :  { %3188 = vsyncpa [#allocation4 + $0x1], 1 }
 0x496   :  { %3189 = vsyncpa [#allocation6], 1 }

</bundles_post_ra>
